<compile_context>
chip_gen: v6e
topology: v6e:2x2x1
jax: 0.10.0
libtpu: 0.0.40
codegen_flags: <defaults>
</compile_context>

<pallas_src>
import numpy as np
import jax
import jax.numpy as jnp
from jax.experimental import pallas as pl
from jax.experimental.pallas import tpu as pltpu

F32 = jnp.float32
BF16 = jnp.bfloat16


# ----------------------------------------------------------------------------
# Static layer geometry (PyTorch shape arithmetic)
# ----------------------------------------------------------------------------

def _geometry(L):
    L1 = (L + 2 * 2 - 11) // 4 + 1          # conv1 (k=11, s=4, p=2)
    P1 = (L1 - 3) // 2 + 1                  # maxpool(3, 2)
    L2 = P1                                  # conv2 (k=5, p=2) keeps length
    P2 = (L2 - 3) // 2 + 1
    L3 = P2                                  # conv3/4/5 (k=3, p=1) keep length
    P3 = (L3 - 3) // 2 + 1
    return L1, P1, L2, P2, L3, P3


def _frames(B, L):
    L1, P1, L2, P2, L3, P3 = _geometry(L)
    F0 = L1 + 2            # conv1 super-rows per sample (stride-4 folded, halo incl.)
    F1 = P1 + 4            # pool1 output + conv2 halo (pad=2)
    F2 = P2 + 2            # pool2 output + conv3/4/5 halo (pad=1)
    G = -(-B // 8) * 8     # 8-aligned row-group stride for the flatten pieces
    return (L1, P1, L2, P2, L3, P3, F0, F1, F2, G)


def _adaptive_avg_matrix_np(lin, lout):
    """(lout, lin) matrix reproducing AdaptiveAvgPool1d segment means exactly."""
    a = np.zeros((lout, lin), np.float32)
    for j in range(lout):
        s = (j * lin) // lout
        e = -((-(j + 1) * lin) // lout)      # ceil division
        a[j, s:e] = 1.0 / (e - s)
    return a


def _sel_matrices(B, L, avg_out=6):
    """Constant selection matrices: pooling stride-2 pick + zero-halo re-framing.

    Built once at trace time (numpy).  A zero row in a selection matrix IS the
    zero padding of the following conv, so no _pad_rows concats are needed.
    """
    (L1, P1, L2, P2, L3, P3, F0, F1, F2, G) = _frames(B, L)

    # pool1 (valid rows of 3-max of conv1) -> conv2 input frame (pad=2)
    s1 = np.zeros((B * F1, B * F0 - 4), np.float32)
    for b in range(B):
        for p in range(P1):
            s1[b * F1 + 2 + p, b * F0 + 2 * p] = 1.0

    # pool2 -> conv3 input frame (pad=1)
    s2 = np.zeros((B * F2, B * F1 - 6), np.float32)
    for b in range(B):
        for p in range(P2):
            s2[b * F2 + 1 + p, b * F1 + 2 * p] = 1.0

    # conv3->conv4 and conv4->conv5: shift valid rows into a pad=1 frame
    s3 = np.zeros((B * F2, B * F2 - 2), np.float32)
    for b in range(B):
        for l in range(L3):
            s3[b * F2 + 1 + l, b * F2 + l] = 1.0

    # pool3 + AdaptiveAvgPool1d(avg_out), rows ordered feature-major (j, b) and
    # 8-aligned per feature so the flatten slices are aligned sublane reads.
    A = _adaptive_avg_matrix_np(P3, avg_out)         # identity when P3 == avg_out
    sf = np.zeros((avg_out * G, B * F2 - 4), np.float32)
    for j in range(avg_out):
        for b in range(B):
            for p in range(P3):
                sf[j * G + b, b * F2 + 2 * p] = A[j, p]

    return s1, s2, s3, sf


# ----------------------------------------------------------------------------
# Fused forward kernel
# ----------------------------------------------------------------------------

def _build_kernel(B, Cin, L, avg_out=6):
    (L1, P1, L2, P2, L3, P3, F0, F1, F2, G) = _frames(B, L)
    R1 = B * F0 - 2        # conv1 im2col rows (contains garbage rows at frame seams)
    R2 = B * F1 - 4        # conv2 im2col rows
    R3 = B * F2 - 2        # conv3/4/5 im2col rows

    def _conv_relu(x, K, R, w, b):
        # im2col with taps folded into the lane (contraction) dim: ONE MXU dot
        # per layer for the whole batch.
        win = jnp.concatenate([x[k:k + R, :] for k in range(K)], axis=1)
        y = jnp.dot(win, w, preferred_element_type=F32) + b
        return jnp.maximum(y, 0.0)

    def _max3(y):
        n = y.shape[0]
        return jnp.maximum(jnp.maximum(y[0:n - 2, :], y[1:n - 1, :]), y[2:n, :])

    def kernel(x_ref, aux_ref, w1, b1, w2, b2, w3, b3, b4, b5,
               fc1b, fc2w, fc2b, clsw, clsb,
               s1, s2, s3, sf,
               w4_hbm, w5_hbm, fc1_hbm,
               o_ref,
               w4_buf, w5_buf, fc1_buf, sem):
        # Kick off the late-layer weight DMAs immediately so they stream behind
        # the conv1-conv3 compute instead of blocking kernel entry.
        cp4 = pltpu.make_async_copy(w4_hbm, w4_buf, sem.at[0]); cp4.start()
        cp5 = pltpu.make_async_copy(w5_hbm, w5_buf, sem.at[1]); cp5.start()
        cpf = pltpu.make_async_copy(fc1_hbm, fc1_buf, sem.at[2]); cpf.start()

        # conv1 (stride-4 folded into lanes -> 3 "super" taps) + ReLU
        y = _conv_relu(x_ref[...], 3, R1, w1[...], b1[...])          # (R1, 64)  f32
        # maxpool(3,2) + zero-halo re-frame for conv2 (pad=2), as one 0/1 matmul
        x1 = jnp.dot(s1[...], _max3(y), preferred_element_type=F32).astype(BF16)

        y = _conv_relu(x1, 5, R2, w2[...], b2[...])                  # (R2, 192)
        x2 = jnp.dot(s2[...], _max3(y), preferred_element_type=F32).astype(BF16)

        y = _conv_relu(x2, 3, R3, w3[...], b3[...])                  # (R3, 384)
        x3 = jnp.dot(s3[...], y, preferred_element_type=F32).astype(BF16)

        cp4.wait()
        y = _conv_relu(x3, 3, R3, w4_buf[...], b4[...])              # (R3, 256)
        x4 = jnp.dot(s3[...], y, preferred_element_type=F32).astype(BF16)

        cp5.wait()
        y = _conv_relu(x4, 3, R3, w5_buf[...], b5[...])              # (R3, 256)

        # maxpool(3,2) + AdaptiveAvgPool1d(6), output rows feature-major (j, b)
        yf = jnp.dot(sf[...], _max3(y), preferred_element_type=F32)  # (6*G, 256)

        # flatten: the channel-major permutation is folded into fc1w, so this is
        # a single lane concat of B-row blocks at 128-aligned lane offsets.
        flat = jnp.concatenate(
            [yf[j * G:j * G + B, :] for j in range(avg_out)], axis=1).astype(BF16)

        # embedding head (Dropout is eval-mode identity)
        cpf.wait()
        emb = jnp.dot(flat, fc1_buf[...], preferred_element_type=F32) + fc1b[...]
        emb = jnp.maximum(emb, 0.0).astype(BF16)
        emb = jnp.dot(emb, fc2w[...], preferred_element_type=F32) + fc2b[...]
        emb = jnp.maximum(emb, 0.0)

        # train_rule == 'late': concat squeezed aux, then classifier (kept f32)
        cat = jnp.concatenate([emb, aux_ref[...]], axis=1)           # (B, 36)
        o_ref[...] = jnp.dot(cat, clsw[...], preferred_element_type=F32) + clsb[...]

    return kernel


def alexnet1d_forward(params, x_ncw, aux):
    """params: prepared (fused-layout, bf16) params; x_ncw: (B, Cin, L); aux: (B, 4, 1)."""
    B, Cin, L = x_ncw.shape
    (L1, P1, L2, P2, L3, P3, F0, F1, F2, G) = _frames(B, L)

    # Fold conv1's stride-4 into the lane dim and stack samples along rows.
    Ltot = 4 * F0
    x = jnp.transpose(x_ncw, (0, 2, 1))                  # (B, L, Cin) channel-last
    x = jnp.pad(x, ((0, 0), (2, Ltot - L - 2), (0, 0)))
    x0 = x.reshape(B * F0, 4 * Cin).astype(BF16)

    aux2 = aux[..., 0].astype(F32)                       # (B, 4)

    s1, s2, s3, sf = _sel_matrices(B, L)                 # trace-time numpy constants
    kernel = _build_kernel(B, Cin, L)

    vmem = pl.BlockSpec(memory_space=pltpu.MemorySpace.VMEM)
    hbm = pl.BlockSpec(memory_space=pl.ANY)

    args = [
        x0, aux2,
        params["w1"], params["b1"], params["w2"], params["b2"],
        params["w3"], params["b3"], params["b4"], params["b5"],
        params["fc1b"], params["fc2w"], params["fc2b"],
        params["clsw"], params["clsb"],
        jnp.asarray(s1), jnp.asarray(s2), jnp.asarray(s3), jnp.asarray(sf),
        params["w4"], params["w5"], params["fc1w"],      # late weights: stay in HBM
    ]
    in_specs = [vmem] * 19 + [hbm] * 3

    return pl.pallas_call(
        kernel,
        out_shape=jax.ShapeDtypeStruct((B, 3), jnp.float32),
        in_specs=in_specs,
        out_specs=vmem,
        scratch_shapes=[
            pltpu.VMEM(params["w4"].shape, BF16),        # conv4 weight landing buffer
            pltpu.VMEM(params["w5"].shape, BF16),        # conv5 weight landing buffer
            pltpu.VMEM(params["fc1w"].shape, BF16),      # fc1  weight landing buffer
            pltpu.SemaphoreType.DMA((3,)),
        ],
        compiler_params=pltpu.CompilerParams(
            # ~0.7 MB resident bf16 weights + ~2.6 MB DMA landing buffers + small
            # activations; 20 MiB leaves headroom on every generation (v7x: 64 MiB
            # physical, so do not raise this toward the physical limit).
            vmem_limit_bytes=20 * 1024 * 1024,
        ),
    )(*args)


# ----------------------------------------------------------------------------
# Parameters: PyTorch-layout init + one-time conversion to fused (bf16) layout
# ----------------------------------------------------------------------------

def init_params(key, in_channel):
    """PyTorch layouts/init: conv (Cout, Cin, K) kaiming fan_out; linear (Fout, Fin) N(0, 0.01)."""
    ks = jax.random.split(key, 8)

    def conv_w(k, cout, cin, ksz):
        std = (2.0 / (cout * ksz)) ** 0.5        # kaiming_normal_, mode='fan_out'
        return std * jax.random.normal(k, (cout, cin, ksz), jnp.float32)

    def lin_w(k, fout, fin):
        return 0.01 * jax.random.normal(k, (fout, fin), jnp.float32)

    z = lambda n: jnp.zeros((n,), jnp.float32)
    return {
        "conv1.w": conv_w(ks[0], 64, in_channel, 11), "conv1.b": z(64),
        "conv2.w": conv_w(ks[1], 192, 64, 5),  "conv2.b": z(192),
        "conv3.w": conv_w(ks[2], 384, 192, 3), "conv3.b": z(384),
        "conv4.w": conv_w(ks[3], 256, 384, 3), "conv4.b": z(256),
        "conv5.w": conv_w(ks[4], 256, 256, 3), "conv5.b": z(256),
        "fc1.w": lin_w(ks[5], 512, 256 * 6),   "fc1.b": z(512),
        "fc2.w": lin_w(ks[6], 32, 512),        "fc2.b": z(32),
        "cls.w": lin_w(ks[7], 3, 36),          "cls.b": z(3),
    }


def prepare_params(p):
    """One-time conversion of PyTorch-layout params to the fused bf16 kernel layout."""
    def conv_fused(w):                           # (Cout, Cin, K) -> (K*Cin, Cout)
        cout, cin, k = w.shape
        return jnp.transpose(w, (2, 1, 0)).reshape(k * cin, cout)

    w1 = p["conv1.w"]
    cin = w1.shape[1]
    # conv1: stride-4 folded into lanes -> 12 tap positions per window; the 12th
    # position is never used, so its weight rows are zero.
    w1f = jnp.concatenate([conv_fused(w1), jnp.zeros((cin, 64), jnp.float32)], axis=0)

    # fc1: fold torch.flatten's channel-major index (c*6 + l) into the weight so
    # the kernel's channel-last flatten (l*256 + c) matches.
    fc1 = p["fc1.w"].T.reshape(256, 6, 512).transpose(1, 0, 2).reshape(6 * 256, 512)

    b2d = lambda b: b.reshape(1, -1).astype(jnp.float32)
    bf = lambda w: w.astype(BF16)
    return {
        "w1": bf(w1f),                          "b1": b2d(p["conv1.b"]),
        "w2": bf(conv_fused(p["conv2.w"])),     "b2": b2d(p["conv2.b"]),
        "w3": bf(conv_fused(p["conv3.w"])),     "b3": b2d(p["conv3.b"]),
        "w4": bf(conv_fused(p["conv4.w"])),     "b4": b2d(p["conv4.b"]),
        "w5": bf(conv_fused(p["conv5.w"])),     "b5": b2d(p["conv5.b"]),
        "fc1w": bf(fc1),                        "fc1b": b2d(p["fc1.b"]),
        "fc2w": bf(p["fc2.w"].T),               "fc2b": b2d(p["fc2.b"]),
        "clsw": p["cls.w"].T.astype(jnp.float32), "clsb": b2d(p["cls.b"]),
    }


if __name__ == "__main__":
    key = jax.random.PRNGKey(0)
    kx, ka, kp = jax.random.split(key, 3)

    B, Cin, L = 2, 4, 224          # L=224 -> feature length 6 (AlexNet-style path)
    x = jax.random.normal(kx, (B, Cin, L), jnp.float32)
    aux = jax.random.normal(ka, (B, 4, 1), jnp.float32)
    params = prepare_params(init_params(kp, Cin))

    fwd = jax.jit(alexnet1d_forward)
    out = fwd(params, x, aux)
    jax.block_until_ready(out)

    assert out.shape == (B, 3), out.shape
    assert bool(jnp.all(jnp.isfinite(out)))
    print("KERNEL_OK")
</pallas_src>

<mosaic_0001>
module attributes {stable_mosaic.version = 11 : i64} {
  func.func @kernel(%arg0: memref<114x16xbf16, #tpu.memory_space<vmem>>, %arg1: memref<2x4xf32, #tpu.memory_space<vmem>>, %arg2: memref<48x64xbf16, #tpu.memory_space<vmem>>, %arg3: memref<1x64xf32, #tpu.memory_space<vmem>>, %arg4: memref<320x192xbf16, #tpu.memory_space<vmem>>, %arg5: memref<1x192xf32, #tpu.memory_space<vmem>>, %arg6: memref<576x384xbf16, #tpu.memory_space<vmem>>, %arg7: memref<1x384xf32, #tpu.memory_space<vmem>>, %arg8: memref<1x256xf32, #tpu.memory_space<vmem>>, %arg9: memref<1x256xf32, #tpu.memory_space<vmem>>, %arg10: memref<1x512xf32, #tpu.memory_space<vmem>>, %arg11: memref<512x32xbf16, #tpu.memory_space<vmem>>, %arg12: memref<1x32xf32, #tpu.memory_space<vmem>>, %arg13: memref<36x3xf32, #tpu.memory_space<vmem>>, %arg14: memref<1x3xf32, #tpu.memory_space<vmem>>, %arg15: memref<62x110xf32, #tpu.memory_space<vmem>>, %arg16: memref<30x56xf32, #tpu.memory_space<vmem>>, %arg17: memref<30x28xf32, #tpu.memory_space<vmem>>, %arg18: memref<48x26xf32, #tpu.memory_space<vmem>>, %arg19: memref<1152x256xbf16, #tpu.memory_space<any>>, %arg20: memref<768x256xbf16, #tpu.memory_space<any>>, %arg21: memref<1536x512xbf16, #tpu.memory_space<any>>, %arg22: memref<2x3xf32, #tpu.memory_space<vmem>>, %arg23: memref<1152x256xbf16, #tpu.memory_space<vmem>>, %arg24: memref<768x256xbf16, #tpu.memory_space<vmem>>, %arg25: memref<1536x512xbf16, #tpu.memory_space<vmem>>, %arg26: memref<3x!tpu.dma_semaphore, #tpu.memory_space<semaphore_mem>>) attributes {dimension_semantics = [], scalar_prefetch = 0 : i64, scratch_operands = 4 : i64, tpu.core_type = #tpu.core_type<tc>} {
    %c0_i32 = arith.constant 0 : i32
    %0 = tpu.memref_slice %arg26[%c0_i32] : memref<3x!tpu.dma_semaphore, #tpu.memory_space<semaphore_mem>> -> memref<1x!tpu.dma_semaphore, #tpu.memory_space<semaphore_mem>>
    %1 = tpu.memref_squeeze %0 : memref<1x!tpu.dma_semaphore, #tpu.memory_space<semaphore_mem>> -> memref<!tpu.dma_semaphore, #tpu.memory_space<semaphore_mem>>
    tpu.enqueue_dma source(%arg19 : memref<1152x256xbf16, #tpu.memory_space<any>>) target(%arg23 : memref<1152x256xbf16, #tpu.memory_space<vmem>>) target_semaphore(%1 : memref<!tpu.dma_semaphore, #tpu.memory_space<semaphore_mem>>)
    %c1_i32 = arith.constant 1 : i32
    %2 = tpu.memref_slice %arg26[%c1_i32] : memref<3x!tpu.dma_semaphore, #tpu.memory_space<semaphore_mem>> -> memref<1x!tpu.dma_semaphore, #tpu.memory_space<semaphore_mem>>
    %3 = tpu.memref_squeeze %2 : memref<1x!tpu.dma_semaphore, #tpu.memory_space<semaphore_mem>> -> memref<!tpu.dma_semaphore, #tpu.memory_space<semaphore_mem>>
    tpu.enqueue_dma source(%arg20 : memref<768x256xbf16, #tpu.memory_space<any>>) target(%arg24 : memref<768x256xbf16, #tpu.memory_space<vmem>>) target_semaphore(%3 : memref<!tpu.dma_semaphore, #tpu.memory_space<semaphore_mem>>)
    %c2_i32 = arith.constant 2 : i32
    %4 = tpu.memref_slice %arg26[%c2_i32] : memref<3x!tpu.dma_semaphore, #tpu.memory_space<semaphore_mem>> -> memref<1x!tpu.dma_semaphore, #tpu.memory_space<semaphore_mem>>
    %5 = tpu.memref_squeeze %4 : memref<1x!tpu.dma_semaphore, #tpu.memory_space<semaphore_mem>> -> memref<!tpu.dma_semaphore, #tpu.memory_space<semaphore_mem>>
    tpu.enqueue_dma source(%arg21 : memref<1536x512xbf16, #tpu.memory_space<any>>) target(%arg25 : memref<1536x512xbf16, #tpu.memory_space<vmem>>) target_semaphore(%5 : memref<!tpu.dma_semaphore, #tpu.memory_space<semaphore_mem>>)
    %c0 = arith.constant 0 : index
    %c0_0 = arith.constant 0 : index
    %6 = vector.load %arg0[%c0, %c0_0] : memref<114x16xbf16, #tpu.memory_space<vmem>>, vector<114x16xbf16>
    %c0_1 = arith.constant 0 : index
    %c0_2 = arith.constant 0 : index
    %7 = vector.load %arg2[%c0_1, %c0_2] : memref<48x64xbf16, #tpu.memory_space<vmem>>, vector<48x64xbf16>
    %c0_3 = arith.constant 0 : index
    %c0_4 = arith.constant 0 : index
    %8 = vector.load %arg3[%c0_3, %c0_4] : memref<1x64xf32, #tpu.memory_space<vmem>>, vector<1x64xf32>
    %9 = vector.extract_strided_slice %6 {offsets = [0, 0], sizes = [112, 16], strides = [1, 1]} : vector<114x16xbf16> to vector<112x16xbf16>
    %10 = vector.extract_strided_slice %6 {offsets = [1, 0], sizes = [112, 16], strides = [1, 1]} : vector<114x16xbf16> to vector<112x16xbf16>
    %11 = vector.extract_strided_slice %6 {offsets = [2, 0], sizes = [112, 16], strides = [1, 1]} : vector<114x16xbf16> to vector<112x16xbf16>
    %12 = tpu.concatenate %9, %10, %11 in 1 : vector<112x16xbf16>, vector<112x16xbf16>, vector<112x16xbf16> -> vector<112x48xbf16>
    %cst = arith.constant dense<0.000000e+00> : vector<112x64xf32>
    %13 = tpu.matmul %12, %7, %cst {dimension_numbers = #tpu.dot_dimension_numbers<[1], [0], [0], [1], [0, 0, 1, 1], [], []>} : vector<112x48xbf16>, vector<48x64xbf16>, vector<112x64xf32> -> vector<112x64xf32>
    %14 = vector.broadcast %8 : vector<1x64xf32> to vector<112x64xf32>
    %15 = arith.addf %13, %14 : vector<112x64xf32>
    %cst_5 = arith.constant 0.000000e+00 : f32
    %16 = vector.broadcast %cst_5 : f32 to vector<112x64xf32>
    %17 = arith.maximumf %15, %16 : vector<112x64xf32>
    %c0_6 = arith.constant 0 : index
    %c0_7 = arith.constant 0 : index
    %18 = vector.load %arg15[%c0_6, %c0_7] : memref<62x110xf32, #tpu.memory_space<vmem>>, vector<62x110xf32>
    %19 = vector.extract_strided_slice %17 {offsets = [0, 0], sizes = [110, 64], strides = [1, 1]} : vector<112x64xf32> to vector<110x64xf32>
    %20 = vector.extract_strided_slice %17 {offsets = [1, 0], sizes = [110, 64], strides = [1, 1]} : vector<112x64xf32> to vector<110x64xf32>
    %21 = arith.maximumf %19, %20 : vector<110x64xf32>
    %22 = vector.extract_strided_slice %17 {offsets = [2, 0], sizes = [110, 64], strides = [1, 1]} : vector<112x64xf32> to vector<110x64xf32>
    %23 = arith.maximumf %21, %22 : vector<110x64xf32>
    %cst_8 = arith.constant dense<0.000000e+00> : vector<62x64xf32>
    %24 = tpu.matmul %18, %23, %cst_8 {dimension_numbers = #tpu.dot_dimension_numbers<[1], [0], [0], [1], [0, 0, 1, 1], [], []>} : vector<62x110xf32>, vector<110x64xf32>, vector<62x64xf32> -> vector<62x64xf32>
    %25 = arith.truncf %24 : vector<62x64xf32> to vector<62x64xbf16>
    %c0_9 = arith.constant 0 : index
    %c0_10 = arith.constant 0 : index
    %26 = vector.load %arg4[%c0_9, %c0_10] : memref<320x192xbf16, #tpu.memory_space<vmem>>, vector<320x192xbf16>
    %c0_11 = arith.constant 0 : index
    %c0_12 = arith.constant 0 : index
    %27 = vector.load %arg5[%c0_11, %c0_12] : memref<1x192xf32, #tpu.memory_space<vmem>>, vector<1x192xf32>
    %28 = vector.extract_strided_slice %25 {offsets = [0, 0], sizes = [58, 64], strides = [1, 1]} : vector<62x64xbf16> to vector<58x64xbf16>
    %29 = vector.extract_strided_slice %25 {offsets = [1, 0], sizes = [58, 64], strides = [1, 1]} : vector<62x64xbf16> to vector<58x64xbf16>
    %30 = vector.extract_strided_slice %25 {offsets = [2, 0], sizes = [58, 64], strides = [1, 1]} : vector<62x64xbf16> to vector<58x64xbf16>
    %31 = vector.extract_strided_slice %25 {offsets = [3, 0], sizes = [58, 64], strides = [1, 1]} : vector<62x64xbf16> to vector<58x64xbf16>
    %32 = vector.extract_strided_slice %25 {offsets = [4, 0], sizes = [58, 64], strides = [1, 1]} : vector<62x64xbf16> to vector<58x64xbf16>
    %33 = tpu.concatenate %28, %29, %30, %31, %32 in 1 : vector<58x64xbf16>, vector<58x64xbf16>, vector<58x64xbf16>, vector<58x64xbf16>, vector<58x64xbf16> -> vector<58x320xbf16>
    %cst_13 = arith.constant dense<0.000000e+00> : vector<58x192xf32>
    %34 = tpu.matmul %33, %26, %cst_13 {dimension_numbers = #tpu.dot_dimension_numbers<[1], [0], [0], [1], [0, 0, 1, 1], [], []>} : vector<58x320xbf16>, vector<320x192xbf16>, vector<58x192xf32> -> vector<58x192xf32>
    %35 = vector.broadcast %27 : vector<1x192xf32> to vector<58x192xf32>
    %36 = arith.addf %34, %35 : vector<58x192xf32>
    %cst_14 = arith.constant 0.000000e+00 : f32
    %37 = vector.broadcast %cst_14 : f32 to vector<58x192xf32>
    %38 = arith.maximumf %36, %37 : vector<58x192xf32>
    %c0_15 = arith.constant 0 : index
    %c0_16 = arith.constant 0 : index
    %39 = vector.load %arg16[%c0_15, %c0_16] : memref<30x56xf32, #tpu.memory_space<vmem>>, vector<30x56xf32>
    %40 = vector.extract_strided_slice %38 {offsets = [0, 0], sizes = [56, 192], strides = [1, 1]} : vector<58x192xf32> to vector<56x192xf32>
    %41 = vector.extract_strided_slice %38 {offsets = [1, 0], sizes = [56, 192], strides = [1, 1]} : vector<58x192xf32> to vector<56x192xf32>
    %42 = arith.maximumf %40, %41 : vector<56x192xf32>
    %43 = vector.extract_strided_slice %38 {offsets = [2, 0], sizes = [56, 192], strides = [1, 1]} : vector<58x192xf32> to vector<56x192xf32>
    %44 = arith.maximumf %42, %43 : vector<56x192xf32>
    %cst_17 = arith.constant dense<0.000000e+00> : vector<30x192xf32>
    %45 = tpu.matmul %39, %44, %cst_17 {dimension_numbers = #tpu.dot_dimension_numbers<[1], [0], [0], [1], [0, 0, 1, 1], [], []>} : vector<30x56xf32>, vector<56x192xf32>, vector<30x192xf32> -> vector<30x192xf32>
    %46 = arith.truncf %45 : vector<30x192xf32> to vector<30x192xbf16>
    %c0_18 = arith.constant 0 : index
    %c0_19 = arith.constant 0 : index
    %47 = vector.load %arg6[%c0_18, %c0_19] : memref<576x384xbf16, #tpu.memory_space<vmem>>, vector<576x384xbf16>
    %c0_20 = arith.constant 0 : index
    %c0_21 = arith.constant 0 : index
    %48 = vector.load %arg7[%c0_20, %c0_21] : memref<1x384xf32, #tpu.memory_space<vmem>>, vector<1x384xf32>
    %49 = vector.extract_strided_slice %46 {offsets = [0, 0], sizes = [28, 192], strides = [1, 1]} : vector<30x192xbf16> to vector<28x192xbf16>
    %50 = vector.extract_strided_slice %46 {offsets = [1, 0], sizes = [28, 192], strides = [1, 1]} : vector<30x192xbf16> to vector<28x192xbf16>
    %51 = vector.extract_strided_slice %46 {offsets = [2, 0], sizes = [28, 192], strides = [1, 1]} : vector<30x192xbf16> to vector<28x192xbf16>
    %52 = tpu.concatenate %49, %50, %51 in 1 : vector<28x192xbf16>, vector<28x192xbf16>, vector<28x192xbf16> -> vector<28x576xbf16>
    %cst_22 = arith.constant dense<0.000000e+00> : vector<28x384xf32>
    %53 = tpu.matmul %52, %47, %cst_22 {dimension_numbers = #tpu.dot_dimension_numbers<[1], [0], [0], [1], [0, 0, 1, 1], [], []>} : vector<28x576xbf16>, vector<576x384xbf16>, vector<28x384xf32> -> vector<28x384xf32>
    %54 = vector.broadcast %48 : vector<1x384xf32> to vector<28x384xf32>
    %55 = arith.addf %53, %54 : vector<28x384xf32>
    %cst_23 = arith.constant 0.000000e+00 : f32
    %56 = vector.broadcast %cst_23 : f32 to vector<28x384xf32>
    %57 = arith.maximumf %55, %56 : vector<28x384xf32>
    %c0_24 = arith.constant 0 : index
    %c0_25 = arith.constant 0 : index
    %58 = vector.load %arg17[%c0_24, %c0_25] : memref<30x28xf32, #tpu.memory_space<vmem>>, vector<30x28xf32>
    %cst_26 = arith.constant dense<0.000000e+00> : vector<30x384xf32>
    %59 = tpu.matmul %58, %57, %cst_26 {dimension_numbers = #tpu.dot_dimension_numbers<[1], [0], [0], [1], [0, 0, 1, 1], [], []>} : vector<30x28xf32>, vector<28x384xf32>, vector<30x384xf32> -> vector<30x384xf32>
    %60 = arith.truncf %59 : vector<30x384xf32> to vector<30x384xbf16>
    %c0_i32_27 = arith.constant 0 : i32
    %61 = tpu.memref_slice %arg26[%c0_i32_27] : memref<3x!tpu.dma_semaphore, #tpu.memory_space<semaphore_mem>> -> memref<1x!tpu.dma_semaphore, #tpu.memory_space<semaphore_mem>>
    %62 = tpu.memref_squeeze %61 : memref<1x!tpu.dma_semaphore, #tpu.memory_space<semaphore_mem>> -> memref<!tpu.dma_semaphore, #tpu.memory_space<semaphore_mem>>
    tpu.wait_dma2 semaphore(%62 : memref<!tpu.dma_semaphore, #tpu.memory_space<semaphore_mem>>) src(%arg19 : memref<1152x256xbf16, #tpu.memory_space<any>>) dst(%arg23 : memref<1152x256xbf16, #tpu.memory_space<vmem>>)
    %c0_28 = arith.constant 0 : index
    %c0_29 = arith.constant 0 : index
    %63 = vector.load %arg23[%c0_28, %c0_29] : memref<1152x256xbf16, #tpu.memory_space<vmem>>, vector<1152x256xbf16>
    %c0_30 = arith.constant 0 : index
    %c0_31 = arith.constant 0 : index
    %64 = vector.load %arg8[%c0_30, %c0_31] : memref<1x256xf32, #tpu.memory_space<vmem>>, vector<1x256xf32>
    %65 = vector.extract_strided_slice %60 {offsets = [0, 0], sizes = [28, 384], strides = [1, 1]} : vector<30x384xbf16> to vector<28x384xbf16>
    %66 = vector.extract_strided_slice %60 {offsets = [1, 0], sizes = [28, 384], strides = [1, 1]} : vector<30x384xbf16> to vector<28x384xbf16>
    %67 = vector.extract_strided_slice %60 {offsets = [2, 0], sizes = [28, 384], strides = [1, 1]} : vector<30x384xbf16> to vector<28x384xbf16>
    %68 = tpu.concatenate %65, %66, %67 in 1 : vector<28x384xbf16>, vector<28x384xbf16>, vector<28x384xbf16> -> vector<28x1152xbf16>
    %cst_32 = arith.constant dense<0.000000e+00> : vector<28x256xf32>
    %69 = tpu.matmul %68, %63, %cst_32 {dimension_numbers = #tpu.dot_dimension_numbers<[1], [0], [0], [1], [0, 0, 1, 1], [], []>} : vector<28x1152xbf16>, vector<1152x256xbf16>, vector<28x256xf32> -> vector<28x256xf32>
    %70 = vector.broadcast %64 : vector<1x256xf32> to vector<28x256xf32>
    %71 = arith.addf %69, %70 : vector<28x256xf32>
    %cst_33 = arith.constant 0.000000e+00 : f32
    %72 = vector.broadcast %cst_33 : f32 to vector<28x256xf32>
    %73 = arith.maximumf %71, %72 : vector<28x256xf32>
    %c0_34 = arith.constant 0 : index
    %c0_35 = arith.constant 0 : index
    %74 = vector.load %arg17[%c0_34, %c0_35] : memref<30x28xf32, #tpu.memory_space<vmem>>, vector<30x28xf32>
    %cst_36 = arith.constant dense<0.000000e+00> : vector<30x256xf32>
    %75 = tpu.matmul %74, %73, %cst_36 {dimension_numbers = #tpu.dot_dimension_numbers<[1], [0], [0], [1], [0, 0, 1, 1], [], []>} : vector<30x28xf32>, vector<28x256xf32>, vector<30x256xf32> -> vector<30x256xf32>
    %76 = arith.truncf %75 : vector<30x256xf32> to vector<30x256xbf16>
    %c1_i32_37 = arith.constant 1 : i32
    %77 = tpu.memref_slice %arg26[%c1_i32_37] : memref<3x!tpu.dma_semaphore, #tpu.memory_space<semaphore_mem>> -> memref<1x!tpu.dma_semaphore, #tpu.memory_space<semaphore_mem>>
    %78 = tpu.memref_squeeze %77 : memref<1x!tpu.dma_semaphore, #tpu.memory_space<semaphore_mem>> -> memref<!tpu.dma_semaphore, #tpu.memory_space<semaphore_mem>>
    tpu.wait_dma2 semaphore(%78 : memref<!tpu.dma_semaphore, #tpu.memory_space<semaphore_mem>>) src(%arg20 : memref<768x256xbf16, #tpu.memory_space<any>>) dst(%arg24 : memref<768x256xbf16, #tpu.memory_space<vmem>>)
    %c0_38 = arith.constant 0 : index
    %c0_39 = arith.constant 0 : index
    %79 = vector.load %arg24[%c0_38, %c0_39] : memref<768x256xbf16, #tpu.memory_space<vmem>>, vector<768x256xbf16>
    %c0_40 = arith.constant 0 : index
    %c0_41 = arith.constant 0 : index
    %80 = vector.load %arg9[%c0_40, %c0_41] : memref<1x256xf32, #tpu.memory_space<vmem>>, vector<1x256xf32>
    %81 = vector.extract_strided_slice %76 {offsets = [0, 0], sizes = [28, 256], strides = [1, 1]} : vector<30x256xbf16> to vector<28x256xbf16>
    %82 = vector.extract_strided_slice %76 {offsets = [1, 0], sizes = [28, 256], strides = [1, 1]} : vector<30x256xbf16> to vector<28x256xbf16>
    %83 = vector.extract_strided_slice %76 {offsets = [2, 0], sizes = [28, 256], strides = [1, 1]} : vector<30x256xbf16> to vector<28x256xbf16>
    %84 = tpu.concatenate %81, %82, %83 in 1 : vector<28x256xbf16>, vector<28x256xbf16>, vector<28x256xbf16> -> vector<28x768xbf16>
    %cst_42 = arith.constant dense<0.000000e+00> : vector<28x256xf32>
    %85 = tpu.matmul %84, %79, %cst_42 {dimension_numbers = #tpu.dot_dimension_numbers<[1], [0], [0], [1], [0, 0, 1, 1], [], []>} : vector<28x768xbf16>, vector<768x256xbf16>, vector<28x256xf32> -> vector<28x256xf32>
    %86 = vector.broadcast %80 : vector<1x256xf32> to vector<28x256xf32>
    %87 = arith.addf %85, %86 : vector<28x256xf32>
    %cst_43 = arith.constant 0.000000e+00 : f32
    %88 = vector.broadcast %cst_43 : f32 to vector<28x256xf32>
    %89 = arith.maximumf %87, %88 : vector<28x256xf32>
    %c0_44 = arith.constant 0 : index
    %c0_45 = arith.constant 0 : index
    %90 = vector.load %arg18[%c0_44, %c0_45] : memref<48x26xf32, #tpu.memory_space<vmem>>, vector<48x26xf32>
    %91 = vector.extract_strided_slice %89 {offsets = [0, 0], sizes = [26, 256], strides = [1, 1]} : vector<28x256xf32> to vector<26x256xf32>
    %92 = vector.extract_strided_slice %89 {offsets = [1, 0], sizes = [26, 256], strides = [1, 1]} : vector<28x256xf32> to vector<26x256xf32>
    %93 = arith.maximumf %91, %92 : vector<26x256xf32>
    %94 = vector.extract_strided_slice %89 {offsets = [2, 0], sizes = [26, 256], strides = [1, 1]} : vector<28x256xf32> to vector<26x256xf32>
    %95 = arith.maximumf %93, %94 : vector<26x256xf32>
    %cst_46 = arith.constant dense<0.000000e+00> : vector<48x256xf32>
    %96 = tpu.matmul %90, %95, %cst_46 {dimension_numbers = #tpu.dot_dimension_numbers<[1], [0], [0], [1], [0, 0, 1, 1], [], []>} : vector<48x26xf32>, vector<26x256xf32>, vector<48x256xf32> -> vector<48x256xf32>
    %97 = vector.extract_strided_slice %96 {offsets = [0, 0], sizes = [2, 256], strides = [1, 1]} : vector<48x256xf32> to vector<2x256xf32>
    %98 = vector.extract_strided_slice %96 {offsets = [8, 0], sizes = [2, 256], strides = [1, 1]} : vector<48x256xf32> to vector<2x256xf32>
    %99 = vector.extract_strided_slice %96 {offsets = [16, 0], sizes = [2, 256], strides = [1, 1]} : vector<48x256xf32> to vector<2x256xf32>
    %100 = vector.extract_strided_slice %96 {offsets = [24, 0], sizes = [2, 256], strides = [1, 1]} : vector<48x256xf32> to vector<2x256xf32>
    %101 = vector.extract_strided_slice %96 {offsets = [32, 0], sizes = [2, 256], strides = [1, 1]} : vector<48x256xf32> to vector<2x256xf32>
    %102 = vector.extract_strided_slice %96 {offsets = [40, 0], sizes = [2, 256], strides = [1, 1]} : vector<48x256xf32> to vector<2x256xf32>
    %103 = tpu.concatenate %97, %98, %99, %100, %101, %102 in 1 : vector<2x256xf32>, vector<2x256xf32>, vector<2x256xf32>, vector<2x256xf32>, vector<2x256xf32>, vector<2x256xf32> -> vector<2x1536xf32>
    %104 = arith.truncf %103 : vector<2x1536xf32> to vector<2x1536xbf16>
    %c2_i32_47 = arith.constant 2 : i32
    %105 = tpu.memref_slice %arg26[%c2_i32_47] : memref<3x!tpu.dma_semaphore, #tpu.memory_space<semaphore_mem>> -> memref<1x!tpu.dma_semaphore, #tpu.memory_space<semaphore_mem>>
    %106 = tpu.memref_squeeze %105 : memref<1x!tpu.dma_semaphore, #tpu.memory_space<semaphore_mem>> -> memref<!tpu.dma_semaphore, #tpu.memory_space<semaphore_mem>>
    tpu.wait_dma2 semaphore(%106 : memref<!tpu.dma_semaphore, #tpu.memory_space<semaphore_mem>>) src(%arg21 : memref<1536x512xbf16, #tpu.memory_space<any>>) dst(%arg25 : memref<1536x512xbf16, #tpu.memory_space<vmem>>)
    %c0_48 = arith.constant 0 : index
    %c0_49 = arith.constant 0 : index
    %107 = vector.load %arg25[%c0_48, %c0_49] : memref<1536x512xbf16, #tpu.memory_space<vmem>>, vector<1536x512xbf16>
    %cst_50 = arith.constant dense<0.000000e+00> : vector<2x512xf32>
    %108 = tpu.matmul %104, %107, %cst_50 {dimension_numbers = #tpu.dot_dimension_numbers<[1], [0], [0], [1], [0, 0, 1, 1], [], []>} : vector<2x1536xbf16>, vector<1536x512xbf16>, vector<2x512xf32> -> vector<2x512xf32>
    %c0_51 = arith.constant 0 : index
    %c0_52 = arith.constant 0 : index
    %109 = vector.load %arg10[%c0_51, %c0_52] : memref<1x512xf32, #tpu.memory_space<vmem>>, vector<1x512xf32>
    %110 = vector.broadcast %109 : vector<1x512xf32> to vector<2x512xf32>
    %111 = arith.addf %108, %110 : vector<2x512xf32>
    %cst_53 = arith.constant 0.000000e+00 : f32
    %112 = vector.broadcast %cst_53 : f32 to vector<2x512xf32>
    %113 = arith.maximumf %111, %112 : vector<2x512xf32>
    %114 = arith.truncf %113 : vector<2x512xf32> to vector<2x512xbf16>
    %c0_54 = arith.constant 0 : index
    %c0_55 = arith.constant 0 : index
    %115 = vector.load %arg11[%c0_54, %c0_55] : memref<512x32xbf16, #tpu.memory_space<vmem>>, vector<512x32xbf16>
    %cst_56 = arith.constant dense<0.000000e+00> : vector<2x32xf32>
    %116 = tpu.matmul %114, %115, %cst_56 {dimension_numbers = #tpu.dot_dimension_numbers<[1], [0], [0], [1], [0, 0, 1, 1], [], []>} : vector<2x512xbf16>, vector<512x32xbf16>, vector<2x32xf32> -> vector<2x32xf32>
    %c0_57 = arith.constant 0 : index
    %c0_58 = arith.constant 0 : index
    %117 = vector.load %arg12[%c0_57, %c0_58] : memref<1x32xf32, #tpu.memory_space<vmem>>, vector<1x32xf32>
    %118 = vector.broadcast %117 : vector<1x32xf32> to vector<2x32xf32>
    %119 = arith.addf %116, %118 : vector<2x32xf32>
    %cst_59 = arith.constant 0.000000e+00 : f32
    %120 = vector.broadcast %cst_59 : f32 to vector<2x32xf32>
    %121 = arith.maximumf %119, %120 : vector<2x32xf32>
    %c0_60 = arith.constant 0 : index
    %c0_61 = arith.constant 0 : index
    %122 = vector.load %arg1[%c0_60, %c0_61] : memref<2x4xf32, #tpu.memory_space<vmem>>, vector<2x4xf32>
    %123 = tpu.concatenate %121, %122 in 1 : vector<2x32xf32>, vector<2x4xf32> -> vector<2x36xf32>
    %c0_62 = arith.constant 0 : index
    %c0_63 = arith.constant 0 : index
    %124 = vector.load %arg13[%c0_62, %c0_63] : memref<36x3xf32, #tpu.memory_space<vmem>>, vector<36x3xf32>
    %cst_64 = arith.constant dense<0.000000e+00> : vector<2x3xf32>
    %125 = tpu.matmul %123, %124, %cst_64 {dimension_numbers = #tpu.dot_dimension_numbers<[1], [0], [0], [1], [0, 0, 1, 1], [], []>} : vector<2x36xf32>, vector<36x3xf32>, vector<2x3xf32> -> vector<2x3xf32>
    %c0_65 = arith.constant 0 : index
    %c0_66 = arith.constant 0 : index
    %126 = vector.load %arg14[%c0_65, %c0_66] : memref<1x3xf32, #tpu.memory_space<vmem>>, vector<1x3xf32>
    %127 = vector.broadcast %126 : vector<1x3xf32> to vector<2x3xf32>
    %128 = arith.addf %125, %127 : vector<2x3xf32>
    %c0_67 = arith.constant 0 : index
    %c0_68 = arith.constant 0 : index
    %129 = vector.load %arg22[%c0_67, %c0_68] : memref<2x3xf32, #tpu.memory_space<vmem>>, vector<2x3xf32>
    tpu.vector_store %arg22[%c0_67, %c0_68], %128 {strides = array<i32>} : memref<2x3xf32, #tpu.memory_space<vmem>>, vector<2x3xf32>,
    return
  }
}

</mosaic_0001>

<bundles_post_ra>
// kernel: alexnet1d_forward.1
= control target key start
LH: loop header
LB: loop body
LE: loop exit
PB: predicated region body
PF: predicated region fallthrough
CT: control target
= control target key end

     0   :  { %s12584_s0 = inlined_call_operand.vmem [shape: bf16[114,16], index: 0, kind: input, shape index: {}]   ;;  %s12585_s1 = inlined_call_operand.hbm [shape: f32[2,4], index: 1, kind: input, shape index: {}]   ;;  %s12586_s2 = inlined_call_operand.hbm [shape: bf16[48,64], index: 2, kind: input, shape index: {}]   ;;  %s12587_s3 = inlined_call_operand.hbm [shape: f32[1,64], index: 3, kind: input, shape index: {}]   ;;  %s12588_s4 = inlined_call_operand.vmem [shape: bf16[320,192], index: 4, kind: input, shape index: {}]   ;;  %s12589_s5 = inlined_call_operand.hbm [shape: f32[1,192], index: 5, kind: input, shape index: {}]   ;;  %s12590_s6 = inlined_call_operand.hbm [shape: bf16[576,384], index: 6, kind: input, shape index: {}]   ;;  %s12591_s7 = inlined_call_operand.hbm [shape: f32[1,384], index: 7, kind: input, shape index: {}]   ;;  %s12592_s8 = inlined_call_operand.hbm [shape: f32[1,256], index: 8, kind: input, shape index: {}]   ;;  %s12593_s9 = inlined_call_operand.hbm [shape: f32[1,256], index: 9, kind: input, shape index: {}]   ;;  %s12594_s10 = inlined_call_operand.hbm [shape: f32[1,512], index: 10, kind: input, shape index: {}]   ;;  %s12595_s11 = inlined_call_operand.vmem [shape: bf16[512,32], index: 11, kind: input, shape index: {}]   ;;  %s12596_s12 = inlined_call_operand.hbm [shape: f32[1,32], index: 12, kind: input, shape index: {}]   ;;  %s12597_s13 = inlined_call_operand.vmem [shape: f32[36,3], index: 13, kind: input, shape index: {}]   ;;  %s12598_s14 = inlined_call_operand.hbm [shape: f32[1,3], index: 14, kind: input, shape index: {}]   ;;  %s12599_s15 = inlined_call_operand.hbm [shape: f32[62,110], index: 15, kind: input, shape index: {}]   ;;  %s12600_s16 = inlined_call_operand.hbm [shape: f32[30,56], index: 16, kind: input, shape index: {}]   ;;  %s12601_s17 = inlined_call_operand.hbm [shape: f32[30,28], index: 17, kind: input, shape index: {}]   ;;  %s12602_s18 = inlined_call_operand.hbm [shape: f32[48,26], index: 18, kind: input, shape index: {}]   ;;  %s12603_s19 = inlined_call_operand.hbm [shape: bf16[1152,256], index: 19, kind: input, shape index: {}]   ;;  %s12604_s20 = inlined_call_operand.hbm [shape: bf16[768,256], index: 20, kind: input, shape index: {}]   ;;  %s12605_s21 = inlined_call_operand.hbm [shape: bf16[1536,512], index: 21, kind: input, shape index: {}]   ;;  %s12606_s22 = inlined_call_operand.hbm [shape: f32[2,3], index: 22, kind: output, shape index: {}]  }
   0x1   :  { %12609 = sst [smem:[#allocation51_spill]] %s12584_s0 }
   0x2   :  { %12610 = sst [smem:[#allocation52_spill]] %s12585_s1 }
   0x3   :  { %12611 = sst [smem:[#allocation53_spill]] %s12586_s2 }
   0x4   :  { %12612 = sst [smem:[#allocation54_spill]] %s12587_s3 }
   0x5   :  { %12613 = sst [smem:[#allocation55_spill]] %s12588_s4 }
   0x6   :  { %12614 = sst [smem:[#allocation56_spill]] %s12589_s5 }
   0x7   :  { %12615 = sst [smem:[#allocation57_spill]] %s12590_s6 }
   0x8   :  { %27 = vsyncpa [#allocation7], 0 }
   0x9   :  { %28 = vsyncpa [#allocation10], 0 }
   0xa   :  { %29 = vsyncpa [#allocation13], 0 }
   0xb   :  { %30 = vsyncpa [#allocation16], 0 }
   0xc   :  { %31 = vsyncpa [#allocation19], 0 }
   0xd   :  { %32 = vsyncpa [#allocation22], 0 }
   0xe   :  { %33 = vsyncpa [#allocation25], 0 }
   0xf   :  { %34 = vsyncpa [#allocation28], 0 }
  0x10   :  { %35 = vsyncpa [#allocation8], 0  ;;  %s11434_s3 = smov [#allocation9]  }
  0x11   :  { %s53_s28 = sshll.u32 %s11434_s3, 4  ;;  %s54_s28 = int_to_ptr.vmem [resolvable:$true] %s53_s28 }
  0x12   :  { %s11038_s29 = scalar_lea.vmem %s54_s28, 384  ;;  %p11043_p1 = scmp.lt.s32.totalorder %s54_s28, %s54_s28 }
  0x13   :  { %p11039_p0 = scmp.ne.s32.totalorder %s54_s28, %s11038_s29  ;;  %p11044_p2 = scmp.lt.s32.totalorder %s11038_s29, %s11038_s29 }
  0x15   :  { %p11045_p3 = por %p11044_p2, %p11043_p1 }
  0x17   :  { %p11046_p4 = pnand %p11045_p3, %p11039_p0 }
  0x19   :  { %11049 = shalt.err (!%p11046_p4)
}
  0x1a   :  { %s11435_s30 = smov 64   ;;  %s11436_s4 = smov 4  }
  0x1b   :  { %s12616_s1 = sld [smem:[#allocation53_spill]]  ;;  %s11437_s5 = smov [#allocation12]  }
  0x1c   :  { %s78_s24 = sshll.u32 %s11437_s5, 4  ;;  %s11438_s6 = smov [#allocation15]   ;;  %s79_s24 = int_to_ptr.vmem [resolvable:$true] %s78_s24 }
  0x1d   :  { %s100_s25 = sshll.u32 %s11438_s6, 4  ;;  %s11058_s26 = scalar_lea.vmem %s79_s24, 32  ;;  %s101_s25 = int_to_ptr.vmem [resolvable:$true] %s100_s25 }
  0x1e   :  { %p11059_p5 = scmp.ne.s32.totalorder %s79_s24, %s11058_s26  ;;  %p11063_p6 = scmp.lt.s32.totalorder %s79_s24, %s79_s24 }
  0x1f   :  { %p11064_p7 = scmp.lt.s32.totalorder %s11058_s26, %s11058_s26 }
  0x21   :  { %59 = dma.hbm_to_vmem [thread:$0]  %s12616_s1, 384, %s54_s28, [#allocation10], %s11435_s30, %s11435_s30, %s11436_s4  }
  0x22   :  { %p11065_p8 = por %p11064_p7, %p11063_p6 }
  0x24   :  { %p11066_p9 = pnand %p11065_p8, %p11059_p5 }
  0x26   :  { %11069 = shalt.err (!%p11066_p9)
}
  0x27   :  { %s12617_s3 = sld [smem:[#allocation56_spill]]  ;;  %s11078_s29 = scalar_lea.vmem %s101_s25, 48 }
  0x28   :  { %p11079_p10 = scmp.ne.s32.totalorder %s101_s25, %s11078_s29  ;;  %s11082_s28 = scalar_lea.vmem %s101_s25, 64 }
  0x29   :  { %p11083_p11 = scmp.lt.s32.totalorder %s101_s25, %s101_s25  ;;  %p11084_p12 = scmp.lt.s32.totalorder %s11082_s28, %s11078_s29 }
  0x2b   :  { %p11085_p13 = por %p11084_p12, %p11083_p11 }
  0x2d   :  { %81 = dma.hbm_to_vmem [thread:$0]  %s12617_s3, 32, %s79_s24, [#allocation13]  }
  0x2e   :  { %p11086_p0 = pnand %p11085_p13, %p11079_p10 }
  0x30   :  { %11089 = shalt.err (!%p11086_p0)
}
  0x31   :  { %103 = dma.hbm_to_vmem [thread:$0]  %s12591_s7, 48, %s101_s25, [#allocation16]  }
  0x32   :  { %s11439_s23 = smov [#allocation18]   ;;  %s11440_s5 = smov [#allocation21]  }
  0x33   :  { %s120_s1 = sshll.u32 %s11439_s23, 4  ;;  %s142_s6 = sshll.u32 %s11440_s5, 4  ;;  %s121_s1 = int_to_ptr.vmem [resolvable:$true] %s120_s1  ;;  %s143_s6 = int_to_ptr.vmem [resolvable:$true] %s142_s6 }
  0x34   :  { %s11098_s26 = scalar_lea.vmem %s121_s1, 32  ;;  %p11103_p2 = scmp.lt.s32.totalorder %s121_s1, %s121_s1 }
  0x35   :  { %p11099_p1 = scmp.ne.s32.totalorder %s121_s1, %s11098_s26  ;;  %p11104_p3 = scmp.lt.s32.totalorder %s11098_s26, %s11098_s26 }
  0x37   :  { %p11105_p4 = por %p11104_p3, %p11103_p2 }
  0x39   :  { %p11106_p5 = pnand %p11105_p4, %p11099_p1 }
  0x3b   :  { %11109 = shalt.err (!%p11106_p5)
}
  0x3c   :  { %123 = dma.hbm_to_vmem [thread:$0]  %s12593_s9, 32, %s121_s1, [#allocation19]  }
  0x3d   :  { %s11118_s27 = scalar_lea.vmem %s143_s6, 16  ;;  %s11122_s7 = scalar_lea.vmem %s143_s6, 32 }
  0x3e   :  { %p11119_p6 = scmp.ne.s32.totalorder %s143_s6, %s11118_s27  ;;  %p11123_p7 = scmp.lt.s32.totalorder %s143_s6, %s143_s6 }
  0x3f   :  { %p11124_p8 = scmp.lt.s32.totalorder %s11122_s7, %s11118_s27 }
  0x41   :  { %p11125_p9 = por %p11124_p8, %p11123_p7 }
  0x43   :  { %p11126_p10 = pnand %p11125_p9, %p11119_p6 }
  0x45   :  { %11129 = shalt.err (!%p11126_p10)
}
  0x46   :  { %145 = dma.hbm_to_vmem [thread:$0]  %s12596_s12, 16, %s143_s6, [#allocation22]  }
  0x47   :  { %s11441_s29 = smov [#allocation24]  }
  0x48   :  { %s163_s28 = sshll.u32 %s11441_s29, 4  ;;  %s164_s28 = int_to_ptr.vmem [resolvable:$true] %s163_s28 }
  0x49   :  { %s11138_s4 = scalar_lea.vmem %s164_s28, 1024  ;;  %p11143_p12 = scmp.lt.s32.totalorder %s164_s28, %s164_s28 }
  0x4a   :  { %p11139_p11 = scmp.ne.s32.totalorder %s164_s28, %s11138_s4  ;;  %p11144_p13 = scmp.lt.s32.totalorder %s11138_s4, %s11138_s4 }
  0x4c   :  { %p11145_p0 = por %p11144_p13, %p11143_p12 }
  0x4e   :  { %p11146_p1 = pnand %p11145_p0, %p11139_p11 }
  0x50   :  { %11149 = shalt.err (!%p11146_p1)
}
  0x51   :  { %s11442_s9 = smov 128   ;;  %s11443_s0 = smov 8  }
  0x52   :  { %169 = dma.hbm_to_vmem [thread:$0]  %s12599_s15, 1024, %s164_s28, [#allocation25], %s11442_s9, %s11442_s9, %s11443_s0  }
  0x53   :  { %s11444_s12 = smov [#allocation27]   ;;  %s11445_s6 = smov [#allocation6]  }
  0x54   :  { %s187_s5 = sshll.u32 %s11444_s12, 4  ;;  %s44_s26 = sshll.u32 %s11445_s6, 4  ;;  %s188_s5 = int_to_ptr.vmem [resolvable:$true] %s187_s5  ;;  %s45_s26 = int_to_ptr.vmem [resolvable:$true] %s44_s26 }
  0x55   :  { %s11158_s24 = scalar_lea.vmem %s188_s5, 512  ;;  %p11163_p3 = scmp.lt.s32.totalorder %s188_s5, %s188_s5 }
  0x56   :  { %p11159_p2 = scmp.ne.s32.totalorder %s188_s5, %s11158_s24  ;;  %p11164_p4 = scmp.lt.s32.totalorder %s11158_s24, %s11158_s24 }
  0x58   :  { %p11165_p5 = por %p11164_p4, %p11163_p3 }
  0x5a   :  { %p11166_p6 = pnand %p11165_p5, %p11159_p2 }
  0x5c   :  { %11169 = shalt.err (!%p11166_p6)
}
  0x5d   :  { %193 = dma.hbm_to_vmem [thread:$0]  %s12601_s17, 512, %s188_s5, [#allocation28], %s11442_s9, %s11442_s9, %s11443_s0  }
  0x5e   :  { %s11178_s15 = scalar_lea.vmem %s45_s26, 32  ;;  %p11183_p8 = scmp.lt.s32.totalorder %s45_s26, %s45_s26 }
  0x5f   :  { %p11179_p7 = scmp.ne.s32.totalorder %s45_s26, %s11178_s15  ;;  %p11184_p9 = scmp.lt.s32.totalorder %s11178_s15, %s11178_s15 }
  0x61   :  { %p11185_p10 = por %p11184_p9, %p11183_p8 }
  0x63   :  { %p11186_p11 = pnand %p11185_p10, %p11179_p7 }
  0x65   :  { %11189 = shalt.err (!%p11186_p11)
}
  0x66   :  { %s12618_s3 = sld [smem:[#allocation52_spill]]  ;;  %s11446_s29 = smov [#allocation11]  }
  0x67   :  { %s66_s28 = sshll.u32 %s11446_s29, 4  ;;  %s11447_s4 = smov [#allocation14]   ;;  %s67_s28 = int_to_ptr.vmem [resolvable:$true] %s66_s28 }
  0x68   :  { %s87_s23 = sshll.u32 %s11447_s4, 4  ;;  %s11198_s1 = scalar_lea.vmem %s67_s28, 16  ;;  %s88_s23 = int_to_ptr.vmem [resolvable:$true] %s87_s23 }
  0x69   :  { %p11199_p12 = scmp.ne.s32.totalorder %s67_s28, %s11198_s1  ;;  %s11202_s17 = scalar_lea.vmem %s67_s28, 32 }
  0x6a   :  { %p11203_p13 = scmp.lt.s32.totalorder %s67_s28, %s67_s28  ;;  %p11204_p0 = scmp.lt.s32.totalorder %s11202_s17, %s11198_s1 }
  0x6c   :  { %47 = dma.hbm_to_vmem [thread:$0]  %s12618_s3, 32, %s45_s26, [#allocation7]  }
  0x6d   :  { %p11205_p1 = por %p11204_p0, %p11203_p13 }
  0x6f   :  { %p11206_p2 = pnand %p11205_p1, %p11199_p12 }
  0x71   :  { %11209 = shalt.err (!%p11206_p2)
}
  0x72   :  { %s12619_s6 = sld [smem:[#allocation54_spill]]  ;;  %s11218_s24 = scalar_lea.vmem %s88_s23, 13824 }
  0x73   :  { %p11219_p3 = scmp.ne.s32.totalorder %s88_s23, %s11218_s24  ;;  %p11223_p4 = scmp.lt.s32.totalorder %s88_s23, %s88_s23 }
  0x74   :  { %p11224_p5 = scmp.lt.s32.totalorder %s11218_s24, %s11218_s24 }
  0x76   :  { %p11225_p6 = por %p11224_p5, %p11223_p4 }
  0x78   :  { %69 = dma.hbm_to_vmem [thread:$0]  %s12619_s6, 16, %s67_s28, [#allocation10]  }
  0x79   :  { %p11226_p7 = pnand %p11225_p6, %p11219_p3 }
  0x7b   :  { %11229 = shalt.err (!%p11226_p7)
}
  0x7c   :  { %s11448_s26 = smov 192   ;;  %s11449_s2 = smov 12  }
  0x7d   :  { %s12620_s7 = sld [smem:[#allocation57_spill]]  ;;  %s11450_s25 = smov [#allocation17]  }
  0x7e   :  { %s110_s3 = sshll.u32 %s11450_s25, 4  ;;  %s11451_s29 = smov [#allocation20]   ;;  %s111_s3 = int_to_ptr.vmem [resolvable:$true] %s110_s3 }
  0x7f   :  { %s130_s4 = sshll.u32 %s11451_s29, 4  ;;  %s11238_s28 = scalar_lea.vmem %s111_s3, 32  ;;  %s131_s4 = int_to_ptr.vmem [resolvable:$true] %s130_s4 }
  0x80   :  { %p11239_p8 = scmp.ne.s32.totalorder %s111_s3, %s11238_s28  ;;  %p11243_p9 = scmp.lt.s32.totalorder %s111_s3, %s111_s3 }
  0x81   :  { %p11244_p10 = scmp.lt.s32.totalorder %s11238_s28, %s11238_s28 }
  0x83   :  { %93 = dma.hbm_to_vmem [thread:$0]  %s12620_s7, 13824, %s88_s23, [#allocation13], %s11448_s26, %s11448_s26, %s11449_s2  }
  0x84   :  { %p11245_p11 = por %p11244_p10, %p11243_p9 }
  0x86   :  { %p11246_p12 = pnand %p11245_p11, %p11239_p8 }
  0x88   :  { %11249 = shalt.err (!%p11246_p12)
}
  0x89   :  { %113 = dma.hbm_to_vmem [thread:$0]  %s12592_s8, 32, %s111_s3, [#allocation16]  }
  0x8a   :  { %s11258_s12 = scalar_lea.vmem %s131_s4, 64  ;;  %p11263_p0 = scmp.lt.s32.totalorder %s131_s4, %s131_s4 }
  0x8b   :  { %p11259_p13 = scmp.ne.s32.totalorder %s131_s4, %s11258_s12  ;;  %p11264_p1 = scmp.lt.s32.totalorder %s11258_s12, %s11258_s12 }
  0x8d   :  { %p11265_p2 = por %p11264_p1, %p11263_p0 }
  0x8f   :  { %p11266_p3 = pnand %p11265_p2, %p11259_p13 }
  0x91   :  { %11269 = shalt.err (!%p11266_p3)
}
  0x92   :  { %133 = dma.hbm_to_vmem [thread:$0]  %s12594_s10, 64, %s131_s4, [#allocation19]  }
  0x93   :  { %s11452_s6 = smov [#allocation23]   ;;  %s11453_s26 = smov [#allocation26]  }
  0x94   :  { %s154_s24 = sshll.u32 %s11452_s6, 4  ;;  %s175_s2 = sshll.u32 %s11453_s26, 4  ;;  %s155_s24 = int_to_ptr.vmem [resolvable:$true] %s154_s24  ;;  %s176_s2 = int_to_ptr.vmem [resolvable:$true] %s175_s2 }
  0x95   :  { %s11278_s27 = scalar_lea.vmem %s155_s24, 16  ;;  %s11282_s8 = scalar_lea.vmem %s155_s24, 32 }
  0x96   :  { %p11279_p4 = scmp.ne.s32.totalorder %s155_s24, %s11278_s27  ;;  %p11283_p5 = scmp.lt.s32.totalorder %s155_s24, %s155_s24 }
  0x97   :  { %p11284_p6 = scmp.lt.s32.totalorder %s11282_s8, %s11278_s27 }
  0x99   :  { %p11285_p7 = por %p11284_p6, %p11283_p5 }
  0x9b   :  { %p11286_p8 = pnand %p11285_p7, %p11279_p4 }
  0x9d   :  { %11289 = shalt.err (!%p11286_p8)
}
  0x9e   :  { %157 = dma.hbm_to_vmem [thread:$0]  %s12598_s14, 16, %s155_s24, [#allocation22]  }
  0x9f   :  { %s11298_s25 = scalar_lea.vmem %s176_s2, 512  ;;  %p11303_p10 = scmp.lt.s32.totalorder %s176_s2, %s176_s2 }
  0xa0   :  { %p11299_p9 = scmp.ne.s32.totalorder %s176_s2, %s11298_s25  ;;  %p11304_p11 = scmp.lt.s32.totalorder %s11298_s25, %s11298_s25 }
  0xa2   :  { %p11305_p12 = por %p11304_p11, %p11303_p10 }
  0xa4   :  { %p11306_p13 = pnand %p11305_p12, %p11299_p9 }
  0xa6   :  { %11309 = shalt.err (!%p11306_p13)
}
  0xa7   :  { %181 = dma.hbm_to_vmem [thread:$0]  %s12600_s16, 512, %s176_s2, [#allocation25], %s11442_s9, %s11442_s9, %s11443_s0  }
  0xa8   :  { %s11454_s29 = smov [#allocation29]  }
  0xa9   :  { %s199_s4 = sshll.u32 %s11454_s29, 4  ;;  %s200_s4 = int_to_ptr.vmem [resolvable:$true] %s199_s4 }
  0xaa   :  { %s11318_s28 = scalar_lea.vmem %s200_s4, 768  ;;  %p11323_p1 = scmp.lt.s32.totalorder %s200_s4, %s200_s4 }
  0xab   :  { %p11319_p0 = scmp.ne.s32.totalorder %s200_s4, %s11318_s28  ;;  %p11324_p2 = scmp.lt.s32.totalorder %s11318_s28, %s11318_s28 }
  0xad   :  { %p11325_p3 = por %p11324_p2, %p11323_p1 }
  0xaf   :  { %p11326_p4 = pnand %p11325_p3, %p11319_p0 }
  0xb1   :  { %11329 = shalt.err (!%p11326_p4)
}
  0xb2   :  { %205 = dma.hbm_to_vmem [thread:$0]  %s12602_s18, 768, %s200_s4, [#allocation28], %s11442_s9, %s11442_s9, %s11443_s0  }
  0xb3   :  { %11410 = dma.done.wait [#allocation7], 32  }
  0xb4   :  { %11411 = vsyncadd [#allocation7], 4294967264 }
  0xb5   :  { %11412 = dma.done.wait [#allocation10], 400  }
  0xb6   :  { %11413 = vsyncadd [#allocation10], 4294966896 }
  0xb7   :  { %11414 = dma.done.wait [#allocation13], 13856  }
  0xb8   :  { %11415 = vsyncadd [#allocation13], 4294953440 }
  0xb9   :  { %11416 = dma.done.wait [#allocation16], 80  }
  0xba   :  { %11417 = vsyncadd [#allocation16], 4294967216 }
  0xbb   :  { %11418 = dma.done.wait [#allocation19], 96  }
  0xbc   :  { %11419 = vsyncadd [#allocation19], 4294967200 }
  0xbd   :  { %11420 = dma.done.wait [#allocation22], 32  }
  0xbe   :  { %11421 = vsyncadd [#allocation22], 4294967264 }
  0xbf   :  { %11422 = dma.done.wait [#allocation25], 1536  }
  0xc0   :  { %11423 = vsyncadd [#allocation25], 4294965760 }
  0xc1   :  { %11424 = dma.done.wait [#allocation28], 1280  }
  0xc2   :  { %11425 = vsyncadd [#allocation28], 4294966016  ;;  %v11455_v0 = vmov 0.0   ;;  %vm347_vm0 = vsmask.f32 7424  ;;  %s12621_s9 = sld [smem:[#allocation51_spill]] }
  0xc3   :  { %9704 = vmatprep.subr.bf16.mxu0 %v11455_v0  ;;  %vm11456_vm1 = vmmov 0   ;;  %vm422_vm2 = vcmask 1046528   ;;  %v9855_v21 = vld [vmem:[#allocation9 + $0x10] sm:$0xff]   ;;  %s11457_s2 = smov 16   ;;  %v9856_v32 = vld [vmem:[#allocation9 + $0x8] sm:$0xff]   ;;  %v9857_v34 = vld [vmem:[#allocation9] sm:$0xff]  }
  0xc4   :  { %9710 = vmatprep.mubr.msk.bf16.mxu0 %vm11456_vm1, %v11455_v0  ;;  %9705 = vmatpush3.bf16.msra.mxu0 %v9855_v21  ;;  %s11458_s25 = smov 32   ;;  %vm452_vm3 = vcmask 130048   ;;  %vm467_vm4 = vcmask 261120   ;;  %vm506_vm5 = vcmask 392192   ;;  %vm758_vm6 = vcmask 900096   ;;  %s12622_s28 = sld [smem:[#allocation55_spill]] }
  0xc5   :  { %9706 = vmatprep.subr.bf16.mxu0 %v11455_v0  ;;  %vm702_vm7 = vcmask 1045504   ;;  %vm1018_vm8 = vcmask 523264   ;;  %vm986_vm9 = vsmask.f32 6400  ;;  %vm1568_vm10 = vcmask 457728   ;;  %s11461_s26 = smov [#allocation3]  }
  0xc6   :  { %vm2800_vm11 = vcmask 228352   ;;  %vm2813_vm12 = vcmask 1043456  }
  0xc8   :  { %v11642_v1 = vld [vmem:[%s12621_s9] sm:$0xff]   ;;  %v11647_v2 = vld [vmem:[%s12621_s9 + $0x8] sm:$0xff]   ;;  %v11652_v3 = vld [vmem:[%s12621_s9 + $0x10] sm:$0xff]   ;;  %9707 = vmatpush3.bf16.msra.mxu0 %v9856_v32 }
  0xc9   :  { %v349_v4 = vshrl.u32 %v11642_v1, 16  ;;  %v351_v5 = vshll.u32 %v11642_v1, 16  ;;  %v356_v6 = vshll.u32 %v11647_v2, 16  ;;  %v423_v7 = vrot.slane %v11642_v1, 1  ;;  %v11667_v14 = vld [vmem:[%s12621_s9 + $0x18] sm:$0xff]   ;;  %v11672_v16 = vld [vmem:[%s12621_s9 + $0x20] sm:$0xff]   ;;  %9708 = vmatprep.subr.bf16.mxu0 %v11455_v0 }
  0xca   :  { %v424_v8 = vrot.slane %v11647_v2, 1  ;;  %v360_v9 = vshrl.u32 %v11647_v2, 16  ;;  %v364_v10 = vshll.u32 %v11652_v3, 16  ;;  %v426_v13 = vrot.slane %v11652_v3, 1  ;;  %v11686_v27 = vld [vmem:[%s12621_s9 + $0x28] sm:$0xff]   ;;  %v11694_v33 = vld [vmem:[%s12621_s9 + $0x30] sm:$0xff]  }
  0xcb   :  { %v353_v11 = vrot.slane %v351_v5, 1  ;;  %v358_v12 = vrot.slane %v356_v6, 1  ;;  %v368_v19 = vshrl.u32 %v11652_v3, 16  ;;  %v372_v20 = vshll.u32 %v11667_v14, 16 }
  0xcc   :  { %v366_v15 = vrot.slane %v364_v10, 1  ;;  %v428_v24 = vrot.slane %v11667_v14, 1  ;;  %v376_v25 = vshrl.u32 %v11667_v14, 16  ;;  %v380_v26 = vshll.u32 %v11672_v16, 16  ;;  %9709 = vmatpush3.bf16.msra.mxu0 %v9857_v34 }
  0xcd   :  { %v354_v17 = vor.u32 %v353_v11, %v349_v4  ;;  %v362_v18 = vor.u32 %v360_v9, %v358_v12  ;;  %v425_v28 = vsel %vm422_vm2, %v423_v7, %v424_v8  ;;  %v427_v29 = vsel %vm422_vm2, %v424_v8, %v426_v13  ;;  %v9854_v42 = vld [vmem:[%s12621_s9 + $0x38] ss:$0 sps:$4 sm:$0x11]  }
  0xce   :  { %v370_v30 = vor.u32 %v368_v19, %v366_v15  ;;  %v374_v31 = vrot.slane %v372_v20, 1  ;;  %v429_v35 = vsel %vm422_vm2, %v426_v13, %v428_v24  ;;  %v382_v36 = vrot.slane %v380_v26, 1 }
  0xcf   :  { %v359_v22 = vsel %vm347_vm0, %v354_v17, %v358_v12  ;;  %v367_v23 = vsel %vm347_vm0, %v362_v18, %v366_v15  ;;  %v430_v37 = vrot.slane %v11672_v16, 1  ;;  %v384_v40 = vshrl.u32 %v11672_v16, 16 }
  0xd0   :  { %408 = vrot.lane.b32.xlu0 %v359_v22, %s11457_s2  ;;  %410 = vrot.lane.b32.xlu1 %v367_v23, %s11457_s2  ;;  %v375_v38 = vsel %vm347_vm0, %v370_v30, %v374_v31  ;;  %v378_v39 = vor.u32 %v376_v25, %v374_v31  ;;  %v388_v41 = vshll.u32 %v11686_v27, 16  ;;  %v432_v44 = vrot.slane %v11686_v27, 1  ;;  %v624_v30 = vld [vmem:[#allocation24] sm:$0xff] }
  0xd1   :  { %v431_v43 = vsel %vm422_vm2, %v428_v24, %v430_v37  ;;  %v392_v45 = vshrl.u32 %v11686_v27, 16  ;;  %v386_v47 = vor.u32 %v384_v40, %v382_v36  ;;  %v396_v49 = vshll.u32 %v11694_v33, 16  ;;  %9766 = vmatprep.mubr.msk.f32.mxu1 %vm758_vm6, %v624_v30 }
  0xd2   :  { %v383_v46 = vsel %vm347_vm0, %v378_v39, %v382_v36  ;;  %v390_v48 = vrot.slane %v388_v41, 1  ;;  %v433_v50 = vsel %vm422_vm2, %v430_v37, %v432_v44  ;;  %v434_v51 = vrot.slane %v11694_v33, 1 }
  0xd3   :  { %v400_v52 = vshrl.u32 %v11694_v33, 16  ;;  %v398_v55 = vrot.slane %v396_v49, 1  ;;  %v404_v56 = vshll.u32 %v9854_v42, 16  ;;  %v436_v61 = vrot.slane %v9854_v42, 1 }
  0xd4   :  { %438 = vrot.lane.b32.xlu0 %v425_v28, %s11458_s25  ;;  %440 = vrot.lane.b32.xlu1 %v427_v29, %s11458_s25  ;;  %v391_v53 = vsel %vm347_vm0, %v386_v47, %v390_v48  ;;  %v394_v54 = vor.u32 %v392_v45, %v390_v48  ;;  %v435_v57 = vsel %vm422_vm2, %v432_v44, %v434_v51 }
  0xd5   :  { %v402_v59 = vor.u32 %v400_v52, %v398_v55  ;;  %v406_v60 = vrot.slane %v404_v56, 1  ;;  %v437_v63 = vsel %vm422_vm2, %v434_v51, %v436_v61 }
  0xd6   :  { %v399_v58 = vsel %vm347_vm0, %v394_v54, %v398_v55 }
  0xd7   :  { %v407_v62 = vsel %vm347_vm0, %v402_v59, %v406_v60 }
  0xd8   :  { %412 = vrot.lane.b32.xlu0 %v375_v38, %s11457_s2  ;;  %442 = vrot.lane.b32.xlu1 %v429_v35, %s11458_s25 }
  0xdc   :  { %414 = vrot.lane.b32.xlu0 %v383_v46, %s11457_s2  ;;  %444 = vrot.lane.b32.xlu1 %v431_v43, %s11458_s25 }
  0xe0   :  { %416 = vrot.lane.b32.xlu0 %v391_v53, %s11457_s2  ;;  %446 = vrot.lane.b32.xlu1 %v433_v50, %s11458_s25 }
  0xe4   :  { %418 = vrot.lane.b32.xlu0 %v399_v58, %s11457_s2  ;;  %448 = vrot.lane.b32.xlu1 %v435_v57, %s11458_s25 }
  0xe8   :  { %420 = vrot.lane.b32.xlu0 %v407_v62, %s11457_s2  ;;  %450 = vrot.lane.b32.xlu1 %v437_v63, %s11458_s25  ;;  %s271_s2 = sshll.u32 %s11461_s26, 4  ;;  %s272_s2 = int_to_ptr.vmem [resolvable:$true] %s271_s2 }
 0x142   :  { %v409_v4 = vpop.permute.xlu0 %408  ;;  %v411_v7 = vpop.permute.xlu1 %410 }
 0x143   :  { %v454_v5 = vsel %vm452_vm3, %v11642_v1, %v409_v4  ;;  %v456_v9 = vsel %vm452_vm3, %v11647_v2, %v411_v7 }
 0x146   :  { %v439_v6 = vpop.permute.xlu0 %438  ;;  %v441_v10 = vpop.permute.xlu1 %440 }
 0x147   :  { %v469_v8 = vsel %vm467_vm4, %v454_v5, %v439_v6  ;;  %v471_v11 = vsel %vm467_vm4, %v456_v9, %v441_v10 }
 0x148   :  { %9711 = vmatmul.mubr.msk.bf16.vlgmr.msra.gmra.mxu0 %vm506_vm5, %v469_v8 }
 0x149   :  { %9714 = vmatprep.mubr.msk.bf16.mxu0 %vm11456_vm1, %v11455_v0 }
 0x14a   :  { %v413_v12 = vpop.permute.xlu0 %412  ;;  %v443_v13 = vpop.permute.xlu1 %442 }
 0x14b   :  { %v458_v1 = vsel %vm452_vm3, %v11652_v3, %v413_v12 }
 0x14c   :  { %v473_v15 = vsel %vm467_vm4, %v458_v1, %v443_v13 }
 0x14e   :  { %v415_v17 = vpop.permute.xlu0 %414  ;;  %v445_v18 = vpop.permute.xlu1 %444 }
 0x14f   :  { %v460_v2 = vsel %vm452_vm3, %v11667_v14, %v415_v17 }
 0x150   :  { %9715 = vmatmul.mubr.msk.bf16.gmra.mxu0 %vm506_vm5, %v471_v11  ;;  %v475_v19 = vsel %vm467_vm4, %v460_v2, %v445_v18 }
 0x151   :  { %9718 = vmatprep.mubr.msk.bf16.mxu0 %vm11456_vm1, %v11455_v0 }
 0x152   :  { %v417_v20 = vpop.permute.xlu0 %416  ;;  %v447_v21 = vpop.permute.xlu1 %446 }
 0x153   :  { %v462_v3 = vsel %vm452_vm3, %v11672_v16, %v417_v20 }
 0x154   :  { %v477_v22 = vsel %vm467_vm4, %v462_v3, %v447_v21 }
 0x156   :  { %v419_v23 = vpop.permute.xlu0 %418  ;;  %v449_v24 = vpop.permute.xlu1 %448 }
 0x157   :  { %v464_v14 = vsel %vm452_vm3, %v11686_v27, %v419_v23  ;;  %v11771_v27 = vld [vmem:[#allocation11] ss:$0 sm:$0xff] }
 0x158   :  { %9719 = vmatmul.mubr.msk.bf16.gmra.mxu0 %vm506_vm5, %v473_v15  ;;  %v479_v25 = vsel %vm467_vm4, %v464_v14, %v449_v24 }
 0x159   :  { %9722 = vmatprep.mubr.msk.bf16.mxu0 %vm11456_vm1, %v11455_v0 }
 0x15a   :  { %v421_v26 = vpop.permute.xlu0 %420  ;;  %v451_v28 = vpop.permute.xlu1 %450 }
 0x15b   :  { %v466_v16 = vsel %vm452_vm3, %v11694_v33, %v421_v26 }
 0x15c   :  { %v481_v29 = vsel %vm467_vm4, %v466_v16, %v451_v28 }
 0x160   :  { %9723 = vmatmul.mubr.msk.bf16.gmra.mxu0 %vm506_vm5, %v475_v19 }
 0x161   :  { %9726 = vmatprep.mubr.msk.bf16.mxu0 %vm11456_vm1, %v11455_v0 }
 0x168   :  { %9727 = vmatmul.mubr.msk.bf16.gmra.mxu0 %vm506_vm5, %v477_v22 }
 0x169   :  { %9730 = vmatprep.mubr.msk.bf16.mxu0 %vm11456_vm1, %v11455_v0 }
 0x170   :  { %9731 = vmatmul.mubr.msk.bf16.gmra.mxu0 %vm506_vm5, %v479_v25 }
 0x171   :  { %9734 = vmatprep.mubr.msk.bf16.mxu0 %vm11456_vm1, %v11455_v0 }
 0x178   :  { %9735 = vmatmul.mubr.msk.bf16.gmra.mxu0 %vm506_vm5, %v481_v29 }
 0x208   :  { %v555_v31 = vpop.f32.mrf.mxu0 }
 0x209   :  { %v556_v32 = vadd.f32 %v11771_v27, %v555_v31 }
 0x20a   :  { %v9712_v34 = vpop.f32.mrf.mxu0 }
 0x20b   :  { %v610_v35 = vmax.f32 %v556_v32, 0.0 }
 0x20c   :  { %v558_v36 = vpop.f32.mrf.mxu0 }
 0x20d   :  { %v559_v37 = vadd.f32 %v11771_v27, %v558_v36  ;;  %v647_v39 = vrot.slane %v610_v35, 1  ;;  %v703_v41 = vrot.slane %v610_v35, 2 }
 0x20e   :  { %v9713_v33 = vpop.f32.mrf.mxu0 }
 0x20f   :  { %v611_v38 = vmax.f32 %v559_v37, 0.0 }
 0x210   :  { %v563_v40 = vpop.f32.mrf.mxu0 }
 0x211   :  { %v648_v42 = vrot.slane %v611_v38, 1  ;;  %v704_v43 = vrot.slane %v611_v38, 2  ;;  %v564_v44 = vadd.f32 %v11771_v27, %v563_v40 }
 0x212   :  { %v9716_v45 = vpop.f32.mrf.mxu0 }
 0x213   :  { %v11776_v46 = vmax.f32 %v564_v44, 0.0  ;;  %v649_v47 = vsel %vm422_vm2, %v647_v39, %v648_v42  ;;  %v705_v48 = vsel %vm702_vm7, %v703_v41, %v704_v43 }
 0x214   :  { %v11780_v49 = vpop.f32.mrf.mxu0  ;;  %v688_v50 = vmax.f32 %v610_v35, %v649_v47 }
 0x215   :  { %v650_v51 = vrot.slane %v11776_v46, 1  ;;  %v706_v52 = vrot.slane %v11776_v46, 2 }
 0x216   :  { %v9717_v53 = vpop.f32.mrf.mxu0  ;;  %v11784_v54 = vmax.f32 %v688_v50, %v705_v48 }
 0x217   :  { %v651_v55 = vsel %vm422_vm2, %v648_v42, %v650_v51  ;;  %v707_v56 = vsel %vm702_vm7, %v704_v43, %v706_v52 }
 0x218   :  { %v571_v57 = vpop.f32.mrf.mxu0  ;;  %v689_v58 = vmax.f32 %v611_v38, %v651_v55 }
 0x219   :  { %v572_v35 = vadd.f32 %v11771_v27, %v571_v57 }
 0x21a   :  { %v9720_v59 = vpop.f32.mrf.mxu0  ;;  %v11792_v60 = vmax.f32 %v689_v58, %v707_v56 }
 0x21b   :  { %v567_v59 = vadd.f32 %v11771_v27, %v11780_v49 }
 0x21c   :  { %v574_v61 = vpop.f32.mrf.mxu0 }
 0x21d   :  { %v575_v38 = vadd.f32 %v11771_v27, %v574_v61 }
 0x21e   :  { %v9721_v62 = vpop.f32.mrf.mxu0 }
 0x21f   :  { %v11813_v61 = vmax.f32 %v575_v38, 0.0 }
 0x220   :  { %v579_v63 = vpop.f32.mrf.mxu0 }
 0x221   :  { %v580_v31 = vadd.f32 %v11771_v27, %v579_v63 }
 0x222   :  { %v9724_v4 = vpop.f32.mrf.mxu0 }
 0x223   :  { %v11807_v47 = vmax.f32 %v580_v31, 0.0  ;;  %v712_v31 = vrot.slane %v11813_v61, 2 }
 0x224   :  { %v582_v5 = vpop.f32.mrf.mxu0 }
 0x225   :  { %v583_v28 = vadd.f32 %v11771_v27, %v582_v5 }
 0x226   :  { %v9725_v6 = vpop.f32.mrf.mxu0 }
 0x227   :  { %v617_v42 = vmax.f32 %v583_v28, 0.0 }
 0x228   :  { %v587_v7 = vpop.f32.mrf.mxu0 }
 0x229   :  { %v588_v14 = vadd.f32 %v11771_v27, %v587_v7  ;;  %v660_v63 = vrot.slane %v617_v42, 1  ;;  %v614_v7 = vmax.f32 %v572_v35, 0.0 }
 0x22a   :  { %v9728_v8 = vpop.f32.mrf.mxu0 }
 0x22b   :  { %v618_v36 = vmax.f32 %v588_v14, 0.0 }
 0x22c   :  { %v590_v9 = vpop.f32.mrf.mxu0 }
 0x22d   :  { %v591_v3 = vadd.f32 %v11771_v27, %v590_v9  ;;  %v662_v55 = vrot.slane %v618_v36, 1 }
 0x22e   :  { %v9729_v10 = vpop.f32.mrf.mxu0 }
 0x22f   :  { %v619_v29 = vmax.f32 %v591_v3, 0.0  ;;  %v658_v10 = vrot.slane %v11807_v47, 1  ;;  %v654_v3 = vrot.slane %v614_v7, 1 }
 0x230   :  { %v595_v11 = vpop.f32.mrf.mxu0 }
 0x231   :  { %v596_v18 = vadd.f32 %v11771_v27, %v595_v11  ;;  %v664_v43 = vrot.slane %v619_v29, 1  ;;  %v663_v11 = vsel %vm422_vm2, %v660_v63, %v662_v55 }
 0x232   :  { %v9732_v12 = vpop.f32.mrf.mxu0 }
 0x233   :  { %v620_v24 = vmax.f32 %v596_v18, 0.0  ;;  %v665_v6 = vsel %vm422_vm2, %v662_v55, %v664_v43  ;;  %v613_v12 = vmax.f32 %v567_v59, 0.0  ;;  %v661_v18 = vsel %vm422_vm2, %v658_v10, %v660_v63  ;;  %v627_v55 = vld [vmem:[#allocation24 + $0x18] sm:$0xff] }
 0x234   :  { %v598_v1 = vpop.f32.mrf.mxu0  ;;  %v9861_v59 = vld [vmem:[%s12622_s28 + $0x120] ss:$8 sps:$4 sm:$0xff]   ;;  %v9869_v63 = vld [vmem:[%s12622_s28 + $0x104] ss:$8 sps:$4 sm:$0xff]  }
 0x235   :  { %v599_v15 = vadd.f32 %v11771_v27, %v598_v1  ;;  %v666_v37 = vrot.slane %v620_v24, 1  ;;  %v722_v4 = vrot.slane %v620_v24, 2 }
 0x236   :  { %v9733_v13 = vpop.f32.mrf.mxu0 }
 0x237   :  { %v621_v21 = vmax.f32 %v599_v15, 0.0  ;;  %v667_v58 = vsel %vm422_vm2, %v664_v43, %v666_v37  ;;  %v696_v13 = vmax.f32 %v618_v36, %v665_v6  ;;  %v656_v15 = vrot.slane %v11813_v61, 1  ;;  %v9870_v6 = vld [vmem:[%s12622_s28 + $0x70] ss:$8 sps:$4 sm:$0xff]  }
 0x238   :  { %v603_v17 = vpop.f32.mrf.mxu0  ;;  %v697_v9 = vmax.f32 %v619_v29, %v667_v58  ;;  %v631_v58 = vld [vmem:[#allocation24 + $0x38] sm:$0x3f] }
 0x239   :  { %v604_v2 = vadd.f32 %v11771_v27, %v603_v17  ;;  %v668_v30 = vrot.slane %v621_v21, 1  ;;  %v724_v56 = vrot.slane %v621_v21, 2  ;;  %v718_v17 = vrot.slane %v618_v36, 2 }
 0x23a   :  { %v9736_v19 = vpop.f32.mrf.mxu0  ;;  %v657_v28 = vsel %vm422_vm2, %v654_v3, %v656_v15 }
 0x23b   :  { %v622_v20 = vmax.f32 %v604_v2, 0.0  ;;  %v669_v45 = vsel %vm422_vm2, %v666_v37, %v668_v30  ;;  %v725_v49 = vsel %vm702_vm7, %v722_v4, %v724_v56  ;;  %v692_v36 = vmax.f32 %v614_v7, %v657_v28  ;;  %v9911_v28 = vld [vmem:[%s12622_s28 + $0xa4] ss:$8 sps:$4 sm:$0xff]  }
 0x23c   :  { %v606_v22 = vpop.f32.mrf.mxu0  ;;  %v698_v62 = vmax.f32 %v620_v24, %v669_v45  ;;  %v694_v24 = vmax.f32 %v11807_v47, %v661_v18  ;;  %v710_v37 = vrot.slane %v614_v7, 2  ;;  %v9872_v7 = vld [vmem:[%s12622_s28 + $0x74] ss:$8 sps:$4 sm:$0xff]   ;;  %v9893_v18 = vld [vmem:[%s12622_s28 + $0x4] ss:$8 sps:$4 sm:$0xff]  }
 0x23d   :  { %v607_v23 = vadd.f32 %v11771_v27, %v606_v22  ;;  %v670_v25 = vrot.slane %v622_v20, 1  ;;  %v726_v39 = vrot.slane %v622_v20, 2  ;;  %v720_v27 = vrot.slane %v619_v29, 2  ;;  %1270 = vmatprep.subr.bf16.mxu0 %v9872_v7 }
 0x23e   :  { %v9737_v26 = vpop.f32.mrf.mxu0  ;;  %v754_v1 = vmax.f32 %v698_v62, %v725_v49  ;;  %v9864_v62 = vld [vmem:[%s12622_s28 + $0x110] ss:$8 sps:$4 sm:$0xff]   ;;  %1271 = vmatpush1.bf16.msra.mxu0 %v9870_v6  ;;  %v9881_v49 = vld [vmem:[%s12622_s28 + $0x44] ss:$8 sps:$4 sm:$0xff]  }
 0x23f   :  { %v623_v16 = vmax.f32 %v607_v23, 0.0  ;;  %v671_v33 = vsel %vm422_vm2, %v668_v30, %v670_v25  ;;  %v727_v5 = vsel %vm702_vm7, %v724_v56, %v726_v39  ;;  %v723_v2 = vsel %vm702_vm7, %v720_v27, %v722_v4  ;;  %v628_v56 = vld [vmem:[#allocation24 + $0x20] sm:$0xff]  ;;  %v9867_v4 = vld [vmem:[%s12622_s28 + $0x100] ss:$8 sps:$4 sm:$0xff]  }
 0x240   :  { %v699_v53 = vmax.f32 %v621_v21, %v671_v33  ;;  %v753_v19 = vmax.f32 %v697_v9, %v723_v2  ;;  %v716_v21 = vrot.slane %v617_v42, 2  ;;  %v721_v22 = vsel %vm702_vm7, %v718_v17, %v720_v27  ;;  %v9873_v9 = vld [vmem:[%s12622_s28 + $0x60] ss:$8 sps:$4 sm:$0xff]   ;;  %v9876_v27 = vld [vmem:[%s12622_s28 + $0x50] ss:$8 sps:$4 sm:$0xff]  }
 0x241   :  { %v672_v32 = vrot.slane %v623_v16, 1  ;;  %v728_v34 = vrot.slane %v623_v16, 2  ;;  %v659_v23 = vsel %vm422_vm2, %v656_v15, %v658_v10  ;;  %v752_v14 = vmax.f32 %v696_v13, %v721_v22  ;;  %v9878_v10 = vld [vmem:[%s12622_s28 + $0x54] ss:$8 sps:$4 sm:$0xff]   ;;  %v9887_v13 = vld [vmem:[%s12622_s28 + $0x24] ss:$8 sps:$4 sm:$0xff]  }
 0x242   :  { %v755_v8 = vmax.f32 %v699_v53, %v727_v5  ;;  %v714_v26 = vrot.slane %v11807_v47, 2  ;;  %v693_v30 = vmax.f32 %v11813_v61, %v659_v23  ;;  %v625_v53 = vld [vmem:[#allocation24 + $0x8] sm:$0xff]  ;;  %v11459_v5 = vmov 0   ;;  %v9885_v15 = vld [vmem:[%s12622_s28 + $0x20] ss:$8 sps:$4 sm:$0xff]  }
 0x243   :  { %v701_v40 = vmax.f32 %v623_v16, %v672_v32  ;;  %v673_v41 = vsel %vm422_vm2, %v670_v25, %v672_v32  ;;  %v729_v50 = vsel %vm702_vm7, %v726_v39, %v728_v34  ;;  %v652_v25 = vrot.slane %v613_v12, 1  ;;  %v9866_v61 = vld [vmem:[%s12622_s28 + $0x114] ss:$8 sps:$4 sm:$0xff]   ;;  %v9888_v2 = vld [vmem:[%s12622_s28 + $0x10] ss:$8 sps:$4 sm:$0xff]  }
 0x244   :  { %v700_v44 = vmax.f32 %v622_v20, %v673_v41  ;;  %v695_v20 = vmax.f32 %v617_v42, %v663_v11  ;;  %v719_v16 = vsel %vm702_vm7, %v716_v21, %v718_v17  ;;  %v717_v32 = vsel %vm702_vm7, %v714_v26, %v716_v21  ;;  %v9879_v11 = vld [vmem:[%s12622_s28 + $0x40] ss:$8 sps:$4 sm:$0xff]   ;;  %v9890_v17 = vld [vmem:[%s12622_s28 + $0x14] ss:$8 sps:$4 sm:$0xff]   ;;  %v9899_v21 = vld [vmem:[%s12622_s28 + $0xe4] ss:$8 sps:$4 sm:$0xff]  }
 0x245   :  { %v757_v48 = vmax.f32 %v701_v40, %v728_v34  ;;  %v655_v34 = vsel %vm422_vm2, %v652_v25, %v654_v3  ;;  %v750_v35 = vmax.f32 %v694_v24, %v717_v32  ;;  %v715_v33 = vsel %vm702_vm7, %v712_v31, %v714_v26  ;;  %v9894_v3 = vld [vmem:[%s12622_s28 + $0xf0] ss:$8 sps:$4 sm:$0xff]   ;;  %v9897_v22 = vld [vmem:[%s12622_s28 + $0xe0] ss:$8 sps:$4 sm:$0xff]   ;;  %v9902_v23 = vld [vmem:[%s12622_s28 + $0xd4] ss:$8 sps:$4 sm:$0xff]  }
 0x246   :  { %v756_v57 = vmax.f32 %v700_v44, %v729_v50  ;;  %v751_v29 = vmax.f32 %v695_v20, %v719_v16  ;;  %v653_v38 = vsel %vm422_vm2, %v650_v51, %v652_v25  ;;  %v749_v39 = vmax.f32 %v693_v30, %v715_v33  ;;  %v9860_v50 = vld [vmem:[%s12622_s28 + $0x134] ss:$8 sps:$4 sm:$0xff]   ;;  %v9905_v24 = vld [vmem:[%s12622_s28 + $0xc4] ss:$8 sps:$4 sm:$0xff]   ;;  %v9903_v25 = vld [vmem:[%s12622_s28 + $0xc0] ss:$8 sps:$4 sm:$0xff]  }
 0x247   :  { %9738 = vmatprep.subr.msk.mxu1 %vm702_vm7, %v757_v48  ;;  %v691_v40 = vmax.f32 %v613_v12, %v655_v34  ;;  %v708_v41 = vrot.slane %v613_v12, 2  ;;  %v713_v42 = vsel %vm702_vm7, %v710_v37, %v712_v31  ;;  %v690_v44 = vmax.f32 %v11776_v46, %v653_v38  ;;  %v9858_v46 = vld [vmem:[%s12622_s28 + $0x130] ss:$8 sps:$4 sm:$0xff]   ;;  %v9884_v12 = vld [vmem:[%s12622_s28 + $0x34] ss:$8 sps:$4 sm:$0xff]  }
 0x248   :  { %9739 = vmatpush3.msk.msra.mxu1 %vm702_vm7, %v757_v48  ;;  %v748_v43 = vmax.f32 %v692_v36, %v713_v42  ;;  %v9896_v20 = vld [vmem:[%s12622_s28 + $0xf4] ss:$8 sps:$4 sm:$0xff]   ;;  %v9906_v16 = vld [vmem:[%s12622_s28 + $0xb0] ss:$8 sps:$4 sm:$0xff]   ;;  %v9917_v34 = vld [vmem:[%s12622_s28 + $0x84] ss:$8 sps:$4 sm:$0xff]  }
 0x249   :  { %9740 = vmatprep.subr.mxu1 %v756_v57  ;;  %v711_v45 = vsel %vm702_vm7, %v708_v41, %v710_v37  ;;  %v709_v51 = vsel %vm702_vm7, %v706_v52, %v708_v41  ;;  %v626_v52 = vld [vmem:[#allocation24 + $0x10] sm:$0xff]  ;;  %v9912_v31 = vld [vmem:[%s12622_s28 + $0x90] ss:$8 sps:$4 sm:$0xff]  }
 0x24a   :  { %9741 = vmatpush3.msra.mxu1 %v756_v57  ;;  %v747_v47 = vmax.f32 %v691_v40, %v711_v45  ;;  %v746_v48 = vmax.f32 %v690_v44, %v709_v51  ;;  %v630_v57 = vld [vmem:[#allocation24 + $0x30] sm:$0xff] }
 0x24b   :  { %9742 = vmatprep.subr.mxu1 %v755_v8  ;;  %v9908_v26 = vld [vmem:[%s12622_s28 + $0xb4] ss:$8 sps:$4 sm:$0xff]  }
 0x24c   :  { %9743 = vmatpush3.msra.mxu1 %v755_v8  ;;  %v9875_v8 = vld [vmem:[%s12622_s28 + $0x64] ss:$8 sps:$4 sm:$0xff]   ;;  %v9914_v30 = vld [vmem:[%s12622_s28 + $0x94] ss:$8 sps:$4 sm:$0xff]  }
 0x24d   :  { %9744 = vmatprep.subr.mxu1 %v754_v1  ;;  %1272 = vmatprep.subr.bf16.mxu0 %v9875_v8 }
 0x24e   :  { %9745 = vmatpush3.msra.mxu1 %v754_v1  ;;  %1273 = vmatpush1.bf16.msra.mxu0 %v9873_v9  ;;  %v9882_v1 = vld [vmem:[%s12622_s28 + $0x30] ss:$8 sps:$4 sm:$0xff]  }
 0x24f   :  { %9746 = vmatprep.subr.mxu1 %v753_v19  ;;  %1274 = vmatprep.subr.bf16.mxu0 %v9878_v10 }
 0x250   :  { %9747 = vmatpush3.msra.mxu1 %v753_v19  ;;  %v9891_v19 = vld [vmem:[%s12622_s28] ss:$8 sps:$4 sm:$0xff]  }
 0x251   :  { %9748 = vmatprep.subr.mxu1 %v752_v14 }
 0x252   :  { %9749 = vmatpush3.msra.mxu1 %v752_v14  ;;  %1275 = vmatpush1.bf16.msra.mxu0 %v9876_v27  ;;  %v9900_v14 = vld [vmem:[%s12622_s28 + $0xd0] ss:$8 sps:$4 sm:$0xff]  }
 0x253   :  { %9750 = vmatprep.subr.mxu1 %v751_v29  ;;  %1276 = vmatprep.subr.bf16.mxu0 %v9881_v49 }
 0x254   :  { %9751 = vmatpush3.msra.mxu1 %v751_v29  ;;  %v9909_v29 = vld [vmem:[%s12622_s28 + $0xa0] ss:$8 sps:$4 sm:$0xff]  }
 0x255   :  { %9752 = vmatprep.subr.mxu1 %v750_v35 }
 0x256   :  { %9753 = vmatpush3.msra.mxu1 %v750_v35  ;;  %1277 = vmatpush1.bf16.msra.mxu0 %v9879_v11  ;;  %v9915_v35 = vld [vmem:[%s12622_s28 + $0x80] ss:$8 sps:$4 sm:$0xff]  }
 0x257   :  { %9754 = vmatprep.subr.mxu1 %v749_v39  ;;  %1278 = vmatprep.subr.bf16.mxu0 %v9884_v12 }
 0x258   :  { %9755 = vmatpush3.msra.mxu1 %v749_v39 }
 0x259   :  { %9756 = vmatprep.subr.mxu1 %v748_v43 }
 0x25a   :  { %9757 = vmatpush3.msra.mxu1 %v748_v43  ;;  %1279 = vmatpush1.bf16.msra.mxu0 %v9882_v1 }
 0x25b   :  { %9758 = vmatprep.subr.mxu1 %v747_v47  ;;  %1280 = vmatprep.subr.bf16.mxu0 %v9887_v13 }
 0x25c   :  { %9759 = vmatpush3.msra.mxu1 %v747_v47 }
 0x25d   :  { %9760 = vmatprep.subr.mxu1 %v746_v48 }
 0x25e   :  { %9761 = vmatpush3.msra.mxu1 %v746_v48  ;;  %1281 = vmatpush1.bf16.msra.mxu0 %v9885_v15 }
 0x25f   :  { %9762 = vmatprep.subr.mxu1 %v11792_v60  ;;  %1282 = vmatprep.subr.bf16.mxu0 %v9890_v17 }
 0x260   :  { %9763 = vmatpush3.msra.mxu1 %v11792_v60  ;;  %v629_v60 = vld [vmem:[#allocation24 + $0x28] sm:$0xff] }
 0x261   :  { %9764 = vmatprep.subr.mxu1 %v11784_v54 }
 0x262   :  { %9765 = vmatpush3.msra.mxu1 %v11784_v54  ;;  %v9863_v54 = vld [vmem:[%s12622_s28 + $0x124] ss:$8 sps:$4 sm:$0xff]   ;;  %1283 = vmatpush1.bf16.msra.mxu0 %v9888_v2 }
 0x263   :  { %9767 = vmatmul.mubr.msk.f32.vlgmr.msra.gmra.mxu1 %vm758_vm6, %v625_v53  ;;  %1351 = vmatprep.subr.bf16.mxu1 %v9860_v50 }
 0x264   :  { %9769 = vmatprep.mubr.msk.f32.mxu1 %vm758_vm6, %v626_v52  ;;  %1352 = vmatpush1.bf16.msra.mxu1 %v9858_v46 }
 0x265   :  { %1353 = vmatprep.subr.bf16.mxu1 %v9863_v54  ;;  %1284 = vmatprep.subr.bf16.mxu0 %v9893_v18 }
 0x266   :  { %1285 = vmatpush1.bf16.msra.mxu0 %v9891_v19 }
 0x267   :  { %9770 = vmatmul.mubr.msk.f32.gmra.mxu1 %vm758_vm6, %v627_v55  ;;  %1286 = vmatprep.subr.bf16.mxu0 %v9896_v20 }
 0x268   :  { %9772 = vmatprep.mubr.msk.f32.mxu1 %vm758_vm6, %v628_v56  ;;  %1354 = vmatpush1.bf16.msra.mxu1 %v9861_v59 }
 0x269   :  { %1355 = vmatprep.subr.bf16.mxu1 %v9866_v61 }
 0x26a   :  { %1287 = vmatpush2.bf16.msra.mxu0 %v9894_v3 }
 0x26b   :  { %9773 = vmatmul.mubr.msk.f32.gmra.mxu1 %vm758_vm6, %v629_v60  ;;  %1288 = vmatprep.subr.bf16.mxu0 %v9899_v21 }
 0x26c   :  { %9775 = vmatprep.mubr.msk.f32.mxu1 %vm758_vm6, %v630_v57  ;;  %1356 = vmatpush1.bf16.msra.mxu1 %v9864_v62 }
 0x26d   :  { %1357 = vmatprep.subr.bf16.mxu1 %v9869_v63 }
 0x26e   :  { %1289 = vmatpush2.bf16.msra.mxu0 %v9897_v22 }
 0x26f   :  { %9776 = vmatmul.mubr.msk.f32.gmra.mxu1 %vm758_vm6, %v631_v58  ;;  %1290 = vmatprep.subr.bf16.mxu0 %v9902_v23 }
 0x270   :  { %1358 = vmatpush1.bf16.msra.mxu1 %v9867_v4  ;;  %1375 = vmatprep.mubr.bf16.mxu1 %v11459_v5 }
 0x272   :  { %1291 = vmatpush2.bf16.msra.mxu0 %v9900_v14 }
 0x273   :  { %1292 = vmatprep.subr.bf16.mxu0 %v9905_v24 }
 0x276   :  { %1293 = vmatpush2.bf16.msra.mxu0 %v9903_v25 }
 0x277   :  { %1294 = vmatprep.subr.bf16.mxu0 %v9908_v26 }
 0x27a   :  { %1295 = vmatpush2.bf16.msra.mxu0 %v9906_v16 }
 0x27b   :  { %1296 = vmatprep.subr.bf16.mxu0 %v9911_v28 }
 0x27e   :  { %1297 = vmatpush2.bf16.msra.mxu0 %v9909_v29 }
 0x27f   :  { %1298 = vmatprep.subr.bf16.mxu0 %v9914_v30 }
 0x282   :  { %1299 = vmatpush2.bf16.msra.mxu0 %v9912_v31 }
 0x283   :  { %1300 = vmatprep.subr.bf16.mxu0 %v9917_v34 }
 0x286   :  { %1301 = vmatpush2.bf16.msra.mxu0 %v9915_v35 }
 0x323   :  { %v9768_v32 = vpop.f32.mrf.mxu1 }
 0x325   :  { %v852_v36 = vpop.f32.mrf.mxu1 }
 0x326   :  { %v11977_v37 = vpack.c.bf16 %v9768_v32, %v852_v36 }
 0x327   :  { %v9771_v33 = vpop.f32.mrf.mxu1 }
 0x328   :  { %v939_v38 = vshll.u32 %v11977_v37, 16  ;;  %v937_v40 = vshrl.u32 %v11977_v37, 16  ;;  %v1011_v44 = vrot.slane %v11977_v37, 2  ;;  %v979_v26 = vrot.slane %v11977_v37, 1 }
 0x329   :  { %v862_v39 = vpop.f32.mrf.mxu1 }
 0x32a   :  { %v11981_v41 = vpack.c.bf16 %v9771_v33, %v862_v39  ;;  %v941_v42 = vrot.slane %v939_v38, 1  ;;  %v987_v53 = vrot.slane %v937_v40, 1  ;;  %v988_v46 = vrot.slane %v939_v38, 2 }
 0x32b   :  { %v9774_v43 = vpop.f32.mrf.mxu1 }
 0x32c   :  { %v1012_v45 = vrot.slane %v11981_v41, 2  ;;  %v944_v47 = vshll.u32 %v11981_v41, 16  ;;  %v948_v51 = vshrl.u32 %v11981_v41, 16  ;;  %v942_v50 = vor.u32 %v941_v42, %v937_v40 }
 0x32d   :  { %v872_v48 = vpop.f32.mrf.mxu1  ;;  %v989_v62 = vor.u32 %v988_v46, %v987_v53  ;;  %v980_v25 = vrot.slane %v11981_v41, 1 }
 0x32e   :  { %v11987_v52 = vpack.c.bf16 %v9774_v43, %v872_v48  ;;  %v1013_v55 = vsel %vm702_vm7, %v1011_v44, %v1012_v45  ;;  %v946_v56 = vrot.slane %v944_v47, 1  ;;  %v990_v60 = vrot.slane %v948_v51, 1 }
 0x32f   :  { %v9777_v57 = vpop.f32.mrf.mxu1  ;;  %8744 = vmatmul.mubr.msk.bf16.vlgmr.msra.gmra.mxu1 %vm1018_vm8, %v1013_v55  ;;  %v991_v58 = vrot.slane %v944_v47, 2  ;;  %v981_v29 = vsel %vm422_vm2, %v979_v26, %v980_v25 }
 0x330   :  { %v947_v54 = vsel %vm347_vm0, %v942_v50, %v946_v56  ;;  %v952_v59 = vshll.u32 %v11987_v52, 16  ;;  %1385 = vmatprep.mubr.bf16.mxu1 %v11459_v5  ;;  %v1014_v4 = vrot.slane %v11987_v52, 2  ;;  %v956_v6 = vshrl.u32 %v11987_v52, 16 }
 0x331   :  { %967 = vrot.lane.b32.xlu1 %v947_v54, %s11435_s30  ;;  %v882_v61 = vpop.f32.mrf.mxu1  ;;  %v992_v63 = vor.u32 %v991_v58, %v990_v60  ;;  %v950_v8 = vor.u32 %v948_v51, %v946_v56  ;;  %v982_v30 = vrot.slane %v11987_v52, 1 }
 0x332   :  { %v11997_v7 = vpack.c.bf16 %v9777_v57, %v882_v61  ;;  %v954_v9 = vrot.slane %v952_v59, 1  ;;  %v995_v10 = vrot.slane %v952_v59, 2  ;;  %v994_v49 = vrot.slane %v956_v6, 1 }
 0x333   :  { %v993_v27 = vsel %vm986_vm9, %v989_v62, %v992_v63  ;;  %v1015_v13 = vsel %vm702_vm7, %v1012_v45, %v1014_v4  ;;  %v983_v35 = vsel %vm422_vm2, %v980_v25, %v982_v30  ;;  %v1048_v57 = vlaneseq }
 0x334   :  { %1002 = vrot.lane.b32.xlu0 %v993_v27, %s11435_s30  ;;  %v955_v11 = vsel %vm347_vm0, %v950_v8, %v954_v9  ;;  %v960_v12 = vshll.u32 %v11997_v7, 16  ;;  %v964_v1 = vshrl.u32 %v11997_v7, 16  ;;  %v996_v15 = vor.u32 %v995_v10, %v994_v49 }
 0x335   :  { %969 = vrot.lane.b32.xlu1 %v955_v11, %s11435_s30  ;;  %v958_v17 = vor.u32 %v956_v6, %v954_v9  ;;  %v1016_v14 = vrot.slane %v11997_v7, 2  ;;  %v984_v33 = vrot.slane %v11997_v7, 1  ;;  %v12041_v59 = vshrl.u32 %v1048_v57, 7  ;;  %v935_v6 = vld [vmem:[#allocation12] sm:$0x3] }
 0x336   :  { %v962_v2 = vrot.slane %v960_v12, 1  ;;  %v998_v18 = vrot.slane %v964_v1, 1  ;;  %v999_v19 = vrot.slane %v960_v12, 2  ;;  %v997_v20 = vsel %vm986_vm9, %v992_v63, %v996_v15 }
 0x337   :  { %8745 = vmatmul.mubr.msk.bf16.gmra.mxu1 %vm1018_vm8, %v1015_v13  ;;  %v1017_v24 = vsel %vm702_vm7, %v1014_v4, %v1016_v14  ;;  %v985_v42 = vsel %vm422_vm2, %v982_v30, %v984_v33  ;;  %v12044_v4 = vsub.s32 0, %v12041_v59  ;;  %v12047_v9 = vsub.s32 1, %v12041_v59 }
 0x338   :  { %1004 = vrot.lane.b32.xlu0 %v997_v20, %s11435_s30  ;;  %v963_v3 = vsel %vm347_vm0, %v958_v17, %v962_v2  ;;  %v1000_v21 = vor.u32 %v999_v19, %v998_v18  ;;  %1395 = vmatprep.mubr.bf16.mxu1 %v11459_v5  ;;  %v966_v22 = vor.u32 %v964_v1, %v962_v2 }
 0x339   :  { %971 = vrot.lane.b32.xlu1 %v963_v3, %s11435_s30  ;;  %v1051_v27 = vrot.slane %v935_v6, %v12044_v4  ;;  %v1055_v12 = vrot.slane %v935_v6, %v12047_v9 }
 0x33a   :  { %v1001_v23 = vsel %vm986_vm9, %v996_v15, %v1000_v21 }
 0x33c   :  { %1006 = vrot.lane.b32.xlu0 %v1001_v23, %s11435_s30 }
 0x33d   :  { %973 = vrot.lane.b32.xlu1 %v966_v22, %s11435_s30 }
 0x33f   :  { %8746 = vmatmul.mubr.msk.bf16.gmra.mxu1 %vm1018_vm8, %v1017_v24 }
 0x340   :  { %1008 = vrot.lane.b32.xlu0 %v1000_v21, %s11435_s30  ;;  %1405 = vmatprep.mubr.bf16.mxu1 %v11459_v5 }
 0x347   :  { %8747 = vmatmul.mubr.msk.bf16.gmra.mxu1 %vm1018_vm8, %v1016_v14 }
 0x348   :  { %1645 = vmatprep.mubr.f32.mxu1 %v11455_v0 }
 0x3a3   :  { %v968_v16 = vpop.permute.xlu1 %967 }
 0x3a4   :  { %v1020_v32 = vsel %vm1018_vm8, %v11977_v37, %v968_v16 }
 0x3a6   :  { %v1003_v28 = vpop.permute.xlu0 %1002 }
 0x3a7   :  { %v1033_v31 = vsel %vm1018_vm8, %v981_v29, %v1003_v28  ;;  %v970_v38 = vpop.permute.xlu1 %969 }
 0x3a8   :  { %1302 = vmatprep.mubr.bf16.mxu0 %v1033_v31  ;;  %v1023_v40 = vsel %vm1018_vm8, %v11981_v41, %v970_v38 }
 0x3a9   :  { %1303 = vmatmul.mubr.bf16.vlgmr.msra.gmra.mxu0 %v1020_v32 }
 0x3aa   :  { %v1005_v34 = vpop.permute.xlu0 %1004 }
 0x3ab   :  { %v1037_v36 = vsel %vm1018_vm8, %v983_v35, %v1005_v34  ;;  %v972_v43 = vpop.permute.xlu1 %971 }
 0x3ac   :  { %1312 = vmatprep.mubr.bf16.mxu0 %v1037_v36  ;;  %v1026_v45 = vsel %vm1018_vm8, %v11987_v52, %v972_v43 }
 0x3ae   :  { %v1007_v39 = vpop.permute.xlu0 %1006 }
 0x3af   :  { %v1041_v37 = vsel %vm1018_vm8, %v985_v42, %v1007_v39  ;;  %v974_v51 = vpop.permute.xlu1 %973 }
 0x3b0   :  { %v1029_v48 = vsel %vm1018_vm8, %v11997_v7, %v974_v51 }
 0x3b1   :  { %1313 = vmatmul.mubr.bf16.gmra.mxu0 %v1023_v40 }
 0x3b2   :  { %1322 = vmatprep.mubr.bf16.mxu0 %v1041_v37  ;;  %v1009_v44 = vpop.permute.xlu0 %1008 }
 0x3b3   :  { %v1045_v47 = vsel %vm1018_vm8, %v984_v33, %v1009_v44 }
 0x3b9   :  { %1323 = vmatmul.mubr.bf16.gmra.mxu0 %v1026_v45 }
 0x3ba   :  { %1332 = vmatprep.mubr.bf16.mxu0 %v1045_v47 }
 0x3c1   :  { %1333 = vmatmul.mubr.bf16.gmra.mxu0 %v1029_v48 }
 0x3ef   :  { %v1377_v41 = vpop.f32.mrf.mxu1 }
 0x3f1   :  { %v1379_v50 = vpop.f32.mrf.mxu1 }
 0x3f3   :  { %v1381_v53 = vpop.f32.mrf.mxu1 }
 0x3f5   :  { %v1383_v46 = vpop.f32.mrf.mxu1 }
 0x3f7   :  { %v1387_v55 = vpop.f32.mrf.mxu1 }
 0x3f9   :  { %v1389_v56 = vpop.f32.mrf.mxu1 }
 0x3fb   :  { %v1391_v60 = vpop.f32.mrf.mxu1 }
 0x3fd   :  { %v1393_v54 = vpop.f32.mrf.mxu1 }
 0x3ff   :  { %v1397_v62 = vpop.f32.mrf.mxu1 }
 0x401   :  { %v1399_v8 = vpop.f32.mrf.mxu1 }
 0x403   :  { %v1401_v11 = vpop.f32.mrf.mxu1 }
 0x405   :  { %v1403_v17 = vpop.f32.mrf.mxu1 }
 0x407   :  { %v1407_v14 = vpop.f32.mrf.mxu1 }
 0x409   :  { %v1409_v33 = vpop.f32.mrf.mxu1 }
 0x469   :  { %v1304_v58 = vpop.f32.mrf.mxu0 }
 0x46a   :  { %v1305_v13 = vadd.f32 %v1304_v58, %v1051_v27 }
 0x46b   :  { %v1306_v52 = vpop.f32.mrf.mxu0 }
 0x46c   :  { %v1307_v2 = vadd.f32 %v1306_v52, %v1055_v12  ;;  %v1378_v20 = vadd.f32 %v1377_v41, %v1305_v13 }
 0x46d   :  { %v1308_v61 = vpop.f32.mrf.mxu0 }
 0x46e   :  { %v1309_v18 = vadd.f32 %v1308_v61, %v1051_v27  ;;  %v1380_v25 = vadd.f32 %v1379_v50, %v1307_v2  ;;  %v12051_v29 = vmax.f32 %v1378_v20, 0.0 }
 0x46f   :  { %v1310_v63 = vpop.f32.mrf.mxu0 }
 0x470   :  { %v1311_v3 = vadd.f32 %v1310_v63, %v1055_v12  ;;  %v1382_v26 = vadd.f32 %v1381_v53, %v1309_v18  ;;  %v12053_v42 = vmax.f32 %v1380_v25, 0.0  ;;  %v1452_v47 = vrot.slane %v12051_v29, 1 }
 0x471   :  { %v1314_v7 = vpop.f32.mrf.mxu0 }
 0x472   :  { %v1315_v21 = vadd.f32 %v1314_v7, %v1051_v27  ;;  %v1384_v31 = vadd.f32 %v1383_v46, %v1311_v3  ;;  %v12055_v37 = vmax.f32 %v1382_v26, 0.0  ;;  %v1455_v61 = vrot.slane %v12053_v42, 1 }
 0x473   :  { %v1316_v10 = vpop.f32.mrf.mxu0 }
 0x474   :  { %v1317_v22 = vadd.f32 %v1316_v10, %v1055_v12  ;;  %v1388_v32 = vadd.f32 %v1387_v55, %v1315_v21  ;;  %v12058_v50 = vmax.f32 %v1384_v31, 0.0 }
 0x475   :  { %v1318_v49 = vpop.f32.mrf.mxu0 }
 0x476   :  { %v1319_v24 = vadd.f32 %v1318_v49, %v1051_v27  ;;  %v1390_v34 = vadd.f32 %v1389_v56, %v1317_v22  ;;  %v12060_v53 = vmax.f32 %v1388_v32, 0.0 }
 0x477   :  { %v1320_v1 = vpop.f32.mrf.mxu0 }
 0x478   :  { %v1321_v16 = vadd.f32 %v1320_v1, %v1055_v12  ;;  %v1392_v38 = vadd.f32 %v1391_v60, %v1319_v24  ;;  %v12062_v46 = vmax.f32 %v1390_v34, 0.0  ;;  %v1411_v60 = vpop.f32.mrf.mxu1 }
 0x479   :  { %v1324_v15 = vpop.f32.mrf.mxu0 }
 0x47a   :  { %v1325_v30 = vadd.f32 %v1324_v15, %v1051_v27  ;;  %v1394_v43 = vadd.f32 %v1393_v54, %v1321_v16  ;;  %v12064_v57 = vmax.f32 %v1392_v38, 0.0  ;;  %v1456_v15 = vrot.slane %v12058_v50, 1 }
 0x47b   :  { %v1326_v19 = vpop.f32.mrf.mxu0  ;;  %v1460_v18 = vrot.slane %v12062_v46, 1 }
 0x47c   :  { %v1327_v44 = vadd.f32 %v1326_v19, %v1055_v12  ;;  %v1398_v51 = vadd.f32 %v1397_v62, %v1325_v30  ;;  %v1453_v62 = vrot.slane %v12055_v37, 1  ;;  %v12068_v63 = vmax.f32 %v1394_v43, 0.0 }
 0x47d   :  { %v1328_v23 = vpop.f32.mrf.mxu0  ;;  %v1462_v19 = vrot.slane %v12064_v57, 1  ;;  %v12087_v30 = vsel %vm422_vm2, %v1455_v61, %v1456_v15 }
 0x47e   :  { %v1329_v39 = vadd.f32 %v1328_v23, %v1051_v27  ;;  %v1400_v6 = vadd.f32 %v1399_v8, %v1327_v44  ;;  %v12070_v10 = vmax.f32 %v1398_v51, 0.0  ;;  %v12079_v23 = vsel %vm422_vm2, %v1452_v47, %v1453_v62 }
 0x47f   :  { %v1330_v28 = vpop.f32.mrf.mxu0 }
 0x480   :  { %v1331_v35 = vadd.f32 %v1330_v28, %v1055_v12  ;;  %v1402_v58 = vadd.f32 %v1401_v11, %v1329_v39  ;;  %v12076_v8 = vmax.f32 %v1400_v6, 0.0  ;;  %v1466_v24 = vrot.slane %v12070_v10, 1 }
 0x481   :  { %v1334_v36 = vpop.f32.mrf.mxu0 }
 0x482   :  { %v1335_v40 = vadd.f32 %v1334_v36, %v1051_v27  ;;  %v1404_v55 = vadd.f32 %v1403_v17, %v1331_v35  ;;  %v1458_v17 = vrot.slane %v12060_v53, 1  ;;  %v1426_v20 = vmax.f32 %v1402_v58, 0.0 }
 0x483   :  { %v1336_v45 = vpop.f32.mrf.mxu0  ;;  %v12094_v35 = vsel %vm422_vm2, %v1456_v15, %v1460_v18  ;;  %v1468_v36 = vrot.slane %v12076_v8, 1  ;;  %v1467_v44 = vsel %vm422_vm2, %v1462_v19, %v1466_v24 }
 0x484   :  { %v1408_v48 = vadd.f32 %v1407_v14, %v1335_v40  ;;  %v1337_v41 = vadd.f32 %v1336_v45, %v1055_v12  ;;  %v1427_v11 = vmax.f32 %v1404_v55, 0.0  ;;  %v1464_v14 = vrot.slane %v12068_v63, 1 }
 0x485   :  { %v1338_v56 = vpop.f32.mrf.mxu0  ;;  %v12084_v28 = vsel %vm422_vm2, %v1453_v62, %v1458_v17  ;;  %v1470_v31 = vrot.slane %v1426_v20, 1  ;;  %v12091_v34 = vsel %vm422_vm2, %v1458_v17, %v1462_v19  ;;  %v1528_v6 = vrot.slane %v1426_v20, 2 }
 0x486   :  { %v1410_v54 = vadd.f32 %v1409_v33, %v1337_v41  ;;  %v1339_v52 = vadd.f32 %v1338_v56, %v1051_v27  ;;  %v1428_v49 = vmax.f32 %v1408_v48, 0.0  ;;  %v1413_v27 = vpop.f32.mrf.mxu1  ;;  %v1472_v26 = vrot.slane %v1427_v11, 1 }
 0x487   :  { %v1340_v7 = vpop.f32.mrf.mxu0  ;;  %v1465_v45 = vsel %vm422_vm2, %v1460_v18, %v1464_v14  ;;  %v1471_v58 = vsel %vm422_vm2, %v1466_v24, %v1470_v31  ;;  %v1469_v62 = vsel %vm422_vm2, %v1464_v14, %v1468_v36  ;;  %v1526_v17 = vrot.slane %v12076_v8, 2 }
 0x488   :  { %v1429_v1 = vmax.f32 %v1410_v54, 0.0  ;;  %v1412_v13 = vadd.f32 %v1411_v60, %v1339_v52  ;;  %v1341_v2 = vadd.f32 %v1340_v7, %v1055_v12  ;;  %v1474_v25 = vrot.slane %v1428_v49, 1 }
 0x489   :  { %v1473_v41 = vsel %vm422_vm2, %v1468_v36, %v1472_v26  ;;  %v1532_v55 = vrot.slane %v1428_v49, 2  ;;  %v1530_v54 = vrot.slane %v1427_v11, 2  ;;  %v1503_v19 = vmax.f32 %v12068_v63, %v1469_v62  ;;  %v9924_v62 = vld [vmem:[#allocation14 + $0x90] ss:$12 sps:$4 sm:$0xff]  }
 0x48a   :  { %v1430_v3 = vmax.f32 %v1412_v13, 0.0  ;;  %v1476_v21 = vrot.slane %v1429_v1, 1  ;;  %v1414_v22 = vadd.f32 %v1413_v27, %v1341_v2  ;;  %v1475_v43 = vsel %vm422_vm2, %v1470_v31, %v1474_v25 }
 0x48b   :  { %v1534_v47 = vrot.slane %v1429_v1, 2  ;;  %v1506_v61 = vmax.f32 %v1426_v20, %v1475_v43  ;;  %v1505_v15 = vmax.f32 %v12076_v8, %v1473_v41  ;;  %v1533_v18 = vsel %vm702_vm7, %v1528_v6, %v1532_v55  ;;  %v1432_v41 = vld [vmem:[#allocation26] sm:$0xff] }
 0x48c   :  { %v1478_v12 = vrot.slane %v1430_v3, 1  ;;  %v1431_v16 = vmax.f32 %v1414_v22, 0.0  ;;  %v1477_v39 = vsel %vm422_vm2, %v1472_v26, %v1476_v21  ;;  %v1536_v40 = vrot.slane %v1430_v3, 2 }
 0x48d   :  { %v1507_v60 = vmax.f32 %v1427_v11, %v1477_v39  ;;  %v1524_v11 = vrot.slane %v12070_v10, 2  ;;  %v1522_v20 = vrot.slane %v12068_v63, 2  ;;  %v1564_v3 = vmax.f32 %v1506_v61, %v1533_v18  ;;  %v9929_v61 = vld [vmem:[#allocation14 + $0x214] ss:$12 sps:$4 sm:$0xff]   ;;  %v9947_v18 = vld [vmem:[#allocation14 + $0x1cc] ss:$12 sps:$4 sm:$0xff]  }
 0x48e   :  { %v1479_v32 = vsel %vm422_vm2, %v1474_v25, %v1478_v12  ;;  %v1480_v33 = vrot.slane %v1431_v16, 1  ;;  %v1538_v38 = vrot.slane %v1431_v16, 2  ;;  %v1537_v13 = vsel %vm702_vm7, %v1532_v55, %v1536_v40  ;;  %v1435_v55 = vld [vmem:[#allocation26 + $0x18] sm:$0x3f] }
 0x48f   :  { %v1508_v48 = vmax.f32 %v1428_v49, %v1479_v32  ;;  %v1535_v49 = vsel %vm702_vm7, %v1530_v54, %v1534_v47  ;;  %v1502_v8 = vmax.f32 %v12064_v57, %v1467_v44  ;;  %v1520_v22 = vrot.slane %v12064_v57, 2 }
 0x490   :  { %v1481_v51 = vsel %vm422_vm2, %v1476_v21, %v1480_v33  ;;  %v1539_v52 = vsel %vm702_vm7, %v1534_v47, %v1538_v38  ;;  %v1565_v27 = vmax.f32 %v1507_v60, %v1535_v49  ;;  %v1531_v21 = vsel %vm702_vm7, %v1526_v17, %v1530_v54  ;;  %v9920_v60 = vld [vmem:[#allocation14 + $0xac] ss:$12 sps:$4 sm:$0xff]   ;;  %v9941_v49 = vld [vmem:[#allocation14 + $0x1e4] ss:$12 sps:$4 sm:$0xff]  }
 0x491   :  { %v1509_v56 = vmax.f32 %v1429_v1, %v1481_v51  ;;  %v1566_v2 = vmax.f32 %v1508_v48, %v1537_v13  ;;  %v1504_v1 = vmax.f32 %v12070_v10, %v1471_v58  ;;  %v1563_v14 = vmax.f32 %v1505_v15, %v1531_v21  ;;  %v9921_v58 = vld [vmem:[#allocation14 + $0x228] ss:$12 sps:$4 sm:$0xff]   ;;  %v9923_v54 = vld [vmem:[#allocation14 + $0x22c] ss:$12 sps:$4 sm:$0xff]   ;;  %2478 = vmatprep.subr.bf16.mxu0 %v9920_v60  ;;  %v10010_v60 = vld [vmem:[#allocation14 + $0xc4] ss:$12 sps:$4 sm:$0xff]  }
 0x492   :  { %v1529_v10 = vsel %vm702_vm7, %v1524_v11, %v1528_v6  ;;  %v1501_v24 = vmax.f32 %v12062_v46, %v1465_v45  ;;  %v1518_v25 = vrot.slane %v12062_v46, 2  ;;  %v1527_v63 = vsel %vm702_vm7, %v1522_v20, %v1526_v17  ;;  %v9927_v6 = vld [vmem:[#allocation14 + $0x210] ss:$12 sps:$4 sm:$0xff]   ;;  %v9930_v15 = vld [vmem:[#allocation14 + $0x78] ss:$12 sps:$4 sm:$0xff]  }
 0x493   :  { %v1567_v7 = vmax.f32 %v1509_v56, %v1539_v52  ;;  %v1562_v12 = vmax.f32 %v1504_v1, %v1529_v10  ;;  %v1500_v26 = vmax.f32 %v12060_v53, %v12091_v34  ;;  %v1516_v16 = vrot.slane %v12060_v53, 2  ;;  %v9918_v56 = vld [vmem:[#allocation14 + $0xa8] ss:$12 sps:$4 sm:$0xff]   ;;  %v9933_v17 = vld [vmem:[#allocation14 + $0x1f8] ss:$12 sps:$4 sm:$0xff]  }
 0x494   :  { %v1561_v31 = vmax.f32 %v1503_v19, %v1527_v63  ;;  %v1525_v57 = vsel %vm702_vm7, %v1520_v22, %v1524_v11  ;;  %v1499_v32 = vmax.f32 %v12058_v50, %v12094_v35  ;;  %v1514_v36 = vrot.slane %v12058_v50, 2  ;;  %v9926_v52 = vld [vmem:[#allocation14 + $0x94] ss:$12 sps:$4 sm:$0xff]   ;;  %2479 = vmatpush1.bf16.msra.mxu0 %v9918_v56  ;;  %v9935_v13 = vld [vmem:[#allocation14 + $0x1fc] ss:$12 sps:$4 sm:$0xff]  }
 0x495   :  { %1599 = vmatprep.subr.mxu1 %v1567_v7  ;;  %v1560_v46 = vmax.f32 %v1502_v8, %v1525_v57  ;;  %v1523_v33 = vsel %vm702_vm7, %v1518_v25, %v1522_v20  ;;  %v1498_v38 = vmax.f32 %v12055_v37, %v12084_v28  ;;  %v1511_v34 = vrot.slane %v12055_v37, 2  ;;  %2480 = vmatprep.subr.bf16.mxu0 %v9926_v52  ;;  %v9932_v7 = vld [vmem:[#allocation14 + $0x7c] ss:$12 sps:$4 sm:$0xff]   ;;  %v9936_v1 = vld [vmem:[#allocation14 + $0x60] ss:$12 sps:$4 sm:$0xff]  }
 0x496   :  { %1600 = vmatpush1.msra.mxu1 %v1566_v2  ;;  %v1559_v53 = vmax.f32 %v1501_v24, %v1523_v33  ;;  %v1521_v39 = vsel %vm702_vm7, %v1516_v16, %v1520_v22  ;;  %v1497_v40 = vmax.f32 %v12053_v42, %v12087_v30  ;;  %v1513_v35 = vrot.slane %v12053_v42, 2  ;;  %v9938_v2 = vld [vmem:[#allocation14 + $0x64] ss:$12 sps:$4 sm:$0xff]   ;;  %v9939_v11 = vld [vmem:[#allocation14 + $0x1e0] ss:$12 sps:$4 sm:$0xff]  }
 0x497   :  { %1601 = vmatprep.subr.mxu1 %v1565_v27  ;;  %v1558_v50 = vmax.f32 %v1500_v26, %v1521_v39  ;;  %v1519_v43 = vsel %vm702_vm7, %v1514_v36, %v1518_v25  ;;  %v1496_v44 = vmax.f32 %v12051_v29, %v12079_v23  ;;  %v1510_v28 = vrot.slane %v12051_v29, 2  ;;  %v1433_v29 = vld [vmem:[#allocation26 + $0x8] sm:$0xff]  ;;  %v1434_v23 = vld [vmem:[#allocation26 + $0x10] sm:$0xff]  ;;  %v9942_v19 = vld [vmem:[#allocation14 + $0x48] ss:$12 sps:$4 sm:$0xff]  }
 0x498   :  { %1602 = vmatpush1.msra.mxu1 %v1564_v3  ;;  %v1557_v37 = vmax.f32 %v1499_v32, %v1519_v43  ;;  %v1517_v45 = vsel %vm702_vm7, %v1511_v34, %v1516_v16  ;;  %v1515_v51 = vsel %vm702_vm7, %v1513_v35, %v1514_v36  ;;  %2481 = vmatpush1.bf16.msra.mxu0 %v9924_v62  ;;  %v9944_v27 = vld [vmem:[#allocation14 + $0x4c] ss:$12 sps:$4 sm:$0xff]   ;;  %v9945_v20 = vld [vmem:[#allocation14 + $0x1c8] ss:$12 sps:$4 sm:$0xff]   ;;  %v9948_v8 = vld [vmem:[#allocation14 + $0x30] ss:$12 sps:$4 sm:$0xff]  }
 0x499   :  { %1603 = vmatprep.subr.mxu1 %v1563_v14  ;;  %v1556_v47 = vmax.f32 %v1498_v38, %v1517_v45  ;;  %v1555_v30 = vmax.f32 %v1497_v40, %v1515_v51  ;;  %v1512_v42 = vsel %vm702_vm7, %v1510_v28, %v1511_v34  ;;  %2482 = vmatprep.subr.bf16.mxu0 %v9932_v7  ;;  %v9950_v3 = vld [vmem:[#allocation14 + $0x34] ss:$12 sps:$4 sm:$0xff]   ;;  %v9951_v22 = vld [vmem:[#allocation14 + $0x1b0] ss:$12 sps:$4 sm:$0xff]   ;;  %v9954_v24 = vld [vmem:[#allocation14 + $0x18] ss:$12 sps:$4 sm:$0xff]  }
 0x49a   :  { %1604 = vmatpush1.msra.mxu1 %v1562_v12  ;;  %v1554_v48 = vmax.f32 %v1496_v44, %v1512_v42  ;;  %v9953_v21 = vld [vmem:[#allocation14 + $0x1b4] ss:$12 sps:$4 sm:$0xff]   ;;  %v9956_v14 = vld [vmem:[#allocation14 + $0x1c] ss:$12 sps:$4 sm:$0xff]   ;;  %v9957_v25 = vld [vmem:[#allocation14 + $0x198] ss:$12 sps:$4 sm:$0xff]  }
 0x49b   :  { %1605 = vmatprep.subr.mxu1 %v1561_v31  ;;  %v9959_v10 = vld [vmem:[#allocation14 + $0x19c] ss:$12 sps:$4 sm:$0xff]   ;;  %v9962_v12 = vld [vmem:[#allocation14 + $0x4] ss:$12 sps:$4 sm:$0xff]   ;;  %v9960_v26 = vld [vmem:[#allocation14] ss:$12 sps:$4 sm:$0xff]  }
 0x49c   :  { %1606 = vmatpush1.msra.mxu1 %v1560_v46  ;;  %2483 = vmatpush1.bf16.msra.mxu0 %v9930_v15  ;;  %v9965_v63 = vld [vmem:[#allocation14 + $0x184] ss:$12 sps:$4 sm:$0xff]   ;;  %v9963_v16 = vld [vmem:[#allocation14 + $0x180] ss:$12 sps:$4 sm:$0xff]   ;;  %v9966_v32 = vld [vmem:[#allocation14 + $0x168] ss:$12 sps:$4 sm:$0xff]  }
 0x49d   :  { %1607 = vmatprep.subr.mxu1 %v1559_v53  ;;  %2484 = vmatprep.subr.bf16.mxu0 %v9938_v2  ;;  %v9968_v31 = vld [vmem:[#allocation14 + $0x16c] ss:$12 sps:$4 sm:$0xff]   ;;  %v9969_v36 = vld [vmem:[#allocation14 + $0x2e8] ss:$12 sps:$4 sm:$0xff]   ;;  %v9972_v38 = vld [vmem:[#allocation14 + $0x150] ss:$12 sps:$4 sm:$0xff]  }
 0x49e   :  { %1608 = vmatpush1.msra.mxu1 %v1558_v50  ;;  %v9971_v57 = vld [vmem:[#allocation14 + $0x2ec] ss:$12 sps:$4 sm:$0xff]   ;;  %v9974_v46 = vld [vmem:[#allocation14 + $0x154] ss:$12 sps:$4 sm:$0xff]   ;;  %v9975_v34 = vld [vmem:[#allocation14 + $0x2d0] ss:$12 sps:$4 sm:$0xff]  }
 0x49f   :  { %1609 = vmatprep.subr.mxu1 %v1557_v37  ;;  %v9977_v33 = vld [vmem:[#allocation14 + $0x2d4] ss:$12 sps:$4 sm:$0xff]   ;;  %v9980_v53 = vld [vmem:[#allocation14 + $0x13c] ss:$12 sps:$4 sm:$0xff]   ;;  %v9978_v40 = vld [vmem:[#allocation14 + $0x138] ss:$12 sps:$4 sm:$0xff]  }
 0x4a0   :  { %1610 = vmatpush1.msra.mxu1 %v1556_v47  ;;  %2485 = vmatpush1.bf16.msra.mxu0 %v9936_v1  ;;  %v9983_v39 = vld [vmem:[#allocation14 + $0x2bc] ss:$12 sps:$4 sm:$0xff]   ;;  %v9981_v35 = vld [vmem:[#allocation14 + $0x2b8] ss:$12 sps:$4 sm:$0xff]   ;;  %v9984_v44 = vld [vmem:[#allocation14 + $0x120] ss:$12 sps:$4 sm:$0xff]  }
 0x4a1   :  { %1611 = vmatprep.subr.mxu1 %v1555_v30  ;;  %2486 = vmatprep.subr.bf16.mxu0 %v9944_v27  ;;  %v9986_v50 = vld [vmem:[#allocation14 + $0x124] ss:$12 sps:$4 sm:$0xff]   ;;  %v9987_v28 = vld [vmem:[#allocation14 + $0x2a0] ss:$12 sps:$4 sm:$0xff]   ;;  %v9990_v47 = vld [vmem:[#allocation14 + $0x108] ss:$12 sps:$4 sm:$0xff]  }
 0x4a2   :  { %1612 = vmatpush1.msra.mxu1 %v1554_v48  ;;  %v9989_v43 = vld [vmem:[#allocation14 + $0x2a4] ss:$12 sps:$4 sm:$0xff]   ;;  %v9992_v37 = vld [vmem:[#allocation14 + $0x10c] ss:$12 sps:$4 sm:$0xff]   ;;  %v9993_v51 = vld [vmem:[#allocation14 + $0x288] ss:$12 sps:$4 sm:$0xff]  }
 0x4a3   :  { %8748 = vmatmul.mubr.msk.f32.vlgmr.msra.gmra.mxu1 %vm1568_vm10, %v1432_v41  ;;  %2531 = vmatprep.subr.bf16.mxu1 %v9923_v54  ;;  %v9995_v45 = vld [vmem:[#allocation14 + $0x28c] ss:$12 sps:$4 sm:$0xff]   ;;  %v9998_v30 = vld [vmem:[#allocation14 + $0xf4] ss:$12 sps:$4 sm:$0xff]   ;;  %v9996_v48 = vld [vmem:[#allocation14 + $0xf0] ss:$12 sps:$4 sm:$0xff]  }
 0x4a4   :  { %1651 = vmatprep.mubr.f32.mxu1 %v11455_v0  ;;  %2532 = vmatpush1.bf16.msra.mxu1 %v9921_v58  ;;  %v10001_v42 = vld [vmem:[#allocation14 + $0x274] ss:$12 sps:$4 sm:$0xff]   ;;  %v9999_v41 = vld [vmem:[#allocation14 + $0x270] ss:$12 sps:$4 sm:$0xff]   ;;  %v10005_v56 = vld [vmem:[#allocation14 + $0x258] ss:$12 sps:$4 sm:$0xff]  }
 0x4a5   :  { %2533 = vmatprep.subr.bf16.mxu1 %v9929_v61  ;;  %2487 = vmatpush1.bf16.msra.mxu0 %v9942_v19  ;;  %v10008_v58 = vld [vmem:[#allocation14 + $0xc0] ss:$12 sps:$4 sm:$0xff]  }
 0x4a6   :  { %2488 = vmatprep.subr.bf16.mxu0 %v9950_v3  ;;  %v10011_v7 = vld [vmem:[#allocation14 + $0x240] ss:$12 sps:$4 sm:$0xff]  }
 0x4a7   :  { %8749 = vmatmul.mubr.msk.f32.gmra.mxu1 %vm1568_vm10, %v1433_v29  ;;  %v10004_v29 = vld [vmem:[#allocation14 + $0xdc] ss:$12 sps:$4 sm:$0xff]  }
 0x4a8   :  { %1657 = vmatprep.mubr.f32.mxu1 %v11455_v0  ;;  %2534 = vmatpush1.bf16.msra.mxu1 %v9927_v6 }
 0x4a9   :  { %2535 = vmatprep.subr.bf16.mxu1 %v9935_v13  ;;  %2489 = vmatpush1.bf16.msra.mxu0 %v9948_v8  ;;  %v10013_v13 = vld [vmem:[#allocation14 + $0x244] ss:$12 sps:$4 sm:$0xff]  }
 0x4aa   :  { %2490 = vmatprep.subr.bf16.mxu0 %v9956_v14 }
 0x4ab   :  { %8750 = vmatmul.mubr.msk.f32.gmra.mxu1 %vm1568_vm10, %v1434_v23  ;;  %v10007_v23 = vld [vmem:[#allocation14 + $0x25c] ss:$12 sps:$4 sm:$0xff]  }
 0x4ac   :  { %1663 = vmatprep.mubr.f32.mxu1 %v11455_v0  ;;  %2536 = vmatpush1.bf16.msra.mxu1 %v9933_v17 }
 0x4ad   :  { %2537 = vmatprep.subr.bf16.mxu1 %v9941_v49  ;;  %2491 = vmatpush1.bf16.msra.mxu0 %v9954_v24  ;;  %v10016_v49 = vld [vmem:[#allocation14 + $0x34c] ss:$12 sps:$4 sm:$0xff]  }
 0x4ae   :  { %2492 = vmatprep.subr.bf16.mxu0 %v9962_v12 }
 0x4af   :  { %8751 = vmatmul.mubr.msk.f32.gmra.mxu1 %vm1568_vm10, %v1435_v55  ;;  %v10002_v55 = vld [vmem:[#allocation14 + $0xd8] ss:$12 sps:$4 sm:$0xff]  }
 0x4b0   :  { %2538 = vmatpush1.bf16.msra.mxu1 %v9939_v11  ;;  %v10017_v11 = vld [vmem:[#allocation14 + $0x170] ss:$12 sps:$4 sm:$0xff]  }
 0x4b1   :  { %2539 = vmatprep.subr.bf16.mxu1 %v9947_v18  ;;  %2493 = vmatpush1.bf16.msra.mxu0 %v9960_v26 }
 0x4b2   :  { %2494 = vmatprep.subr.bf16.mxu0 %v9968_v31 }
 0x4b4   :  { %2540 = vmatpush1.bf16.msra.mxu1 %v9945_v20 }
 0x4b5   :  { %2541 = vmatprep.subr.bf16.mxu1 %v9953_v21  ;;  %2495 = vmatpush2.bf16.msra.mxu0 %v9966_v32 }
 0x4b6   :  { %2496 = vmatprep.subr.bf16.mxu0 %v9974_v46 }
 0x4b8   :  { %2542 = vmatpush1.bf16.msra.mxu1 %v9951_v22 }
 0x4b9   :  { %2543 = vmatprep.subr.bf16.mxu1 %v9959_v10  ;;  %2497 = vmatpush2.bf16.msra.mxu0 %v9972_v38 }
 0x4ba   :  { %2498 = vmatprep.subr.bf16.mxu0 %v9980_v53 }
 0x4bc   :  { %2544 = vmatpush1.bf16.msra.mxu1 %v9957_v25 }
 0x4bd   :  { %2545 = vmatprep.subr.bf16.mxu1 %v9965_v63  ;;  %2499 = vmatpush2.bf16.msra.mxu0 %v9978_v40 }
 0x4be   :  { %2500 = vmatprep.subr.bf16.mxu0 %v9986_v50  ;;  %v10020_v50 = vld [vmem:[#allocation14 + $0x334] ss:$12 sps:$4 sm:$0xff]  }
 0x4c0   :  { %2546 = vmatpush1.bf16.msra.mxu1 %v9963_v16 }
 0x4c1   :  { %2547 = vmatprep.subr.bf16.mxu1 %v9971_v57  ;;  %2501 = vmatpush2.bf16.msra.mxu0 %v9984_v44  ;;  %v10021_v44 = vld [vmem:[#allocation14 + $0xb0] ss:$12 sps:$4 sm:$0xff]  }
 0x4c2   :  { %2502 = vmatprep.subr.bf16.mxu0 %v9992_v37  ;;  %v10018_v37 = vld [vmem:[#allocation14 + $0x330] ss:$12 sps:$4 sm:$0xff]  }
 0x4c4   :  { %2548 = vmatpush2.bf16.msra.mxu1 %v9969_v36 }
 0x4c5   :  { %2549 = vmatprep.subr.bf16.mxu1 %v9977_v33  ;;  %2503 = vmatpush2.bf16.msra.mxu0 %v9990_v47 }
 0x4c6   :  { %2504 = vmatprep.subr.bf16.mxu0 %v9998_v30  ;;  %v10026_v30 = vld [vmem:[#allocation14 + $0x98] ss:$12 sps:$4 sm:$0xff]  }
 0x4c8   :  { %2550 = vmatpush2.bf16.msra.mxu1 %v9975_v34 }
 0x4c9   :  { %2551 = vmatprep.subr.bf16.mxu1 %v9983_v39  ;;  %2505 = vmatpush2.bf16.msra.mxu0 %v9996_v48  ;;  %v10014_v39 = vld [vmem:[#allocation14 + $0x348] ss:$12 sps:$4 sm:$0xff]   ;;  %v10027_v48 = vld [vmem:[#allocation14 + $0x140] ss:$12 sps:$4 sm:$0xff]  }
 0x4ca   :  { %2506 = vmatprep.subr.bf16.mxu0 %v10004_v29 }
 0x4cc   :  { %2552 = vmatpush2.bf16.msra.mxu1 %v9981_v35 }
 0x4cd   :  { %2553 = vmatprep.subr.bf16.mxu1 %v9989_v43  ;;  %2507 = vmatpush2.bf16.msra.mxu0 %v10002_v55  ;;  %v10028_v55 = vld [vmem:[#allocation14 + $0x300] ss:$12 sps:$4 sm:$0xff]  }
 0x4ce   :  { %2508 = vmatprep.subr.bf16.mxu0 %v10010_v60 }
 0x4d0   :  { %2554 = vmatpush2.bf16.msra.mxu1 %v9987_v28 }
 0x4d1   :  { %2555 = vmatprep.subr.bf16.mxu1 %v9995_v45  ;;  %2509 = vmatpush2.bf16.msra.mxu0 %v10008_v58  ;;  %v10022_v45 = vld [vmem:[#allocation14 + $0x158] ss:$12 sps:$4 sm:$0xff]   ;;  %v10034_v58 = vld [vmem:[#allocation14 + $0x2f0] ss:$12 sps:$4 sm:$0xff]  }
 0x4d2   :  { %2592 = vmatprep.subr.bf16.mxu0 %v10016_v49  ;;  %v10039_v49 = vld [vmem:[#allocation14 + $0x218] ss:$12 sps:$4 sm:$0xff]  }
 0x4d4   :  { %2556 = vmatpush2.bf16.msra.mxu1 %v9993_v51  ;;  %v10025_v51 = vld [vmem:[#allocation14 + $0x31c] ss:$12 sps:$4 sm:$0xff]  }
 0x4d5   :  { %2557 = vmatprep.subr.bf16.mxu1 %v10001_v42  ;;  %v10023_v42 = vld [vmem:[#allocation14 + $0x318] ss:$12 sps:$4 sm:$0xff]  }
 0x4d8   :  { %2558 = vmatpush2.bf16.msra.mxu1 %v9999_v41  ;;  %v10030_v41 = vld [vmem:[#allocation14 + $0x304] ss:$12 sps:$4 sm:$0xff]  }
 0x4d9   :  { %2559 = vmatprep.subr.bf16.mxu1 %v10007_v23  ;;  %v10031_v23 = vld [vmem:[#allocation14 + $0x80] ss:$12 sps:$4 sm:$0xff]  }
 0x4dc   :  { %2560 = vmatpush2.bf16.msra.mxu1 %v10005_v56  ;;  %v10032_v56 = vld [vmem:[#allocation14 + $0x128] ss:$12 sps:$4 sm:$0xff]  }
 0x4dd   :  { %2561 = vmatprep.subr.bf16.mxu1 %v10013_v13  ;;  %v10038_v13 = vld [vmem:[#allocation14 + $0x2d8] ss:$12 sps:$4 sm:$0xff]  }
 0x4e0   :  { %2562 = vmatpush2.bf16.msra.mxu1 %v10011_v7  ;;  %v10036_v7 = vld [vmem:[#allocation14 + $0x110] ss:$12 sps:$4 sm:$0xff]  }
 0x4e1   :  { %9584 = vmatprep.subr.bf16.mxu1 %v10017_v11  ;;  %v10041_v11 = vld [vmem:[#allocation14 + $0x38] ss:$12 sps:$4 sm:$0xff]  }
 0x563   :  { %v1647_v54 = vpop.f32.mrf.mxu1 }
 0x565   :  { %v1649_v52 = vpop.f32.mrf.mxu1 }
 0x567   :  { %v1653_v61 = vpop.f32.mrf.mxu1 }
 0x568   :  { %v12147_v62 = vpack.c.bf16 %v1653_v61, %v1647_v54 }
 0x569   :  { %v1655_v6 = vpop.f32.mrf.mxu1 }
 0x56a   :  { %v12149_v15 = vpack.c.bf16 %v1655_v6, %v1649_v52  ;;  %v1822_v2 = vshll.u32 %v12147_v62, 16  ;;  %v1820_v21 = vshrl.u32 %v12147_v62, 16  ;;  %v1866_v14 = vrot.slane %v12147_v62, 1  ;;  %v10033_v52 = vld [vmem:[#allocation14 + $0x68] ss:$12 sps:$4 sm:$0xff]  }
 0x56b   :  { %v1659_v17 = vpop.f32.mrf.mxu1  ;;  %v10035_v6 = vld [vmem:[#allocation14 + $0x230] ss:$12 sps:$4 sm:$0xff]  }
 0x56c   :  { %v1824_v18 = vrot.slane %v1822_v2, 1  ;;  %v1834_v19 = vshll.u32 %v12149_v15, 16  ;;  %v1832_v32 = vshrl.u32 %v12149_v15, 16  ;;  %v1869_v61 = vrot.slane %v12149_v15, 1  ;;  %v10037_v2 = vld [vmem:[#allocation14 + $0x50] ss:$12 sps:$4 sm:$0xff]  }
 0x56d   :  { %v1661_v1 = vpop.f32.mrf.mxu1 }
 0x56e   :  { %v1825_v24 = vor.u32 %v1824_v18, %v1820_v21  ;;  %v1836_v25 = vrot.slane %v1834_v19, 1  ;;  %v10044_v18 = vld [vmem:[#allocation14 + $0xe0] ss:$12 sps:$4 sm:$0xff]   ;;  %v10046_v19 = vld [vmem:[#allocation14 + $0x2a8] ss:$12 sps:$4 sm:$0xff]  }
 0x56f   :  { %v1665_v27 = vpop.f32.mrf.mxu1  ;;  %v10047_v21 = vld [vmem:[#allocation14 + $0x1e8] ss:$12 sps:$4 sm:$0xff]  }
 0x570   :  { %v12153_v20 = vpack.c.bf16 %v1665_v27, %v1659_v17  ;;  %v1837_v46 = vor.u32 %v1836_v25, %v1832_v32  ;;  %v10043_v27 = vld [vmem:[#allocation14 + $0x200] ss:$12 sps:$4 sm:$0xff]   ;;  %v10052_v25 = vld [vmem:[#allocation14 + $0x278] ss:$12 sps:$4 sm:$0xff]  }
 0x571   :  { %v1667_v3 = vpop.f32.mrf.mxu1  ;;  %v10059_v32 = vld [vmem:[#allocation14 + $0x338] ss:$12 sps:$4 sm:$0xff]  }
 0x572   :  { %v1673_v8 = vpack.c.bf16 %v1667_v3, %v1661_v1  ;;  %v1827_v22 = vshll.u32 %v12153_v20, 16  ;;  %v12159_v10 = vrot.slane %v12153_v20, 1  ;;  %v1843_v63 = vshrl.u32 %v12153_v20, 16  ;;  %v10040_v1 = vld [vmem:[#allocation14 + $0xf8] ss:$12 sps:$4 sm:$0xff]  }
 0x573   :  { %v10045_v3 = vld [vmem:[#allocation14 + $0x20] ss:$12 sps:$4 sm:$0xff]  }
 0x574   :  { %v1829_v12 = vrot.slane %v1827_v22, 1  ;;  %v12164_v26 = vsel %vm422_vm2, %v1866_v14, %v12159_v10  ;;  %v1839_v16 = vshll.u32 %v1673_v8, 16  ;;  %v1846_v33 = vshrl.u32 %v1673_v8, 16  ;;  %v10050_v22 = vld [vmem:[#allocation14 + $0x290] ss:$12 sps:$4 sm:$0xff]  }
 0x575   :  { %2563 = vmatprep.mubr.bf16.mxu1 %v12164_v26  ;;  %v12191_v54 = vrot.slane %v1673_v8, 1  ;;  %v10049_v14 = vld [vmem:[#allocation14 + $0x8] ss:$12 sps:$4 sm:$0xff]  }
 0x576   :  { %v1830_v31 = vsel %vm347_vm0, %v1825_v24, %v1829_v12  ;;  %v1845_v57 = vor.u32 %v1843_v63, %v1829_v12  ;;  %v1841_v36 = vrot.slane %v1839_v16, 1  ;;  %v10051_v24 = vld [vmem:[#allocation14 + $0x1d0] ss:$12 sps:$4 sm:$0xff]   ;;  %v10053_v12 = vld [vmem:[#allocation14 + $0x1b8] ss:$12 sps:$4 sm:$0xff]  }
 0x577   :  { %1849 = vrot.lane.b32.xlu0 %v1830_v31, %s11435_s30  ;;  %v12197_v17 = vsel %vm422_vm2, %v1869_v61, %v12191_v54  ;;  %v10054_v63 = vld [vmem:[#allocation14 + $0x260] ss:$12 sps:$4 sm:$0xff]   ;;  %v10056_v16 = vld [vmem:[#allocation14 + $0x248] ss:$12 sps:$4 sm:$0xff]  }
 0x578   :  { %1853 = vrot.lane.b32.xlu1 %v1845_v57, %s11435_s30  ;;  %v1842_v38 = vsel %vm347_vm0, %v1837_v46, %v1841_v36  ;;  %v1848_v34 = vor.u32 %v1846_v33, %v1841_v36  ;;  %v10057_v31 = vld [vmem:[#allocation14 + $0x188] ss:$12 sps:$4 sm:$0xff]   ;;  %v10058_v57 = vld [vmem:[#allocation14 + $0x350] ss:$12 sps:$4 sm:$0xff]  }
 0x579   :  { %v10061_v36 = vld [vmem:[#allocation14 + $0x308] ss:$12 sps:$4 sm:$0xff]  }
 0x57b   :  { %1851 = vrot.lane.b32.xlu0 %v1842_v38, %s11435_s30 }
 0x57c   :  { %1855 = vrot.lane.b32.xlu1 %v1848_v34, %s11435_s30  ;;  %s11460_s30 = smov [#allocation2]  }
 0x57d   :  { %s259_s28 = sshll.u32 %s11460_s30, 4  ;;  %s260_s28 = int_to_ptr.vmem [resolvable:$true] %s259_s28 }
 0x57e   :  { %s11338_s27 = scalar_lea.vmem %s260_s28, 18432  ;;  %p11343_p6 = scmp.lt.s32.totalorder %s260_s28, %s260_s28 }
 0x57f   :  { %p11339_p5 = scmp.ne.s32.totalorder %s260_s28, %s11338_s27  ;;  %p11344_p7 = scmp.lt.s32.totalorder %s11338_s27, %s11338_s27 }
 0x581   :  { %p11345_p8 = por %p11344_p7, %p11343_p6 }
 0x583   :  { %p11346_p9 = pnand %p11345_p8, %p11339_p5 }
 0x5e9   :  { %v1850_v53 = vpop.permute.xlu0 %1849 }
 0x5ea   :  { %v1854_v40 = vpop.permute.xlu1 %1853  ;;  %v1875_v35 = vsel %vm1018_vm8, %v12149_v15, %v1850_v53  ;;  %v10042_v15 = vld [vmem:[#allocation14 + $0x2c0] ss:$12 sps:$4 sm:$0xff]  }
 0x5eb   :  { %2510 = vmatprep.mubr.bf16.mxu0 %v1875_v35  ;;  %v12177_v43 = vsel %vm1018_vm8, %v1673_v8, %v1854_v40  ;;  %v10048_v8 = vld [vmem:[#allocation14 + $0xc8] ss:$12 sps:$4 sm:$0xff]  }
 0x5ec   :  { %2511 = vmatmul.mubr.bf16.vlgmr.msra.gmra.mxu0 %v12147_v62 }
 0x5ed   :  { %2593 = vmatpush1.bf16.msra.mxu0 %v10014_v39  ;;  %2520 = vmatprep.mubr.bf16.mxu0 %v12177_v43  ;;  %v1852_v28 = vpop.permute.xlu0 %1851 }
 0x5ee   :  { %v12182_v47 = vsel %vm1018_vm8, %v1850_v53, %v1852_v28  ;;  %2594 = vmatprep.subr.bf16.mxu0 %v10020_v50  ;;  %v1856_v29 = vpop.permute.xlu1 %1855 }
 0x5ef   :  { %2564 = vmatmul.mubr.bf16.vlgmr.msra.gmra.mxu1 %v12182_v47  ;;  %v12188_v60 = vsel %vm1018_vm8, %v1854_v40, %v1856_v29 }
 0x5f0   :  { %9585 = vmatpush3.bf16.msra.mxu1 %v10021_v44  ;;  %2573 = vmatprep.mubr.bf16.mxu1 %v12159_v10 }
 0x5f1   :  { %2595 = vmatpush1.bf16.msra.mxu0 %v10018_v37  ;;  %9586 = vmatprep.subr.bf16.mxu1 %v10022_v45 }
 0x5f2   :  { %2596 = vmatprep.subr.bf16.mxu0 %v10025_v51  ;;  %v12220_v51 = vld [vmem:[#allocation15] sm:$0x7] }
 0x5f3   :  { %v1888_v29 = vrot.slane %v12220_v51, %v12047_v9 }
 0x5f4   :  { %9587 = vmatpush3.bf16.msra.mxu1 %v10026_v30  ;;  %2521 = vmatmul.mubr.bf16.gmra.mxu0 %v12153_v20 }
 0x5f5   :  { %2597 = vmatpush1.bf16.msra.mxu0 %v10023_v42  ;;  %9588 = vmatprep.subr.bf16.mxu1 %v10027_v48  ;;  %v1884_v42 = vrot.slane %v12220_v51, %v12044_v4 }
 0x5f6   :  { %2598 = vmatprep.subr.bf16.mxu0 %v10030_v41  ;;  %2616 = vmatprep.mubr.bf16.mxu0 %v11459_v5 }
 0x5f7   :  { %2574 = vmatmul.mubr.bf16.gmra.mxu1 %v12188_v60 }
 0x5f8   :  { %9589 = vmatpush3.bf16.msra.mxu1 %v10031_v23  ;;  %2669 = vmatprep.mubr.bf16.mxu1 %v1875_v35 }
 0x5f9   :  { %2599 = vmatpush1.bf16.msra.mxu0 %v10028_v55  ;;  %9590 = vmatprep.subr.bf16.mxu1 %v10032_v56 }
 0x5fa   :  { %9612 = vmatprep.subr.bf16.mxu0 %v10034_v58 }
 0x5fc   :  { %9591 = vmatpush3.bf16.msra.mxu1 %v10033_v52  ;;  %8860 = vmatmul.mubr.msk.bf16.vlgmr.msra.gmra.mxu0 %vm1018_vm8, %v12197_v17 }
 0x5fd   :  { %9613 = vmatpush3.bf16.msra.mxu0 %v10035_v6  ;;  %9592 = vmatprep.subr.bf16.mxu1 %v10036_v7 }
 0x5fe   :  { %9614 = vmatprep.subr.bf16.mxu0 %v10038_v13  ;;  %2626 = vmatprep.mubr.bf16.mxu0 %v11459_v5 }
 0x600   :  { %9593 = vmatpush3.bf16.msra.mxu1 %v10037_v2 }
 0x601   :  { %9615 = vmatpush3.bf16.msra.mxu0 %v10039_v49  ;;  %9594 = vmatprep.subr.bf16.mxu1 %v10040_v1 }
 0x602   :  { %9616 = vmatprep.subr.bf16.mxu0 %v10042_v15 }
 0x604   :  { %9595 = vmatpush3.bf16.msra.mxu1 %v10041_v11  ;;  %8861 = vmatmul.mubr.msk.bf16.gmra.mxu0 %vm1018_vm8, %v12191_v54 }
 0x605   :  { %9617 = vmatpush3.bf16.msra.mxu0 %v10043_v27  ;;  %2718 = vmatprep.mubr.bf16.mxu0 %v12164_v26  ;;  %v10055_v26 = vld [vmem:[#allocation14 + $0x1a0] ss:$12 sps:$4 sm:$0xff]  }
 0x606   :  { %9596 = vmatprep.subr.bf16.mxu1 %v10044_v18  ;;  %9618 = vmatprep.subr.bf16.mxu0 %v10046_v19 }
 0x608   :  { %9597 = vmatpush3.bf16.msra.mxu1 %v10045_v3 }
 0x609   :  { %9619 = vmatpush3.bf16.msra.mxu0 %v10047_v21  ;;  %9598 = vmatprep.subr.bf16.mxu1 %v10048_v8 }
 0x60a   :  { %9620 = vmatprep.subr.bf16.mxu0 %v10050_v22 }
 0x60c   :  { %9599 = vmatpush3.bf16.msra.mxu1 %v10049_v14 }
 0x60d   :  { %9621 = vmatpush3.bf16.msra.mxu0 %v10051_v24 }
 0x60e   :  { %9622 = vmatprep.subr.bf16.mxu0 %v10052_v25 }
 0x60f   :  { %2670 = vmatmul.mubr.bf16.vlgmr.msra.gmra.mxu1 %v12147_v62  ;;  %v10060_v62 = vld [vmem:[#allocation14 + $0x320] ss:$12 sps:$4 sm:$0xff]  }
 0x610   :  { %2677 = vmatprep.mubr.bf16.mxu1 %v12177_v43 }
 0x611   :  { %9623 = vmatpush3.bf16.msra.mxu0 %v10053_v12 }
 0x612   :  { %9624 = vmatprep.subr.bf16.mxu0 %v10054_v63 }
 0x615   :  { %9625 = vmatpush3.bf16.msra.mxu0 %v10055_v26 }
 0x616   :  { %9626 = vmatprep.subr.bf16.mxu0 %v10056_v16 }
 0x617   :  { %2678 = vmatmul.mubr.bf16.gmra.mxu1 %v12153_v20  ;;  %v12216_v20 = vld [vmem:[#allocation27] sm:$0xff] }
 0x618   :  { %2887 = vmatprep.mubr.f32.mxu1 %v11455_v0 }
 0x619   :  { %9627 = vmatpush3.bf16.msra.mxu0 %v10057_v31 }
 0x61a   :  { %9778 = vmatprep.subr.bf16.mxu0 %v10058_v57 }
 0x61c   :  { %2719 = vmatmul.mubr.bf16.vlgmr.msra.gmra.mxu0 %v12182_v47 }
 0x61d   :  { %2726 = vmatprep.mubr.bf16.mxu0 %v12159_v10  ;;  %9779 = vmatpush3.bf16.msra.mxu0 %v10058_v57 }
 0x61e   :  { %9780 = vmatprep.subr.bf16.mxu0 %v10059_v32 }
 0x621   :  { %9781 = vmatpush3.bf16.msra.mxu0 %v10059_v32 }
 0x622   :  { %9782 = vmatprep.subr.bf16.mxu0 %v10060_v62 }
 0x624   :  { %2727 = vmatmul.mubr.bf16.gmra.mxu0 %v12188_v60 }
 0x625   :  { %9783 = vmatpush3.bf16.msra.mxu0 %v10060_v62  ;;  %9786 = vmatprep.mubr.msk.bf16.mxu0 %vm1018_vm8, %v12197_v17 }
 0x626   :  { %9784 = vmatprep.subr.bf16.mxu0 %v10061_v36 }
 0x629   :  { %9785 = vmatpush3.bf16.msra.mxu0 %v10061_v36 }
 0x62c   :  { %9787 = vmatmul.mubr.msk.bf16.vlgmr.msra.gmra.mxu0 %vm1018_vm8, %v12191_v54 }
 0x62d   :  { %9798 = vmatprep.mubr.msk.f32.mxu0 %vm2800_vm11, %v12216_v20 }
 0x6ac   :  { %v2512_v10 = vpop.f32.mrf.mxu0 }
 0x6ad   :  { %v2513_v1 = vadd.f32 %v2512_v10, %v1884_v42 }
 0x6ae   :  { %v2514_v46 = vpop.f32.mrf.mxu0 }
 0x6af   :  { %v2565_v33 = vpop.f32.mrf.mxu1  ;;  %v2515_v17 = vadd.f32 %v2514_v46, %v1888_v29 }
 0x6b0   :  { %v2516_v38 = vpop.f32.mrf.mxu0  ;;  %v2566_v25 = vadd.f32 %v2565_v33, %v2513_v1 }
 0x6b1   :  { %v2567_v34 = vpop.f32.mrf.mxu1  ;;  %v2517_v6 = vadd.f32 %v2516_v38, %v1884_v42 }
 0x6b2   :  { %v2518_v53 = vpop.f32.mrf.mxu0  ;;  %v2568_v22 = vadd.f32 %v2567_v34, %v2515_v17 }
 0x6b3   :  { %v2569_v39 = vpop.f32.mrf.mxu1  ;;  %v2519_v61 = vadd.f32 %v2518_v53, %v1888_v29  ;;  %v2797_v53 = vld [vmem:[#allocation27 + $0x8] sm:$0xff] }
 0x6b4   :  { %v2522_v40 = vpop.f32.mrf.mxu0  ;;  %v2570_v21 = vadd.f32 %v2569_v39, %v2517_v6 }
 0x6b5   :  { %v2571_v35 = vpop.f32.mrf.mxu1  ;;  %v2523_v58 = vadd.f32 %v2522_v40, %v1884_v42 }
 0x6b6   :  { %v2524_v50 = vpop.f32.mrf.mxu0  ;;  %v2572_v18 = vadd.f32 %v2571_v35, %v2519_v61  ;;  %v2798_v35 = vld [vmem:[#allocation27 + $0x10] sm:$0xff] }
 0x6b7   :  { %v2575_v44 = vpop.f32.mrf.mxu1  ;;  %v2525_v56 = vadd.f32 %v2524_v50, %v1888_v29 }
 0x6b8   :  { %v2526_v43 = vpop.f32.mrf.mxu0  ;;  %v2576_v15 = vadd.f32 %v2575_v44, %v2523_v58 }
 0x6b9   :  { %v2577_v45 = vpop.f32.mrf.mxu1  ;;  %v2527_v23 = vadd.f32 %v2526_v43, %v1884_v42  ;;  %v1891_v42 = vsub.s32 2, %v12041_v59 }
 0x6ba   :  { %v2528_v28 = vpop.f32.mrf.mxu0  ;;  %v2578_v2 = vadd.f32 %v2577_v45, %v2525_v56 }
 0x6bb   :  { %v2579_v48 = vpop.f32.mrf.mxu1  ;;  %v2529_v60 = vadd.f32 %v2528_v28, %v1888_v29  ;;  %v2799_v28 = vld [vmem:[#allocation27 + $0x18] sm:$0x3f] }
 0x6bc   :  { %v2618_v37 = vpop.f32.mrf.mxu0  ;;  %v2580_v7 = vadd.f32 %v2579_v48, %v2527_v23 }
 0x6bd   :  { %v2581_v54 = vpop.f32.mrf.mxu1  ;;  %v2619_v57 = vadd.f32 %v2618_v37, %v2566_v25 }
 0x6be   :  { %v2620_v47 = vpop.f32.mrf.mxu0  ;;  %v2582_v49 = vadd.f32 %v2581_v54, %v2529_v60 }
 0x6bf   :  { %v2621_v26 = vadd.f32 %v2620_v47, %v2568_v22  ;;  %v2784_v33 = vmax.f32 %v2619_v57, 0.0 }
 0x6c0   :  { %v2622_v30 = vpop.f32.mrf.mxu0 }
 0x6c1   :  { %v2623_v12 = vadd.f32 %v2622_v30, %v2570_v21  ;;  %v2785_v46 = vmax.f32 %v2621_v26, 0.0 }
 0x6c2   :  { %v2624_v41 = vpop.f32.mrf.mxu0 }
 0x6c3   :  { %v2625_v14 = vadd.f32 %v2624_v41, %v2572_v18  ;;  %v2787_v10 = vmax.f32 %v2623_v12, 0.0 }
 0x6c4   :  { %v2628_v55 = vpop.f32.mrf.mxu0 }
 0x6c5   :  { %v2629_v8 = vadd.f32 %v2628_v55, %v2576_v15  ;;  %v2788_v62 = vmax.f32 %v2625_v14, 0.0  ;;  %v1892_v55 = vrot.slane %v12220_v51, %v1891_v42 }
 0x6c6   :  { %v2630_v52 = vpop.f32.mrf.mxu0 }
 0x6c7   :  { %v2631_v19 = vadd.f32 %v2630_v52, %v2578_v2  ;;  %v2790_v32 = vmax.f32 %v2629_v8, 0.0 }
 0x6c8   :  { %v2632_v13 = vpop.f32.mrf.mxu0 }
 0x6c9   :  { %v2633_v11 = vadd.f32 %v2632_v13, %v2580_v7  ;;  %v2791_v16 = vmax.f32 %v2631_v19, 0.0 }
 0x6ca   :  { %v2634_v27 = vpop.f32.mrf.mxu0 }
 0x6cb   :  { %v2635_v3 = vadd.f32 %v2634_v27, %v2582_v49  ;;  %v2793_v63 = vmax.f32 %v2633_v11, 0.0 }
 0x6cd   :  { %v2794_v24 = vmax.f32 %v2635_v3, 0.0 }
 0x6cf   :  { %v9600_v31 = vpop.f32.mrf.mxu1  ;;  %8864 = vmatprep.subr.msk.mxu1 %vm2813_vm12, %v2794_v24 }
 0x6d0   :  { %8865 = vmatpush1.msk.msra.mxu1 %vm2813_vm12, %v2793_v63 }
 0x6d1   :  { %v9601_v36 = vpop.f32.mrf.mxu1  ;;  %2849 = vmatprep.subr.mxu1 %v2791_v16 }
 0x6d2   :  { %2850 = vmatpush1.msra.mxu1 %v2790_v32  ;;  %v9602_v52 = vadd.f32 %v9601_v36, %v9600_v31 }
 0x6d3   :  { %v9603_v38 = vpop.f32.mrf.mxu1  ;;  %2851 = vmatprep.subr.mxu1 %v2788_v62 }
 0x6d4   :  { %2852 = vmatpush1.msra.mxu1 %v2787_v10  ;;  %v2672_v11 = vadd.f32 %v9602_v52, %v1892_v55 }
 0x6d5   :  { %2853 = vmatprep.subr.mxu1 %v2785_v46  ;;  %v9604_v34 = vpop.f32.mrf.mxu1 }
 0x6d6   :  { %2854 = vmatpush1.msra.mxu1 %v2784_v33  ;;  %v9605_v56 = vadd.f32 %v9604_v34, %v9603_v38 }
 0x6d7   :  { %8866 = vmatmul.mubr.msk.f32.vlgmr.msra.gmra.mxu1 %vm2800_vm11, %v12216_v20  ;;  %v9606_v39 = vpop.f32.mrf.mxu1 }
 0x6d8   :  { %2893 = vmatprep.mubr.f32.mxu1 %v11455_v0  ;;  %v2675_v17 = vadd.f32 %v9605_v56, %v1892_v55 }
 0x6d9   :  { %v9607_v50 = vpop.f32.mrf.mxu1 }
 0x6da   :  { %v9608_v41 = vadd.f32 %v9607_v50, %v9606_v39 }
 0x6db   :  { %8867 = vmatmul.mubr.msk.f32.gmra.mxu1 %vm2800_vm11, %v2797_v53  ;;  %v9609_v37 = vpop.f32.mrf.mxu1 }
 0x6dc   :  { %v9628_v40 = vpop.f32.mrf.mxu0  ;;  %2899 = vmatprep.mubr.f32.mxu1 %v11455_v0  ;;  %v2680_v61 = vadd.f32 %v9608_v41, %v1892_v55 }
 0x6dd   :  { %v9610_v47 = vpop.f32.mrf.mxu1 }
 0x6de   :  { %v9629_v43 = vpop.f32.mrf.mxu0  ;;  %v9611_v29 = vadd.f32 %v9610_v47, %v9609_v37 }
 0x6df   :  { %8868 = vmatmul.mubr.msk.f32.gmra.mxu1 %vm2800_vm11, %v2798_v35  ;;  %v9630_v2 = vadd.f32 %v9629_v43, %v9628_v40 }
 0x6e0   :  { %v9631_v44 = vpop.f32.mrf.mxu0  ;;  %2905 = vmatprep.mubr.f32.mxu1 %v11455_v0  ;;  %v2683_v6 = vadd.f32 %v9611_v29, %v1892_v55 }
 0x6e1   :  { %v2721_v51 = vadd.f32 %v9630_v2, %v2672_v11 }
 0x6e2   :  { %v9632_v20 = vpop.f32.mrf.mxu0 }
 0x6e3   :  { %8869 = vmatmul.mubr.msk.f32.gmra.mxu1 %vm2800_vm11, %v2799_v28  ;;  %v9633_v7 = vadd.f32 %v9632_v20, %v9631_v44 }
 0x6e4   :  { %v9634_v45 = vpop.f32.mrf.mxu0 }
 0x6e5   :  { %v2724_v19 = vadd.f32 %v9633_v7, %v2675_v17 }
 0x6e6   :  { %v9635_v30 = vpop.f32.mrf.mxu0 }
 0x6e7   :  { %v9636_v60 = vadd.f32 %v9635_v30, %v9634_v45 }
 0x6e8   :  { %v9637_v48 = vpop.f32.mrf.mxu0 }
 0x6e9   :  { %v2729_v49 = vadd.f32 %v9636_v60, %v2680_v61 }
 0x6ea   :  { %v9638_v23 = vpop.f32.mrf.mxu0 }
 0x6eb   :  { %v9639_v58 = vadd.f32 %v9638_v23, %v9637_v48 }
 0x6ec   :  { %v9788_v54 = vpop.f32.mrf.mxu0 }
 0x6ed   :  { %v2732_v1 = vadd.f32 %v9639_v58, %v2683_v6  ;;  %v2778_v27 = vadd.f32 %v9788_v54, %v2729_v49 }
 0x6ee   :  { %v2769_v13 = vpop.f32.mrf.mxu0 }
 0x6ef   :  { %v2792_v22 = vmax.f32 %v2778_v27, 0.0  ;;  %v2770_v14 = vadd.f32 %v2769_v13, %v2721_v51 }
 0x6f0   :  { %v9789_v15 = vpop.f32.mrf.mxu0 }
 0x6f1   :  { %v2781_v18 = vadd.f32 %v9789_v15, %v2732_v1  ;;  %v2786_v25 = vmax.f32 %v2770_v14, 0.0 }
 0x6f2   :  { %v2772_v3 = vpop.f32.mrf.mxu0 }
 0x6f3   :  { %v2795_v21 = vmax.f32 %v2781_v18, 0.0  ;;  %v2773_v8 = vadd.f32 %v2772_v3, %v2724_v19 }
 0x6f5   :  { %9790 = vmatprep.subr.msk.mxu0 %vm2813_vm12, %v2795_v21  ;;  %v2789_v24 = vmax.f32 %v2773_v8, 0.0 }
 0x6f6   :  { %9791 = vmatpush3.msk.msra.mxu0 %vm2813_vm12, %v2795_v21 }
 0x6f7   :  { %9792 = vmatprep.subr.mxu0 %v2792_v22 }
 0x6f8   :  { %9793 = vmatpush3.msra.mxu0 %v2792_v22 }
 0x6f9   :  { %9794 = vmatprep.subr.mxu0 %v2789_v24 }
 0x6fa   :  { %9795 = vmatpush3.msra.mxu0 %v2789_v24 }
 0x6fb   :  { %9796 = vmatprep.subr.mxu0 %v2786_v25 }
 0x6fc   :  { %9797 = vmatpush3.msra.mxu0 %v2786_v25 }
 0x6fd   :  { %9799 = vmatmul.mubr.msk.f32.vlgmr.msra.gmra.mxu0 %vm2800_vm11, %v2797_v53 }
 0x6fe   :  { %9801 = vmatprep.mubr.msk.f32.mxu0 %vm2800_vm11, %v2798_v35 }
 0x701   :  { %9802 = vmatmul.mubr.msk.f32.gmra.mxu0 %vm2800_vm11, %v2799_v28 }
 0x702   :  { %11349 = shalt.err (!%p11346_p9)  }
 0x703   :  { %262 = dma.hbm_to_vmem [thread:$0]  %s12603_s19, 18432, %s260_s28, [#allocation5] }
 0x704   :  { %s11358_s7 = scalar_lea.vmem %s272_s2, 12288  ;;  %p11363_p11 = scmp.lt.s32.totalorder %s272_s2, %s272_s2 }
 0x705   :  { %p11359_p10 = scmp.ne.s32.totalorder %s272_s2, %s11358_s7  ;;  %p11364_p12 = scmp.lt.s32.totalorder %s11358_s7, %s11358_s7 }
 0x707   :  { %p11365_p13 = por %p11364_p12, %p11363_p11 }
 0x709   :  { %p11366_p0 = pnand %p11365_p13, %p11359_p10 }
 0x70b   :  { %11369 = shalt.err (!%p11366_p0)  }
 0x70c   :  { %274 = dma.hbm_to_vmem [thread:$0]  %s12604_s20, 12288, %s272_s2, [#allocation5 + $0x1] }
 0x70d   :  { %s11462_s29 = smov [#allocation4]  }
 0x70e   :  { %s283_s4 = sshll.u32 %s11462_s29, 4  ;;  %s284_s4 = int_to_ptr.vmem [resolvable:$true] %s283_s4 }
 0x70f   :  { %s11378_s14 = scalar_lea.vmem %s284_s4, 49152  ;;  %p11383_p2 = scmp.lt.s32.totalorder %s284_s4, %s284_s4 }
 0x710   :  { %p11379_p1 = scmp.ne.s32.totalorder %s284_s4, %s11378_s14  ;;  %p11384_p3 = scmp.lt.s32.totalorder %s11378_s14, %s11378_s14 }
 0x712   :  { %p11385_p4 = por %p11384_p3, %p11383_p2 }
 0x714   :  { %p11386_p5 = pnand %p11385_p4, %p11379_p1 }
 0x716   :  { %11389 = shalt.err (!%p11386_p5)  }
 0x717   :  { %286 = dma.hbm_to_vmem [thread:$0]  %s12605_s21, 49152, %s284_s4, [#allocation5 + $0x2] }
 0x797   :  { %v2889_v12 = vpop.f32.mrf.mxu1 }
 0x799   :  { %v2891_v63 = vpop.f32.mrf.mxu1 }
 0x79b   :  { %v2895_v26 = vpop.f32.mrf.mxu1 }
 0x79c   :  { %v12254_v16 = vpack.c.bf16 %v2895_v26, %v2889_v12 }
 0x79d   :  { %v2897_v31 = vpop.f32.mrf.mxu1 }
 0x79e   :  { %v12256_v57 = vpack.c.bf16 %v2897_v31, %v2891_v63 }
 0x79f   :  { %v2901_v32 = vpop.f32.mrf.mxu1 }
 0x7a1   :  { %v2903_v62 = vpop.f32.mrf.mxu1 }
 0x7a3   :  { %v2907_v36 = vpop.f32.mrf.mxu1 }
 0x7a4   :  { %v12258_v10 = vpack.c.bf16 %v2907_v36, %v2901_v32 }
 0x7a5   :  { %v2909_v46 = vpop.f32.mrf.mxu1 }
 0x7a6   :  { %v12260_v38 = vpack.c.bf16 %v2909_v46, %v2903_v62 }
 0x7bd   :  { %v9800_v33 = vpop.f32.mrf.mxu0 }
 0x7bf   :  { %v2978_v34 = vpop.f32.mrf.mxu0 }
 0x7c0   :  { %v12262_v53 = vpack.c.bf16 %v9800_v33, %v2978_v34 }
 0x7c1   :  { %v9803_v39 = vpop.f32.mrf.mxu0 }
 0x7c3   :  { %v2988_v40 = vpop.f32.mrf.mxu0 }
 0x7c4   :  { %v12264_v35 = vpack.c.bf16 %v9803_v39, %v2988_v40 }
 0x7c5   :  { %11426 = dma.done.wait [#allocation5], 18432 }
 0x7c6   :  { %11427 = vsyncadd [#allocation5], 4294948864  ;;  %3987 = vmatprep.mubr.bf16.mxu1 %v12256_v57  ;;  %v3153_v50 = vshrl.u32 %v12254_v16, 16  ;;  %v3155_v43 = vshll.u32 %v12254_v16, 16  ;;  %v3160_v44 = vshll.u32 %v12258_v10, 16 }
 0x7c7   :  { %v10062_v47 = vld [vmem:[#allocation2 + $0x74] ss:$8 sps:$4 sm:$0xff]   ;;  %v10064_v30 = vld [vmem:[#allocation2 + $0x70] ss:$8 sps:$4 sm:$0xff]   ;;  %v10068_v29 = vld [vmem:[#allocation2 + $0x64] ss:$8 sps:$4 sm:$0xff]  }
 0x7c8   :  { %v3157_v28 = vrot.slane %v3155_v43, 1  ;;  %v12270_v37 = vrot.slane %v3160_v44, 1  ;;  %3955 = vmatprep.subr.bf16.mxu1 %v10062_v47  ;;  %v10065_v48 = vld [vmem:[#allocation2 + $0x174] ss:$8 sps:$4 sm:$0xff]   ;;  %v10067_v41 = vld [vmem:[#allocation2 + $0x170] ss:$8 sps:$4 sm:$0xff]  }
 0x7c9   :  { %3956 = vmatpush1.bf16.msra.mxu1 %v10064_v30  ;;  %v10070_v23 = vld [vmem:[#allocation2 + $0x60] ss:$8 sps:$4 sm:$0xff]   ;;  %4008 = vmatprep.subr.bf16.mxu0 %v10065_v48  ;;  %v10071_v55 = vld [vmem:[#allocation2 + $0x164] ss:$8 sps:$4 sm:$0xff]   ;;  %v10074_v60 = vld [vmem:[#allocation2 + $0x54] ss:$8 sps:$4 sm:$0xff]  }
 0x7ca   :  { %v3158_v20 = vor.u32 %v3157_v28, %v3153_v50  ;;  %4009 = vmatpush1.bf16.msra.mxu0 %v10067_v41  ;;  %3957 = vmatprep.subr.bf16.mxu1 %v10068_v29  ;;  %v10073_v56 = vld [vmem:[#allocation2 + $0x160] ss:$8 sps:$4 sm:$0xff]   ;;  %v10076_v58 = vld [vmem:[#allocation2 + $0x50] ss:$8 sps:$4 sm:$0xff]   ;;  %v10077_v54 = vld [vmem:[#allocation2 + $0x154] ss:$8 sps:$4 sm:$0xff]  }
 0x7cb   :  { %4010 = vmatprep.subr.bf16.mxu0 %v10071_v55  ;;  %v10080_v52 = vld [vmem:[#allocation2 + $0x44] ss:$8 sps:$4 sm:$0xff]   ;;  %v10079_v61 = vld [vmem:[#allocation2 + $0x150] ss:$8 sps:$4 sm:$0xff]   ;;  %v10082_v7 = vld [vmem:[#allocation2 + $0x40] ss:$8 sps:$4 sm:$0xff]  }
 0x7cc   :  { %v3163_v45 = vsel %vm347_vm0, %v3158_v20, %v12270_v37  ;;  %v10083_v6 = vld [vmem:[#allocation2 + $0x144] ss:$8 sps:$4 sm:$0xff]   ;;  %v10086_v13 = vld [vmem:[#allocation2 + $0x34] ss:$8 sps:$4 sm:$0xff]   ;;  %v10085_v17 = vld [vmem:[#allocation2 + $0x140] ss:$8 sps:$4 sm:$0xff]  }
 0x7cd   :  { %4040 = vmatprep.mubr.bf16.mxu0 %v3163_v45  ;;  %3958 = vmatpush1.bf16.msra.mxu1 %v10070_v23  ;;  %v10089_v2 = vld [vmem:[#allocation2 + $0x134] ss:$8 sps:$4 sm:$0xff]   ;;  %v10088_v49 = vld [vmem:[#allocation2 + $0x30] ss:$8 sps:$4 sm:$0xff]   ;;  %v10092_v1 = vld [vmem:[#allocation2 + $0x24] ss:$8 sps:$4 sm:$0xff]  }
 0x7ce   :  { %3959 = vmatprep.subr.bf16.mxu1 %v10074_v60  ;;  %4011 = vmatpush1.bf16.msra.mxu0 %v10073_v56  ;;  %v10091_v15 = vld [vmem:[#allocation2 + $0x130] ss:$8 sps:$4 sm:$0xff]   ;;  %v10095_v11 = vld [vmem:[#allocation2 + $0x124] ss:$8 sps:$4 sm:$0xff]   ;;  %v10094_v27 = vld [vmem:[#allocation2 + $0x20] ss:$8 sps:$4 sm:$0xff]  }
 0x7cf   :  { %4012 = vmatprep.subr.bf16.mxu0 %v10077_v54  ;;  %v10098_v18 = vld [vmem:[#allocation2 + $0x14] ss:$8 sps:$4 sm:$0xff]   ;;  %v10097_v19 = vld [vmem:[#allocation2 + $0x120] ss:$8 sps:$4 sm:$0xff]   ;;  %v10100_v51 = vld [vmem:[#allocation2 + $0x10] ss:$8 sps:$4 sm:$0xff]  }
 0x7d0   :  { %v10101_v3 = vld [vmem:[#allocation2 + $0x114] ss:$8 sps:$4 sm:$0xff]   ;;  %v10104_v21 = vld [vmem:[#allocation2 + $0x4] ss:$8 sps:$4 sm:$0xff]   ;;  %v10103_v8 = vld [vmem:[#allocation2 + $0x110] ss:$8 sps:$4 sm:$0xff]  }
 0x7d1   :  { %3960 = vmatpush1.bf16.msra.mxu1 %v10076_v58  ;;  %v10107_v22 = vld [vmem:[#allocation2 + $0x104] ss:$8 sps:$4 sm:$0xff]   ;;  %v10106_v14 = vld [vmem:[#allocation2] ss:$8 sps:$4 sm:$0xff]   ;;  %v10110_v24 = vld [vmem:[#allocation2 + $0xf4] ss:$8 sps:$4 sm:$0xff]  }
 0x7d2   :  { %3961 = vmatprep.subr.bf16.mxu1 %v10080_v52  ;;  %4013 = vmatpush1.bf16.msra.mxu0 %v10079_v61  ;;  %v10109_v25 = vld [vmem:[#allocation2 + $0x100] ss:$8 sps:$4 sm:$0xff]   ;;  %v10113_v12 = vld [vmem:[#allocation2 + $0x1f4] ss:$8 sps:$4 sm:$0xff]   ;;  %v10112_v63 = vld [vmem:[#allocation2 + $0xf0] ss:$8 sps:$4 sm:$0xff]  }
 0x7d3   :  { %4014 = vmatprep.subr.bf16.mxu0 %v10083_v6  ;;  %v10116_v26 = vld [vmem:[#allocation2 + $0xe4] ss:$8 sps:$4 sm:$0xff]   ;;  %v10115_v31 = vld [vmem:[#allocation2 + $0x1f0] ss:$8 sps:$4 sm:$0xff]   ;;  %v10118_v62 = vld [vmem:[#allocation2 + $0xe0] ss:$8 sps:$4 sm:$0xff]  }
 0x7d4   :  { %v10119_v32 = vld [vmem:[#allocation2 + $0x1e4] ss:$8 sps:$4 sm:$0xff]   ;;  %v10122_v36 = vld [vmem:[#allocation2 + $0xd4] ss:$8 sps:$4 sm:$0xff]   ;;  %v10121_v46 = vld [vmem:[#allocation2 + $0x1e0] ss:$8 sps:$4 sm:$0xff]  }
 0x7d5   :  { %3962 = vmatpush1.bf16.msra.mxu1 %v10082_v7  ;;  %v10125_v33 = vld [vmem:[#allocation2 + $0x1d4] ss:$8 sps:$4 sm:$0xff]   ;;  %v10124_v34 = vld [vmem:[#allocation2 + $0xd0] ss:$8 sps:$4 sm:$0xff]   ;;  %v10128_v39 = vld [vmem:[#allocation2 + $0xc4] ss:$8 sps:$4 sm:$0xff]  }
 0x7d6   :  { %3963 = vmatprep.subr.bf16.mxu1 %v10086_v13  ;;  %4015 = vmatpush1.bf16.msra.mxu0 %v10085_v17  ;;  %v10127_v40 = vld [vmem:[#allocation2 + $0x1d0] ss:$8 sps:$4 sm:$0xff]   ;;  %v10131_v50 = vld [vmem:[#allocation2 + $0x1c4] ss:$8 sps:$4 sm:$0xff]   ;;  %v10130_v43 = vld [vmem:[#allocation2 + $0xc0] ss:$8 sps:$4 sm:$0xff]  }
 0x7d7   :  { %4016 = vmatprep.subr.bf16.mxu0 %v10089_v2  ;;  %v10134_v44 = vld [vmem:[#allocation2 + $0xb4] ss:$8 sps:$4 sm:$0xff]   ;;  %v10133_v28 = vld [vmem:[#allocation2 + $0x1c0] ss:$8 sps:$4 sm:$0xff]   ;;  %v10136_v45 = vld [vmem:[#allocation2 + $0xb0] ss:$8 sps:$4 sm:$0xff]  }
 0x7d8   :  { %v10137_v20 = vld [vmem:[#allocation2 + $0x1b4] ss:$8 sps:$4 sm:$0xff]   ;;  %v10140_v47 = vld [vmem:[#allocation2 + $0xa4] ss:$8 sps:$4 sm:$0xff]   ;;  %v10139_v30 = vld [vmem:[#allocation2 + $0x1b0] ss:$8 sps:$4 sm:$0xff]  }
 0x7d9   :  { %3964 = vmatpush1.bf16.msra.mxu1 %v10088_v49  ;;  %v10143_v48 = vld [vmem:[#allocation2 + $0x1a4] ss:$8 sps:$4 sm:$0xff]   ;;  %v10142_v41 = vld [vmem:[#allocation2 + $0xa0] ss:$8 sps:$4 sm:$0xff]   ;;  %v10146_v29 = vld [vmem:[#allocation2 + $0x94] ss:$8 sps:$4 sm:$0xff]  }
 0x7da   :  { %3965 = vmatprep.subr.bf16.mxu1 %v10092_v1  ;;  %4017 = vmatpush1.bf16.msra.mxu0 %v10091_v15  ;;  %v10145_v23 = vld [vmem:[#allocation2 + $0x1a0] ss:$8 sps:$4 sm:$0xff]   ;;  %v10149_v55 = vld [vmem:[#allocation2 + $0x194] ss:$8 sps:$4 sm:$0xff]   ;;  %v10148_v56 = vld [vmem:[#allocation2 + $0x90] ss:$8 sps:$4 sm:$0xff]  }
 0x7db   :  { %4018 = vmatprep.subr.bf16.mxu0 %v10095_v11  ;;  %v10152_v60 = vld [vmem:[#allocation2 + $0x84] ss:$8 sps:$4 sm:$0xff]   ;;  %v10151_v58 = vld [vmem:[#allocation2 + $0x190] ss:$8 sps:$4 sm:$0xff]   ;;  %v10154_v52 = vld [vmem:[#allocation2 + $0x80] ss:$8 sps:$4 sm:$0xff]  }
 0x7dc   :  { %v10155_v54 = vld [vmem:[#allocation2 + $0x184] ss:$8 sps:$4 sm:$0xff]   ;;  %v10160_v61 = vld [vmem:[#allocation2 + $0x274] ss:$8 sps:$4 sm:$0xff]   ;;  %v3179_v6 = vshll.u32 %v12262_v53, 16  ;;  %v3188_v13 = vshrl.u32 %v12258_v10, 16 }
 0x7dd   :  { %3966 = vmatpush1.bf16.msra.mxu1 %v10094_v27  ;;  %v10157_v7 = vld [vmem:[#allocation2 + $0x180] ss:$8 sps:$4 sm:$0xff]   ;;  %v10163_v17 = vld [vmem:[#allocation2 + $0x374] ss:$8 sps:$4 sm:$0xff]   ;;  %v10158_v2 = vld [vmem:[#allocation2 + $0x270] ss:$8 sps:$4 sm:$0xff]  }
 0x7de   :  { %3967 = vmatprep.subr.bf16.mxu1 %v10098_v18  ;;  %4019 = vmatpush1.bf16.msra.mxu0 %v10097_v19  ;;  %v3177_v49 = vshrl.u32 %v12262_v53, 16  ;;  %v10166_v1 = vld [vmem:[#allocation2 + $0x264] ss:$8 sps:$4 sm:$0xff]   ;;  %v3181_v15 = vrot.slane %v3179_v6, 1  ;;  %v3184_v11 = vshll.u32 %v12264_v35, 16  ;;  %v3190_v27 = vor.u32 %v3188_v13, %v12270_v37 }
 0x7df   :  { %4020 = vmatprep.subr.bf16.mxu0 %v10101_v3  ;;  %v10161_v18 = vld [vmem:[#allocation2 + $0x370] ss:$8 sps:$4 sm:$0xff]   ;;  %v10169_v19 = vld [vmem:[#allocation2 + $0x364] ss:$8 sps:$4 sm:$0xff]   ;;  %v10164_v3 = vld [vmem:[#allocation2 + $0x260] ss:$8 sps:$4 sm:$0xff]  }
 0x7e0   :  { %v10175_v37 = vld [vmem:[#allocation2 + $0x354] ss:$8 sps:$4 sm:$0xff]   ;;  %v10215_v6 = vld [vmem:[#allocation2 + $0x3e0] ss:$8 sps:$4 sm:$0xff]   ;;  %v10218_v13 = vld [vmem:[#allocation2 + $0x2d0] ss:$8 sps:$4 sm:$0xff]  }
 0x7e1   :  { %3968 = vmatpush1.bf16.msra.mxu1 %v10100_v51  ;;  %v10172_v51 = vld [vmem:[#allocation2 + $0x254] ss:$8 sps:$4 sm:$0xff]  }
 0x7e2   :  { %3969 = vmatprep.subr.bf16.mxu1 %v10104_v21  ;;  %4021 = vmatpush1.bf16.msra.mxu0 %v10103_v8  ;;  %v3182_v21 = vor.u32 %v3181_v15, %v3177_v49  ;;  %v12282_v8 = vrot.slane %v3184_v11, 1  ;;  %v10229_v49 = vld [vmem:[#allocation2 + $0x3c4] ss:$8 sps:$4 sm:$0xff]   ;;  %v10232_v15 = vld [vmem:[#allocation2 + $0x2b4] ss:$8 sps:$4 sm:$0xff]  }
 0x7e3   :  { %4022 = vmatprep.subr.bf16.mxu0 %v10107_v22  ;;  %v10167_v22 = vld [vmem:[#allocation2 + $0x360] ss:$8 sps:$4 sm:$0xff]  }
 0x7e4   :  { %v10227_v11 = vld [vmem:[#allocation2 + $0x3c0] ss:$8 sps:$4 sm:$0xff]  }
 0x7e5   :  { %3970 = vmatpush1.bf16.msra.mxu1 %v10106_v14  ;;  %v3212_v14 = vrot.slane %v12256_v57, 1 }
 0x7e6   :  { %3971 = vmatprep.subr.bf16.mxu1 %v10110_v24  ;;  %4023 = vmatpush1.bf16.msra.mxu0 %v10109_v25  ;;  %v3213_v24 = vrot.slane %v12260_v38, 1  ;;  %v10170_v25 = vld [vmem:[#allocation2 + $0x250] ss:$8 sps:$4 sm:$0xff]  }
 0x7e7   :  { %4024 = vmatprep.subr.bf16.mxu0 %v10113_v12  ;;  %v10178_v12 = vld [vmem:[#allocation2 + $0x244] ss:$8 sps:$4 sm:$0xff]  }
 0x7e9   :  { %3972 = vmatpush2.bf16.msra.mxu1 %v10112_v63  ;;  %v3187_v63 = vsel %vm347_vm0, %v3182_v21, %v12282_v8  ;;  %v10236_v21 = vld [vmem:[#allocation2 + $0x2a0] ss:$8 sps:$4 sm:$0xff]  }
 0x7ea   :  { %3973 = vmatprep.subr.bf16.mxu1 %v10116_v26  ;;  %4025 = vmatpush2.bf16.msra.mxu0 %v10115_v31  ;;  %v10173_v26 = vld [vmem:[#allocation2 + $0x350] ss:$8 sps:$4 sm:$0xff]   ;;  %v10181_v31 = vld [vmem:[#allocation2 + $0x344] ss:$8 sps:$4 sm:$0xff]  }
 0x7eb   :  { %4026 = vmatprep.subr.bf16.mxu0 %v10119_v32  ;;  %v3214_v32 = vsel %vm422_vm2, %v3212_v14, %v3213_v24  ;;  %v10239_v14 = vld [vmem:[#allocation2 + $0x3a0] ss:$8 sps:$4 sm:$0xff]  }
 0x7ed   :  { %3974 = vmatpush2.bf16.msra.mxu1 %v10118_v62  ;;  %v10176_v62 = vld [vmem:[#allocation2 + $0x240] ss:$8 sps:$4 sm:$0xff]  }
 0x7ee   :  { %3975 = vmatprep.subr.bf16.mxu1 %v10122_v36  ;;  %4027 = vmatpush2.bf16.msra.mxu0 %v10121_v46  ;;  %v10184_v36 = vld [vmem:[#allocation2 + $0x234] ss:$8 sps:$4 sm:$0xff]   ;;  %v10179_v46 = vld [vmem:[#allocation2 + $0x340] ss:$8 sps:$4 sm:$0xff]  }
 0x7ef   :  { %4028 = vmatprep.subr.bf16.mxu0 %v10125_v33  ;;  %v10187_v33 = vld [vmem:[#allocation2 + $0x334] ss:$8 sps:$4 sm:$0xff]  }
 0x7f1   :  { %3976 = vmatpush2.bf16.msra.mxu1 %v10124_v34  ;;  %v10182_v34 = vld [vmem:[#allocation2 + $0x230] ss:$8 sps:$4 sm:$0xff]  }
 0x7f2   :  { %3977 = vmatprep.subr.bf16.mxu1 %v10128_v39  ;;  %4029 = vmatpush2.bf16.msra.mxu0 %v10127_v40  ;;  %v10190_v39 = vld [vmem:[#allocation2 + $0x224] ss:$8 sps:$4 sm:$0xff]   ;;  %v10185_v40 = vld [vmem:[#allocation2 + $0x330] ss:$8 sps:$4 sm:$0xff]  }
 0x7f3   :  { %4030 = vmatprep.subr.bf16.mxu0 %v10131_v50  ;;  %v10193_v50 = vld [vmem:[#allocation2 + $0x324] ss:$8 sps:$4 sm:$0xff]  }
 0x7f5   :  { %3978 = vmatpush2.bf16.msra.mxu1 %v10130_v43  ;;  %v10188_v43 = vld [vmem:[#allocation2 + $0x220] ss:$8 sps:$4 sm:$0xff]  }
 0x7f6   :  { %3979 = vmatprep.subr.bf16.mxu1 %v10134_v44  ;;  %4031 = vmatpush2.bf16.msra.mxu0 %v10133_v28  ;;  %v10196_v44 = vld [vmem:[#allocation2 + $0x214] ss:$8 sps:$4 sm:$0xff]   ;;  %v10191_v28 = vld [vmem:[#allocation2 + $0x320] ss:$8 sps:$4 sm:$0xff]  }
 0x7f7   :  { %4032 = vmatprep.subr.bf16.mxu0 %v10137_v20  ;;  %v10199_v20 = vld [vmem:[#allocation2 + $0x314] ss:$8 sps:$4 sm:$0xff]  }
 0x7f9   :  { %3980 = vmatpush2.bf16.msra.mxu1 %v10136_v45  ;;  %v10194_v45 = vld [vmem:[#allocation2 + $0x210] ss:$8 sps:$4 sm:$0xff]  }
 0x7fa   :  { %3981 = vmatprep.subr.bf16.mxu1 %v10140_v47  ;;  %4033 = vmatpush2.bf16.msra.mxu0 %v10139_v30  ;;  %v10202_v47 = vld [vmem:[#allocation2 + $0x204] ss:$8 sps:$4 sm:$0xff]   ;;  %v10197_v30 = vld [vmem:[#allocation2 + $0x310] ss:$8 sps:$4 sm:$0xff]  }
 0x7fb   :  { %4034 = vmatprep.subr.bf16.mxu0 %v10143_v48  ;;  %v10205_v48 = vld [vmem:[#allocation2 + $0x304] ss:$8 sps:$4 sm:$0xff]  }
 0x7fd   :  { %3982 = vmatpush2.bf16.msra.mxu1 %v10142_v41  ;;  %v10200_v41 = vld [vmem:[#allocation2 + $0x200] ss:$8 sps:$4 sm:$0xff]  }
 0x7fe   :  { %3983 = vmatprep.subr.bf16.mxu1 %v10146_v29  ;;  %4035 = vmatpush2.bf16.msra.mxu0 %v10145_v23  ;;  %v10208_v29 = vld [vmem:[#allocation2 + $0x2f4] ss:$8 sps:$4 sm:$0xff]   ;;  %v10203_v23 = vld [vmem:[#allocation2 + $0x300] ss:$8 sps:$4 sm:$0xff]  }
 0x7ff   :  { %4036 = vmatprep.subr.bf16.mxu0 %v10149_v55  ;;  %v10211_v55 = vld [vmem:[#allocation2 + $0x3f4] ss:$8 sps:$4 sm:$0xff]  }
 0x801   :  { %3984 = vmatpush2.bf16.msra.mxu1 %v10148_v56  ;;  %v10206_v56 = vld [vmem:[#allocation2 + $0x2f0] ss:$8 sps:$4 sm:$0xff]  }
 0x802   :  { %3985 = vmatprep.subr.bf16.mxu1 %v10152_v60  ;;  %4037 = vmatpush2.bf16.msra.mxu0 %v10151_v58  ;;  %v10214_v60 = vld [vmem:[#allocation2 + $0x2e4] ss:$8 sps:$4 sm:$0xff]   ;;  %v10209_v58 = vld [vmem:[#allocation2 + $0x3f0] ss:$8 sps:$4 sm:$0xff]  }
 0x803   :  { %4038 = vmatprep.subr.bf16.mxu0 %v10155_v54  ;;  %v10217_v54 = vld [vmem:[#allocation2 + $0x3e4] ss:$8 sps:$4 sm:$0xff]  }
 0x805   :  { %3986 = vmatpush2.bf16.msra.mxu1 %v10154_v52  ;;  %v10212_v52 = vld [vmem:[#allocation2 + $0x2e0] ss:$8 sps:$4 sm:$0xff]  }
 0x806   :  { %4061 = vmatprep.subr.bf16.mxu1 %v10160_v61  ;;  %4039 = vmatpush2.bf16.msra.mxu0 %v10157_v7  ;;  %v10220_v61 = vld [vmem:[#allocation2 + $0x2d4] ss:$8 sps:$4 sm:$0xff]  }
 0x807   :  { %4114 = vmatprep.subr.bf16.mxu0 %v10163_v17  ;;  %v10223_v7 = vld [vmem:[#allocation2 + $0x3d4] ss:$8 sps:$4 sm:$0xff]   ;;  %v10226_v17 = vld [vmem:[#allocation2 + $0x2c4] ss:$8 sps:$4 sm:$0xff]  }
 0x808   :  { %3988 = vmatmul.mubr.bf16.vlgmr.msra.gmra.mxu1 %v12254_v16 }
 0x809   :  { %4062 = vmatpush1.bf16.msra.mxu1 %v10158_v2  ;;  %3997 = vmatprep.mubr.bf16.mxu1 %v12260_v38  ;;  %v10221_v2 = vld [vmem:[#allocation2 + $0x3d0] ss:$8 sps:$4 sm:$0xff]  }
 0x80a   :  { %4041 = vmatmul.mubr.bf16.vlgmr.msra.gmra.mxu0 %v12262_v53  ;;  %4063 = vmatprep.subr.bf16.mxu1 %v10166_v1  ;;  %v10224_v1 = vld [vmem:[#allocation2 + $0x2c0] ss:$8 sps:$4 sm:$0xff]  }
 0x80b   :  { %4115 = vmatpush1.bf16.msra.mxu0 %v10161_v18  ;;  %4050 = vmatprep.mubr.bf16.mxu0 %v3190_v27  ;;  %v10235_v27 = vld [vmem:[#allocation2 + $0x3b4] ss:$8 sps:$4 sm:$0xff]   ;;  %v10230_v18 = vld [vmem:[#allocation2 + $0x2b0] ss:$8 sps:$4 sm:$0xff]  }
 0x80c   :  { %4116 = vmatprep.subr.bf16.mxu0 %v10169_v19  ;;  %v10238_v19 = vld [vmem:[#allocation2 + $0x2a4] ss:$8 sps:$4 sm:$0xff]  }
 0x80d   :  { %4064 = vmatpush1.bf16.msra.mxu1 %v10164_v3  ;;  %v10233_v3 = vld [vmem:[#allocation2 + $0x3b0] ss:$8 sps:$4 sm:$0xff]  }
 0x80e   :  { %4065 = vmatprep.subr.bf16.mxu1 %v10172_v51  ;;  %v10241_v51 = vld [vmem:[#allocation2 + $0x3a4] ss:$8 sps:$4 sm:$0xff]  }
 0x80f   :  { %4117 = vmatpush1.bf16.msra.mxu0 %v10167_v22  ;;  %v3167_v22 = vshll.u32 %v12256_v57, 16 }
 0x810   :  { %4118 = vmatprep.subr.bf16.mxu0 %v10175_v37  ;;  %3998 = vmatmul.mubr.bf16.gmra.mxu1 %v12258_v10  ;;  %v10244_v37 = vld [vmem:[#allocation2 + $0x294] ss:$8 sps:$4 sm:$0xff]  }
 0x811   :  { %4066 = vmatpush1.bf16.msra.mxu1 %v10170_v25  ;;  %4093 = vmatprep.mubr.bf16.mxu1 %v3187_v63  ;;  %v10247_v25 = vld [vmem:[#allocation2 + $0x394] ss:$8 sps:$4 sm:$0xff]   ;;  %v3165_v63 = vshrl.u32 %v12256_v57, 16  ;;  %v3209_v57 = vrot.slane %v12254_v16, 1 }
 0x812   :  { %4067 = vmatprep.subr.bf16.mxu1 %v10178_v12  ;;  %4051 = vmatmul.mubr.bf16.gmra.mxu0 %v12264_v35  ;;  %v10242_v12 = vld [vmem:[#allocation2 + $0x290] ss:$8 sps:$4 sm:$0xff]   ;;  %v10262_v16 = vld [vmem:[#allocation2 + $0x454] ss:$8 sps:$4 sm:$0xff]  }
 0x813   :  { %4119 = vmatpush1.bf16.msra.mxu0 %v10173_v26  ;;  %4146 = vmatprep.mubr.bf16.mxu0 %v3214_v32  ;;  %v3169_v26 = vrot.slane %v3167_v22, 1  ;;  %v10250_v32 = vld [vmem:[#allocation2 + $0x284] ss:$8 sps:$4 sm:$0xff]  }
 0x814   :  { %4120 = vmatprep.subr.bf16.mxu0 %v10181_v31  ;;  %v3172_v31 = vshll.u32 %v12260_v38, 16 }
 0x815   :  { %4068 = vmatpush1.bf16.msra.mxu1 %v10176_v62  ;;  %v10245_v62 = vld [vmem:[#allocation2 + $0x390] ss:$8 sps:$4 sm:$0xff]  }
 0x816   :  { %4069 = vmatprep.subr.bf16.mxu1 %v10184_v36  ;;  %v10253_v36 = vld [vmem:[#allocation2 + $0x384] ss:$8 sps:$4 sm:$0xff]  }
 0x817   :  { %4121 = vmatpush1.bf16.msra.mxu0 %v10179_v46  ;;  %v10248_v46 = vld [vmem:[#allocation2 + $0x280] ss:$8 sps:$4 sm:$0xff]  }
 0x818   :  { %4122 = vmatprep.subr.bf16.mxu0 %v10187_v33  ;;  %v3170_v33 = vor.u32 %v3169_v26, %v3165_v63 }
 0x819   :  { %4070 = vmatpush1.bf16.msra.mxu1 %v10182_v34  ;;  %v3174_v34 = vrot.slane %v3172_v31, 1 }
 0x81a   :  { %4071 = vmatprep.subr.bf16.mxu1 %v10190_v39  ;;  %v3194_v39 = vshrl.u32 %v12264_v35, 16 }
 0x81b   :  { %4123 = vmatpush1.bf16.msra.mxu0 %v10185_v40  ;;  %v10256_v40 = vld [vmem:[#allocation2 + $0x474] ss:$8 sps:$4 sm:$0xff]  }
 0x81c   :  { %4124 = vmatprep.subr.bf16.mxu0 %v10193_v50  ;;  %v10251_v50 = vld [vmem:[#allocation2 + $0x380] ss:$8 sps:$4 sm:$0xff]  }
 0x81d   :  { %4072 = vmatpush1.bf16.msra.mxu1 %v10188_v43  ;;  %v3210_v43 = vrot.slane %v12258_v10, 1 }
 0x81e   :  { %4073 = vmatprep.subr.bf16.mxu1 %v10196_v44  ;;  %v3175_v44 = vsel %vm347_vm0, %v3170_v33, %v3174_v34 }
 0x81f   :  { %4125 = vmatpush1.bf16.msra.mxu0 %v10191_v28  ;;  %v10254_v28 = vld [vmem:[#allocation2 + $0x470] ss:$8 sps:$4 sm:$0xff]  }
 0x820   :  { %4126 = vmatprep.subr.bf16.mxu0 %v10199_v20  ;;  %v3196_v20 = vor.u32 %v3194_v39, %v12282_v8  ;;  %v10260_v8 = vld [vmem:[#allocation2 + $0x450] ss:$8 sps:$4 sm:$0xff]  }
 0x821   :  { %4074 = vmatpush1.bf16.msra.mxu1 %v10194_v45  ;;  %v10259_v45 = vld [vmem:[#allocation2 + $0x464] ss:$8 sps:$4 sm:$0xff]  }
 0x822   :  { %4075 = vmatprep.subr.bf16.mxu1 %v10202_v47  ;;  %v3211_v47 = vsel %vm422_vm2, %v3209_v57, %v3210_v43 }
 0x823   :  { %4127 = vmatpush1.bf16.msra.mxu0 %v10197_v30  ;;  %v3191_v30 = vshrl.u32 %v12260_v38, 16  ;;  %v10271_v38 = vld [vmem:[#allocation2 + $0x424] ss:$8 sps:$4 sm:$0xff]  }
 0x824   :  { %4128 = vmatprep.subr.bf16.mxu0 %v10205_v48  ;;  %v10257_v48 = vld [vmem:[#allocation2 + $0x460] ss:$8 sps:$4 sm:$0xff]  }
 0x825   :  { %4076 = vmatpush1.bf16.msra.mxu1 %v10200_v41  ;;  %v3193_v10 = vor.u32 %v3191_v30, %v3174_v34  ;;  %v10265_v41 = vld [vmem:[#allocation2 + $0x444] ss:$8 sps:$4 sm:$0xff]  }
 0x826   :  { %4077 = vmatprep.subr.bf16.mxu1 %v10208_v29  ;;  %v10263_v29 = vld [vmem:[#allocation2 + $0x440] ss:$8 sps:$4 sm:$0xff]  }
 0x827   :  { %4129 = vmatpush1.bf16.msra.mxu0 %v10203_v23  ;;  %v10268_v23 = vld [vmem:[#allocation2 + $0x434] ss:$8 sps:$4 sm:$0xff]  }
 0x828   :  { %4130 = vmatprep.subr.bf16.mxu0 %v10211_v55  ;;  %v10266_v55 = vld [vmem:[#allocation2 + $0x430] ss:$8 sps:$4 sm:$0xff]  }
 0x829   :  { %4078 = vmatpush2.bf16.msra.mxu1 %v10206_v56  ;;  %v10274_v56 = vld [vmem:[#allocation2 + $0x414] ss:$8 sps:$4 sm:$0xff]  }
 0x82a   :  { %4079 = vmatprep.subr.bf16.mxu1 %v10214_v60  ;;  %v10272_v60 = vld [vmem:[#allocation2 + $0x410] ss:$8 sps:$4 sm:$0xff]  }
 0x82b   :  { %4131 = vmatpush2.bf16.msra.mxu0 %v10209_v58  ;;  %v10277_v58 = vld [vmem:[#allocation2 + $0x404] ss:$8 sps:$4 sm:$0xff]  }
 0x82c   :  { %4132 = vmatprep.subr.bf16.mxu0 %v10217_v54  ;;  %v10275_v54 = vld [vmem:[#allocation2 + $0x400] ss:$8 sps:$4 sm:$0xff]  }
 0x82d   :  { %4080 = vmatpush2.bf16.msra.mxu1 %v10212_v52  ;;  %v3215_v52 = vrot.slane %v12262_v53, 1 }
 0x82e   :  { %4081 = vmatprep.subr.bf16.mxu1 %v10220_v61  ;;  %v3216_v61 = vrot.slane %v12264_v35, 1 }
 0x82f   :  { %4133 = vmatpush2.bf16.msra.mxu0 %v10215_v6 }
 0x830   :  { %4134 = vmatprep.subr.bf16.mxu0 %v10223_v7  ;;  %v3217_v6 = vsel %vm422_vm2, %v3215_v52, %v3216_v61 }
 0x831   :  { %4082 = vmatpush2.bf16.msra.mxu1 %v10218_v13 }
 0x832   :  { %4083 = vmatprep.subr.bf16.mxu1 %v10226_v17 }
 0x833   :  { %4135 = vmatpush2.bf16.msra.mxu0 %v10221_v2 }
 0x834   :  { %4136 = vmatprep.subr.bf16.mxu0 %v10229_v49 }
 0x835   :  { %4084 = vmatpush2.bf16.msra.mxu1 %v10224_v1 }
 0x836   :  { %4085 = vmatprep.subr.bf16.mxu1 %v10232_v15 }
 0x837   :  { %4137 = vmatpush2.bf16.msra.mxu0 %v10227_v11 }
 0x838   :  { %4138 = vmatprep.subr.bf16.mxu0 %v10235_v27 }
 0x839   :  { %4086 = vmatpush2.bf16.msra.mxu1 %v10230_v18 }
 0x83a   :  { %4087 = vmatprep.subr.bf16.mxu1 %v10238_v19 }
 0x83b   :  { %4139 = vmatpush2.bf16.msra.mxu0 %v10233_v3 }
 0x83c   :  { %4140 = vmatprep.subr.bf16.mxu0 %v10241_v51 }
 0x83d   :  { %4088 = vmatpush2.bf16.msra.mxu1 %v10236_v21 }
 0x83e   :  { %4089 = vmatprep.subr.bf16.mxu1 %v10244_v37 }
 0x83f   :  { %4141 = vmatpush2.bf16.msra.mxu0 %v10239_v14 }
 0x840   :  { %4142 = vmatprep.subr.bf16.mxu0 %v10247_v25 }
 0x841   :  { %4090 = vmatpush2.bf16.msra.mxu1 %v10242_v12 }
 0x842   :  { %4091 = vmatprep.subr.bf16.mxu1 %v10250_v32 }
 0x843   :  { %4143 = vmatpush2.bf16.msra.mxu0 %v10245_v62 }
 0x844   :  { %4144 = vmatprep.subr.bf16.mxu0 %v10253_v36  ;;  %v3151_v36 = vld [vmem:[#allocation17] sm:$0x3] }
 0x845   :  { %4092 = vmatpush2.bf16.msra.mxu1 %v10248_v46  ;;  %v3228_v34 = vrot.slane %v3151_v36, %v12044_v4 }
 0x846   :  { %4167 = vmatprep.subr.bf16.mxu1 %v10256_v40  ;;  %v3232_v40 = vrot.slane %v3151_v36, %v12047_v9 }
 0x847   :  { %4145 = vmatpush2.bf16.msra.mxu0 %v10251_v50 }
 0x848   :  { %4094 = vmatmul.mubr.bf16.vlgmr.msra.gmra.mxu1 %v3175_v44 }
 0x849   :  { %4168 = vmatpush1.bf16.msra.mxu1 %v10254_v28  ;;  %4103 = vmatprep.mubr.bf16.mxu1 %v3196_v20 }
 0x84a   :  { %4147 = vmatmul.mubr.bf16.vlgmr.msra.gmra.mxu0 %v3211_v47  ;;  %4169 = vmatprep.subr.bf16.mxu1 %v10259_v45 }
 0x84b   :  { %4156 = vmatprep.mubr.bf16.mxu0 %v3213_v24  ;;  %v10269_v24 = vld [vmem:[#allocation2 + $0x420] ss:$8 sps:$4 sm:$0xff]  }
 0x84d   :  { %4170 = vmatpush1.bf16.msra.mxu1 %v10257_v48 }
 0x84e   :  { %4171 = vmatprep.subr.bf16.mxu1 %v10262_v16 }
 0x850   :  { %4104 = vmatmul.mubr.bf16.gmra.mxu1 %v3193_v10 }
 0x851   :  { %4172 = vmatpush1.bf16.msra.mxu1 %v10260_v8  ;;  %4199 = vmatprep.mubr.bf16.mxu1 %v11459_v5 }
 0x852   :  { %4157 = vmatmul.mubr.bf16.gmra.mxu0 %v3210_v43  ;;  %4173 = vmatprep.subr.bf16.mxu1 %v10265_v41 }
 0x853   :  { %4314 = vmatprep.mubr.f32.mxu0 %v11455_v0 }
 0x855   :  { %4174 = vmatpush1.bf16.msra.mxu1 %v10263_v29 }
 0x856   :  { %4175 = vmatprep.subr.bf16.mxu1 %v10268_v23 }
 0x859   :  { %4176 = vmatpush1.bf16.msra.mxu1 %v10266_v55 }
 0x85a   :  { %4177 = vmatprep.subr.bf16.mxu1 %v10271_v38 }
 0x85d   :  { %4178 = vmatpush1.bf16.msra.mxu1 %v10269_v24 }
 0x85e   :  { %4179 = vmatprep.subr.bf16.mxu1 %v10274_v56 }
 0x861   :  { %4180 = vmatpush1.bf16.msra.mxu1 %v10272_v60 }
 0x862   :  { %4181 = vmatprep.subr.bf16.mxu1 %v10277_v58 }
 0x865   :  { %4182 = vmatpush1.bf16.msra.mxu1 %v10275_v54 }
 0x868   :  { %4200 = vmatmul.mubr.bf16.vlgmr.msra.gmra.mxu1 %v3217_v6 }
 0x869   :  { %4209 = vmatprep.mubr.bf16.mxu1 %v11459_v5 }
 0x870   :  { %4210 = vmatmul.mubr.bf16.gmra.mxu1 %v3216_v61 }
 0x8c8   :  { %v3989_v7 = vpop.f32.mrf.mxu1 }
 0x8c9   :  { %v3990_v23 = vadd.f32 %v3989_v7, %v3228_v34 }
 0x8ca   :  { %v3991_v13 = vpop.f32.mrf.mxu1  ;;  %v4042_v2 = vpop.f32.mrf.mxu0 }
 0x8cb   :  { %v3992_v8 = vadd.f32 %v3991_v13, %v3232_v40 }
 0x8cc   :  { %v3993_v17 = vpop.f32.mrf.mxu1  ;;  %v4044_v15 = vpop.f32.mrf.mxu0 }
 0x8cd   :  { %v3994_v30 = vadd.f32 %v3993_v17, %v3228_v34  ;;  %v4043_v17 = vadd.f32 %v4042_v2, %v3990_v23 }
 0x8ce   :  { %v3995_v49 = vpop.f32.mrf.mxu1  ;;  %v4046_v27 = vpop.f32.mrf.mxu0 }
 0x8cf   :  { %v3996_v47 = vadd.f32 %v3995_v49, %v3232_v40  ;;  %v4047_v54 = vadd.f32 %v4046_v27, %v3994_v30 }
 0x8d0   :  { %v3999_v1 = vpop.f32.mrf.mxu1  ;;  %v4048_v18 = vpop.f32.mrf.mxu0 }
 0x8d1   :  { %v4000_v20 = vadd.f32 %v3999_v1, %v3228_v34  ;;  %v4049_v56 = vadd.f32 %v4048_v18, %v3996_v47  ;;  %v4045_v1 = vadd.f32 %v4044_v15, %v3992_v8 }
 0x8d2   :  { %v4001_v11 = vpop.f32.mrf.mxu1  ;;  %v4052_v35 = vpop.f32.mrf.mxu0 }
 0x8d3   :  { %v4002_v44 = vadd.f32 %v4001_v11, %v3232_v40  ;;  %v4053_v55 = vadd.f32 %v4052_v35, %v4000_v20 }
 0x8d4   :  { %v4003_v53 = vpop.f32.mrf.mxu1  ;;  %v4054_v51 = vpop.f32.mrf.mxu0 }
 0x8d5   :  { %v4004_v50 = vadd.f32 %v4003_v53, %v3228_v34  ;;  %v4055_v41 = vadd.f32 %v4054_v51, %v4002_v44 }
 0x8d6   :  { %v4005_v19 = vpop.f32.mrf.mxu1  ;;  %v4056_v22 = vpop.f32.mrf.mxu0 }
 0x8d7   :  { %v4006_v28 = vadd.f32 %v4005_v19, %v3232_v40  ;;  %v4057_v48 = vadd.f32 %v4056_v22, %v4004_v50 }
 0x8d8   :  { %v4058_v5 = vpop.f32.mrf.mxu0 }
 0x8d9   :  { %v4059_v29 = vadd.f32 %v4058_v5, %v4006_v28 }
 0x908   :  { %v4095_v3 = vpop.f32.mrf.mxu1 }
 0x909   :  { %v4096_v7 = vadd.f32 %v4095_v3, %v4043_v17 }
 0x90a   :  { %v4097_v21 = vpop.f32.mrf.mxu1  ;;  %v4148_v14 = vpop.f32.mrf.mxu0 }
 0x90b   :  { %v4098_v13 = vadd.f32 %v4097_v21, %v4045_v1 }
 0x90c   :  { %v4099_v37 = vpop.f32.mrf.mxu1  ;;  %v4150_v12 = vpop.f32.mrf.mxu0 }
 0x90d   :  { %v4100_v11 = vadd.f32 %v4099_v37, %v4047_v54 }
 0x90e   :  { %v4101_v25 = vpop.f32.mrf.mxu1  ;;  %v4152_v26 = vpop.f32.mrf.mxu0 }
 0x90f   :  { %v4102_v49 = vadd.f32 %v4101_v25, %v4049_v56  ;;  %v4153_v27 = vadd.f32 %v4152_v26, %v4100_v11  ;;  %v4149_v25 = vadd.f32 %v4148_v14, %v4096_v7  ;;  %v4229_v14 = vld [vmem:[#allocation27 + $0x8] sm:$0xff] }
 0x910   :  { %v4105_v63 = vpop.f32.mrf.mxu1  ;;  %v4154_v32 = vpop.f32.mrf.mxu0 }
 0x911   :  { %v4106_v52 = vadd.f32 %v4105_v63, %v4053_v55  ;;  %v4155_v18 = vadd.f32 %v4154_v32, %v4102_v49 }
 0x912   :  { %v4107_v31 = vpop.f32.mrf.mxu1  ;;  %v4158_v46 = vpop.f32.mrf.mxu0 }
 0x913   :  { %v4108_v60 = vadd.f32 %v4107_v31, %v4055_v41  ;;  %v4159_v35 = vadd.f32 %v4158_v46, %v4106_v52 }
 0x914   :  { %v4109_v62 = vpop.f32.mrf.mxu1  ;;  %v4160_v57 = vpop.f32.mrf.mxu0 }
 0x915   :  { %v4110_v38 = vadd.f32 %v4109_v62, %v4057_v48  ;;  %v4161_v51 = vadd.f32 %v4160_v57, %v4108_v60  ;;  %v4228_v57 = vld [vmem:[#allocation27] sm:$0xff] }
 0x916   :  { %v4111_v33 = vpop.f32.mrf.mxu1  ;;  %v4162_v16 = vpop.f32.mrf.mxu0 }
 0x917   :  { %v4112_v58 = vadd.f32 %v4111_v33, %v4059_v29  ;;  %v4163_v53 = vadd.f32 %v4162_v16, %v4110_v38  ;;  %v4151_v33 = vadd.f32 %v4150_v12, %v4098_v13 }
 0x918   :  { %v4164_v61 = vpop.f32.mrf.mxu0 }
 0x919   :  { %v4165_v22 = vadd.f32 %v4164_v61, %v4112_v58 }
 0x928   :  { %v4201_v39 = vpop.f32.mrf.mxu1 }
 0x929   :  { %v4202_v21 = vadd.f32 %v4201_v39, %v4149_v25  ;;  %v4230_v39 = vld [vmem:[#allocation27 + $0x10] sm:$0xff] }
 0x92a   :  { %v4203_v43 = vpop.f32.mrf.mxu1 }
 0x92b   :  { %v4204_v40 = vadd.f32 %v4203_v43, %v4151_v33  ;;  %v4220_v12 = vmax.f32 %v4202_v21, 0.0  ;;  %v4231_v43 = vld [vmem:[#allocation27 + $0x18] sm:$0x3f] }
 0x92c   :  { %v4205_v45 = vpop.f32.mrf.mxu1 }
 0x92d   :  { %v4206_v2 = vadd.f32 %v4205_v45, %v4153_v27  ;;  %v4221_v26 = vmax.f32 %v4204_v40, 0.0 }
 0x92e   :  { %v4207_v10 = vpop.f32.mrf.mxu1 }
 0x92f   :  { %v4208_v34 = vadd.f32 %v4207_v10, %v4155_v18  ;;  %v4222_v32 = vmax.f32 %v4206_v2, 0.0 }
 0x930   :  { %v4211_v24 = vpop.f32.mrf.mxu1 }
 0x931   :  { %v4212_v63 = vadd.f32 %v4211_v24, %v4159_v35  ;;  %v4223_v46 = vmax.f32 %v4208_v34, 0.0 }
 0x932   :  { %v4213_v6 = vpop.f32.mrf.mxu1 }
 0x933   :  { %v4214_v31 = vadd.f32 %v4213_v6, %v4161_v51  ;;  %v4224_v3 = vmax.f32 %v4212_v63, 0.0 }
 0x934   :  { %v4215_v19 = vpop.f32.mrf.mxu1 }
 0x935   :  { %v4216_v5 = vadd.f32 %v4215_v19, %v4163_v53  ;;  %v4225_v50 = vmax.f32 %v4214_v31, 0.0 }
 0x936   :  { %v4217_v62 = vpop.f32.mrf.mxu1 }
 0x937   :  { %v4218_v36 = vadd.f32 %v4217_v62, %v4165_v22  ;;  %v4226_v37 = vmax.f32 %v4216_v5, 0.0 }
 0x939   :  { %v4227_v15 = vmax.f32 %v4218_v36, 0.0 }
 0x93b   :  { %9019 = vmatprep.subr.msk.mxu0 %vm2813_vm12, %v4227_v15 }
 0x93c   :  { %9020 = vmatpush1.msk.msra.mxu0 %vm2813_vm12, %v4226_v37 }
 0x93d   :  { %4276 = vmatprep.subr.mxu0 %v4225_v50 }
 0x93e   :  { %4277 = vmatpush1.msra.mxu0 %v4224_v3 }
 0x93f   :  { %4278 = vmatprep.subr.mxu0 %v4223_v46 }
 0x940   :  { %4279 = vmatpush1.msra.mxu0 %v4222_v32 }
 0x941   :  { %4280 = vmatprep.subr.mxu0 %v4221_v26 }
 0x942   :  { %4281 = vmatpush1.msra.mxu0 %v4220_v12 }
 0x943   :  { %9021 = vmatmul.mubr.msk.f32.vlgmr.msra.gmra.mxu0 %vm2800_vm11, %v4228_v57 }
 0x944   :  { %4320 = vmatprep.mubr.f32.mxu0 %v11455_v0 }
 0x947   :  { %9022 = vmatmul.mubr.msk.f32.gmra.mxu0 %vm2800_vm11, %v4229_v14 }
 0x948   :  { %4326 = vmatprep.mubr.f32.mxu0 %v11455_v0 }
 0x94b   :  { %9023 = vmatmul.mubr.msk.f32.gmra.mxu0 %vm2800_vm11, %v4230_v39 }
 0x94c   :  { %4332 = vmatprep.mubr.f32.mxu0 %v11455_v0 }
 0x94f   :  { %9024 = vmatmul.mubr.msk.f32.gmra.mxu0 %vm2800_vm11, %v4231_v43 }
 0xa03   :  { %v4316_v44 = vpop.f32.mrf.mxu0 }
 0xa05   :  { %v4318_v28 = vpop.f32.mrf.mxu0 }
 0xa07   :  { %v4322_v20 = vpop.f32.mrf.mxu0 }
 0xa08   :  { %v12322_v45 = vpack.c.bf16 %v4322_v20, %v4316_v44 }
 0xa09   :  { %v4324_v47 = vpop.f32.mrf.mxu0 }
 0xa0a   :  { %v12324_v30 = vpack.c.bf16 %v4324_v47, %v4318_v28 }
 0xa0b   :  { %v4328_v48 = vpop.f32.mrf.mxu0 }
 0xa0d   :  { %v4330_v16 = vpop.f32.mrf.mxu0 }
 0xa0f   :  { %v4334_v10 = vpop.f32.mrf.mxu0 }
 0xa10   :  { %v12326_v8 = vpack.c.bf16 %v4334_v10, %v4328_v48 }
 0xa11   :  { %v4336_v41 = vpop.f32.mrf.mxu0 }
 0xa12   :  { %v12328_v29 = vpack.c.bf16 %v4336_v41, %v4330_v16 }
 0xa13   :  { %11428 = dma.done.wait [#allocation5 + $0x1], 12288 }
 0xa14   :  { %11429 = vsyncadd [#allocation5 + $0x1], 4294955008  ;;  %5015 = vmatprep.mubr.bf16.mxu0 %v12324_v30  ;;  %v4457_v23 = vshrl.u32 %v12324_v30, 16  ;;  %v4459_v55 = vshll.u32 %v12324_v30, 16  ;;  %v4464_v38 = vshll.u32 %v12328_v29, 16  ;;  %vm5243_vm13 = vcmask 1041408  }
 0xa15   :  { %v10278_v54 = vld [vmem:[#allocation3 + $0x74] ss:$8 sps:$4 sm:$0xff]   ;;  %v10280_v52 = vld [vmem:[#allocation3 + $0x70] ss:$8 sps:$4 sm:$0xff]   ;;  %v10284_v1 = vld [vmem:[#allocation3 + $0x64] ss:$8 sps:$4 sm:$0xff]  }
 0xa16   :  { %v4461_v24 = vrot.slane %v4459_v55, 1  ;;  %v12334_v56 = vrot.slane %v4464_v38, 1  ;;  %4983 = vmatprep.subr.bf16.mxu0 %v10278_v54  ;;  %v10281_v61 = vld [vmem:[#allocation3 + $0x174] ss:$8 sps:$4 sm:$0xff]   ;;  %v10283_v6 = vld [vmem:[#allocation3 + $0x170] ss:$8 sps:$4 sm:$0xff]  }
 0xa17   :  { %4984 = vmatpush1.bf16.msra.mxu0 %v10280_v52  ;;  %v10286_v49 = vld [vmem:[#allocation3 + $0x60] ss:$8 sps:$4 sm:$0xff]   ;;  %5036 = vmatprep.subr.bf16.mxu1 %v10281_v61  ;;  %v10287_v17 = vld [vmem:[#allocation3 + $0x164] ss:$8 sps:$4 sm:$0xff]   ;;  %v10290_v53 = vld [vmem:[#allocation3 + $0x54] ss:$8 sps:$4 sm:$0xff]  }
 0xa18   :  { %v4462_v60 = vor.u32 %v4461_v24, %v4457_v23  ;;  %5037 = vmatpush1.bf16.msra.mxu1 %v10283_v6  ;;  %4985 = vmatprep.subr.bf16.mxu0 %v10284_v1  ;;  %v10289_v11 = vld [vmem:[#allocation3 + $0x160] ss:$8 sps:$4 sm:$0xff]   ;;  %v10292_v19 = vld [vmem:[#allocation3 + $0x50] ss:$8 sps:$4 sm:$0xff]   ;;  %v10293_v13 = vld [vmem:[#allocation3 + $0x154] ss:$8 sps:$4 sm:$0xff]  }
 0xa19   :  { %5038 = vmatprep.subr.bf16.mxu1 %v10287_v17  ;;  %v10296_v51 = vld [vmem:[#allocation3 + $0x44] ss:$8 sps:$4 sm:$0xff]   ;;  %v10295_v22 = vld [vmem:[#allocation3 + $0x150] ss:$8 sps:$4 sm:$0xff]   ;;  %v10298_v35 = vld [vmem:[#allocation3 + $0x40] ss:$8 sps:$4 sm:$0xff]  }
 0xa1a   :  { %v4467_v58 = vsel %vm347_vm0, %v4462_v60, %v12334_v56  ;;  %v10299_v7 = vld [vmem:[#allocation3 + $0x144] ss:$8 sps:$4 sm:$0xff]   ;;  %v10302_v5 = vld [vmem:[#allocation3 + $0x34] ss:$8 sps:$4 sm:$0xff]   ;;  %v10301_v62 = vld [vmem:[#allocation3 + $0x140] ss:$8 sps:$4 sm:$0xff]  }
 0xa1b   :  { %5068 = vmatprep.mubr.bf16.mxu1 %v4467_v58  ;;  %4986 = vmatpush1.bf16.msra.mxu0 %v10286_v49  ;;  %v10305_v18 = vld [vmem:[#allocation3 + $0x134] ss:$8 sps:$4 sm:$0xff]   ;;  %v10304_v31 = vld [vmem:[#allocation3 + $0x30] ss:$8 sps:$4 sm:$0xff]   ;;  %v10308_v36 = vld [vmem:[#allocation3 + $0x24] ss:$8 sps:$4 sm:$0xff]  }
 0xa1c   :  { %4987 = vmatprep.subr.bf16.mxu0 %v10290_v53  ;;  %5039 = vmatpush1.bf16.msra.mxu1 %v10289_v11  ;;  %v10307_v27 = vld [vmem:[#allocation3 + $0x130] ss:$8 sps:$4 sm:$0xff]   ;;  %v10311_v63 = vld [vmem:[#allocation3 + $0x124] ss:$8 sps:$4 sm:$0xff]   ;;  %v10310_v33 = vld [vmem:[#allocation3 + $0x20] ss:$8 sps:$4 sm:$0xff]  }
 0xa1d   :  { %5040 = vmatprep.subr.bf16.mxu1 %v10293_v13  ;;  %v10314_v34 = vld [vmem:[#allocation3 + $0x14] ss:$8 sps:$4 sm:$0xff]   ;;  %v10313_v15 = vld [vmem:[#allocation3 + $0x120] ss:$8 sps:$4 sm:$0xff]   ;;  %v10316_v2 = vld [vmem:[#allocation3 + $0x10] ss:$8 sps:$4 sm:$0xff]  }
 0xa1e   :  { %v10317_v25 = vld [vmem:[#allocation3 + $0x114] ss:$8 sps:$4 sm:$0xff]   ;;  %v10320_v37 = vld [vmem:[#allocation3 + $0x4] ss:$8 sps:$4 sm:$0xff]   ;;  %v10319_v40 = vld [vmem:[#allocation3 + $0x110] ss:$8 sps:$4 sm:$0xff]  }
 0xa1f   :  { %4988 = vmatpush1.bf16.msra.mxu0 %v10292_v19  ;;  %v10323_v50 = vld [vmem:[#allocation3 + $0x104] ss:$8 sps:$4 sm:$0xff]   ;;  %v10322_v21 = vld [vmem:[#allocation3] ss:$8 sps:$4 sm:$0xff]   ;;  %v10326_v3 = vld [vmem:[#allocation3 + $0xf4] ss:$8 sps:$4 sm:$0xff]  }
 0xa20   :  { %4989 = vmatprep.subr.bf16.mxu0 %v10296_v51  ;;  %5041 = vmatpush1.bf16.msra.mxu1 %v10295_v22  ;;  %v10325_v46 = vld [vmem:[#allocation3 + $0x100] ss:$8 sps:$4 sm:$0xff]   ;;  %v10329_v32 = vld [vmem:[#allocation3 + $0x1f4] ss:$8 sps:$4 sm:$0xff]   ;;  %v10328_v26 = vld [vmem:[#allocation3 + $0xf0] ss:$8 sps:$4 sm:$0xff]  }
 0xa21   :  { %5042 = vmatprep.subr.bf16.mxu1 %v10299_v7  ;;  %v10332_v12 = vld [vmem:[#allocation3 + $0xe4] ss:$8 sps:$4 sm:$0xff]   ;;  %v10331_v57 = vld [vmem:[#allocation3 + $0x1f0] ss:$8 sps:$4 sm:$0xff]   ;;  %v10334_v39 = vld [vmem:[#allocation3 + $0xe0] ss:$8 sps:$4 sm:$0xff]  }
 0xa22   :  { %v10335_v14 = vld [vmem:[#allocation3 + $0x1e4] ss:$8 sps:$4 sm:$0xff]   ;;  %v10338_v43 = vld [vmem:[#allocation3 + $0xd4] ss:$8 sps:$4 sm:$0xff]   ;;  %v10337_v44 = vld [vmem:[#allocation3 + $0x1e0] ss:$8 sps:$4 sm:$0xff]  }
 0xa23   :  { %4990 = vmatpush1.bf16.msra.mxu0 %v10298_v35  ;;  %v10341_v28 = vld [vmem:[#allocation3 + $0x1d4] ss:$8 sps:$4 sm:$0xff]   ;;  %v10340_v20 = vld [vmem:[#allocation3 + $0xd0] ss:$8 sps:$4 sm:$0xff]   ;;  %v10344_v47 = vld [vmem:[#allocation3 + $0xc4] ss:$8 sps:$4 sm:$0xff]  }
 0xa24   :  { %4991 = vmatprep.subr.bf16.mxu0 %v10302_v5  ;;  %5043 = vmatpush1.bf16.msra.mxu1 %v10301_v62  ;;  %v10343_v48 = vld [vmem:[#allocation3 + $0x1d0] ss:$8 sps:$4 sm:$0xff]   ;;  %v10347_v16 = vld [vmem:[#allocation3 + $0x1c4] ss:$8 sps:$4 sm:$0xff]   ;;  %v10346_v10 = vld [vmem:[#allocation3 + $0xc0] ss:$8 sps:$4 sm:$0xff]  }
 0xa25   :  { %5044 = vmatprep.subr.bf16.mxu1 %v10305_v18  ;;  %v10350_v41 = vld [vmem:[#allocation3 + $0xb4] ss:$8 sps:$4 sm:$0xff]   ;;  %v10349_v23 = vld [vmem:[#allocation3 + $0x1c0] ss:$8 sps:$4 sm:$0xff]   ;;  %v10352_v38 = vld [vmem:[#allocation3 + $0xb0] ss:$8 sps:$4 sm:$0xff]  }
 0xa26   :  { %v10353_v55 = vld [vmem:[#allocation3 + $0x1b4] ss:$8 sps:$4 sm:$0xff]   ;;  %v10356_v24 = vld [vmem:[#allocation3 + $0xa4] ss:$8 sps:$4 sm:$0xff]   ;;  %v10355_v60 = vld [vmem:[#allocation3 + $0x1b0] ss:$8 sps:$4 sm:$0xff]  }
 0xa27   :  { %4992 = vmatpush1.bf16.msra.mxu0 %v10304_v31  ;;  %v10359_v58 = vld [vmem:[#allocation3 + $0x1a4] ss:$8 sps:$4 sm:$0xff]   ;;  %v10358_v54 = vld [vmem:[#allocation3 + $0xa0] ss:$8 sps:$4 sm:$0xff]   ;;  %v10362_v52 = vld [vmem:[#allocation3 + $0x94] ss:$8 sps:$4 sm:$0xff]  }
 0xa28   :  { %4993 = vmatprep.subr.bf16.mxu0 %v10308_v36  ;;  %5045 = vmatpush1.bf16.msra.mxu1 %v10307_v27  ;;  %v10361_v61 = vld [vmem:[#allocation3 + $0x1a0] ss:$8 sps:$4 sm:$0xff]   ;;  %v4447_v6 = vshll.u32 %v12322_v45, 16  ;;  %v10365_v1 = vld [vmem:[#allocation3 + $0x194] ss:$8 sps:$4 sm:$0xff]   ;;  %v4445_v11 = vshrl.u32 %v12322_v45, 16 }
 0xa29   :  { %5046 = vmatprep.subr.bf16.mxu1 %v10311_v63  ;;  %v10364_v49 = vld [vmem:[#allocation3 + $0x90] ss:$8 sps:$4 sm:$0xff]   ;;  %v10368_v17 = vld [vmem:[#allocation3 + $0x84] ss:$8 sps:$4 sm:$0xff]   ;;  %v4452_v13 = vshll.u32 %v12326_v8, 16  ;;  %v4471_v5 = vshrl.u32 %v12328_v29, 16 }
 0xa2a   :  { %v10367_v53 = vld [vmem:[#allocation3 + $0x190] ss:$8 sps:$4 sm:$0xff]   ;;  %v4449_v19 = vrot.slane %v4447_v6, 1  ;;  %v10371_v51 = vld [vmem:[#allocation3 + $0x184] ss:$8 sps:$4 sm:$0xff]   ;;  %vm5224_vm14 = vcmask 211968  }
 0xa2b   :  { %4994 = vmatpush1.bf16.msra.mxu0 %v10310_v33  ;;  %v10370_v22 = vld [vmem:[#allocation3 + $0x80] ss:$8 sps:$4 sm:$0xff]   ;;  %v10376_v7 = vld [vmem:[#allocation3 + $0x274] ss:$8 sps:$4 sm:$0xff]   ;;  %v4454_v18 = vrot.slane %v4452_v13, 1  ;;  %v4473_v27 = vor.u32 %v4471_v5, %v12334_v56 }
 0xa2c   :  { %4995 = vmatprep.subr.bf16.mxu0 %v10314_v34  ;;  %5047 = vmatpush1.bf16.msra.mxu1 %v10313_v15  ;;  %v10373_v35 = vld [vmem:[#allocation3 + $0x180] ss:$8 sps:$4 sm:$0xff]   ;;  %v4450_v62 = vor.u32 %v4449_v19, %v4445_v11  ;;  %v10374_v31 = vld [vmem:[#allocation3 + $0x270] ss:$8 sps:$4 sm:$0xff]   ;;  %v10379_v36 = vld [vmem:[#allocation3 + $0x264] ss:$8 sps:$4 sm:$0xff]  }
 0xa2d   :  { %5048 = vmatprep.subr.bf16.mxu1 %v10317_v25  ;;  %v10377_v33 = vld [vmem:[#allocation3 + $0x260] ss:$8 sps:$4 sm:$0xff]   ;;  %v10382_v34 = vld [vmem:[#allocation3 + $0x254] ss:$8 sps:$4 sm:$0xff]   ;;  %v4468_v15 = vshrl.u32 %v12326_v8, 16  ;;  %v4485_v25 = vrot.slane %v12324_v30, 1 }
 0xa2e   :  { %v4455_v63 = vsel %vm347_vm0, %v4450_v62, %v4454_v18  ;;  %v10380_v56 = vld [vmem:[#allocation3 + $0x250] ss:$8 sps:$4 sm:$0xff]  }
 0xa2f   :  { %4996 = vmatpush1.bf16.msra.mxu0 %v10316_v2  ;;  %v4486_v2 = vrot.slane %v12328_v29, 1  ;;  %v10386_v30 = vld [vmem:[#allocation3 + $0x230] ss:$8 sps:$4 sm:$0xff]  }
 0xa30   :  { %4997 = vmatprep.subr.bf16.mxu0 %v10320_v37  ;;  %5049 = vmatpush1.bf16.msra.mxu1 %v10319_v40  ;;  %v10385_v37 = vld [vmem:[#allocation3 + $0x244] ss:$8 sps:$4 sm:$0xff]   ;;  %v4470_v40 = vor.u32 %v4468_v15, %v4454_v18 }
 0xa31   :  { %5050 = vmatprep.subr.bf16.mxu1 %v10323_v50  ;;  %v4487_v50 = vsel %vm422_vm2, %v4485_v25, %v4486_v2 }
 0xa33   :  { %4998 = vmatpush1.bf16.msra.mxu0 %v10322_v21  ;;  %v10383_v21 = vld [vmem:[#allocation3 + $0x240] ss:$8 sps:$4 sm:$0xff]  }
 0xa34   :  { %4999 = vmatprep.subr.bf16.mxu0 %v10326_v3  ;;  %5051 = vmatpush1.bf16.msra.mxu1 %v10325_v46  ;;  %v10388_v3 = vld [vmem:[#allocation3 + $0x234] ss:$8 sps:$4 sm:$0xff]   ;;  %v10391_v46 = vld [vmem:[#allocation3 + $0x224] ss:$8 sps:$4 sm:$0xff]  }
 0xa35   :  { %5052 = vmatprep.subr.bf16.mxu1 %v10329_v32  ;;  %v10389_v32 = vld [vmem:[#allocation3 + $0x220] ss:$8 sps:$4 sm:$0xff]  }
 0xa37   :  { %5000 = vmatpush2.bf16.msra.mxu0 %v10328_v26  ;;  %v10394_v26 = vld [vmem:[#allocation3 + $0x214] ss:$8 sps:$4 sm:$0xff]  }
 0xa38   :  { %5001 = vmatprep.subr.bf16.mxu0 %v10332_v12  ;;  %5053 = vmatpush2.bf16.msra.mxu1 %v10331_v57  ;;  %v10392_v12 = vld [vmem:[#allocation3 + $0x210] ss:$8 sps:$4 sm:$0xff]   ;;  %v10397_v57 = vld [vmem:[#allocation3 + $0x204] ss:$8 sps:$4 sm:$0xff]  }
 0xa39   :  { %5054 = vmatprep.subr.bf16.mxu1 %v10335_v14  ;;  %v10395_v14 = vld [vmem:[#allocation3 + $0x200] ss:$8 sps:$4 sm:$0xff]  }
 0xa3b   :  { %5002 = vmatpush2.bf16.msra.mxu0 %v10334_v39  ;;  %v10400_v39 = vld [vmem:[#allocation3 + $0x2f4] ss:$8 sps:$4 sm:$0xff]  }
 0xa3c   :  { %5003 = vmatprep.subr.bf16.mxu0 %v10338_v43  ;;  %5055 = vmatpush2.bf16.msra.mxu1 %v10337_v44  ;;  %v10398_v43 = vld [vmem:[#allocation3 + $0x2f0] ss:$8 sps:$4 sm:$0xff]   ;;  %v10403_v44 = vld [vmem:[#allocation3 + $0x2e4] ss:$8 sps:$4 sm:$0xff]  }
 0xa3d   :  { %5056 = vmatprep.subr.bf16.mxu1 %v10341_v28  ;;  %v10401_v28 = vld [vmem:[#allocation3 + $0x2e0] ss:$8 sps:$4 sm:$0xff]  }
 0xa3f   :  { %5004 = vmatpush2.bf16.msra.mxu0 %v10340_v20  ;;  %v10406_v20 = vld [vmem:[#allocation3 + $0x2d4] ss:$8 sps:$4 sm:$0xff]  }
 0xa40   :  { %5005 = vmatprep.subr.bf16.mxu0 %v10344_v47  ;;  %5057 = vmatpush2.bf16.msra.mxu1 %v10343_v48  ;;  %v10404_v47 = vld [vmem:[#allocation3 + $0x2d0] ss:$8 sps:$4 sm:$0xff]   ;;  %v10409_v48 = vld [vmem:[#allocation3 + $0x2c4] ss:$8 sps:$4 sm:$0xff]  }
 0xa41   :  { %5058 = vmatprep.subr.bf16.mxu1 %v10347_v16  ;;  %v10407_v16 = vld [vmem:[#allocation3 + $0x2c0] ss:$8 sps:$4 sm:$0xff]  }
 0xa43   :  { %5006 = vmatpush2.bf16.msra.mxu0 %v10346_v10  ;;  %v10412_v10 = vld [vmem:[#allocation3 + $0x2b4] ss:$8 sps:$4 sm:$0xff]  }
 0xa44   :  { %5007 = vmatprep.subr.bf16.mxu0 %v10350_v41  ;;  %5059 = vmatpush2.bf16.msra.mxu1 %v10349_v23  ;;  %v10410_v41 = vld [vmem:[#allocation3 + $0x2b0] ss:$8 sps:$4 sm:$0xff]   ;;  %v10415_v23 = vld [vmem:[#allocation3 + $0x2a4] ss:$8 sps:$4 sm:$0xff]  }
 0xa45   :  { %5060 = vmatprep.subr.bf16.mxu1 %v10353_v55  ;;  %v10413_v55 = vld [vmem:[#allocation3 + $0x2a0] ss:$8 sps:$4 sm:$0xff]  }
 0xa47   :  { %5008 = vmatpush2.bf16.msra.mxu0 %v10352_v38  ;;  %v10418_v38 = vld [vmem:[#allocation3 + $0x294] ss:$8 sps:$4 sm:$0xff]  }
 0xa48   :  { %5009 = vmatprep.subr.bf16.mxu0 %v10356_v24  ;;  %5061 = vmatpush2.bf16.msra.mxu1 %v10355_v60  ;;  %v10416_v24 = vld [vmem:[#allocation3 + $0x290] ss:$8 sps:$4 sm:$0xff]   ;;  %v10421_v60 = vld [vmem:[#allocation3 + $0x284] ss:$8 sps:$4 sm:$0xff]  }
 0xa49   :  { %5062 = vmatprep.subr.bf16.mxu1 %v10359_v58  ;;  %v10419_v58 = vld [vmem:[#allocation3 + $0x280] ss:$8 sps:$4 sm:$0xff]  }
 0xa4b   :  { %5010 = vmatpush2.bf16.msra.mxu0 %v10358_v54  ;;  %v4482_v54 = vrot.slane %v12322_v45, 1 }
 0xa4c   :  { %5011 = vmatprep.subr.bf16.mxu0 %v10362_v52  ;;  %5063 = vmatpush2.bf16.msra.mxu1 %v10361_v61  ;;  %v4483_v52 = vrot.slane %v12326_v8, 1 }
 0xa4d   :  { %5064 = vmatprep.subr.bf16.mxu1 %v10365_v1 }
 0xa4e   :  { %v4484_v61 = vsel %vm422_vm2, %v4482_v54, %v4483_v52 }
 0xa4f   :  { %5012 = vmatpush2.bf16.msra.mxu0 %v10364_v49 }
 0xa50   :  { %5013 = vmatprep.subr.bf16.mxu0 %v10368_v17  ;;  %5065 = vmatpush2.bf16.msra.mxu1 %v10367_v53 }
 0xa51   :  { %5066 = vmatprep.subr.bf16.mxu1 %v10371_v51 }
 0xa53   :  { %5014 = vmatpush2.bf16.msra.mxu0 %v10370_v22  ;;  %v4443_v22 = vld [vmem:[#allocation18] sm:$0x3] }
 0xa54   :  { %5089 = vmatprep.subr.bf16.mxu0 %v10376_v7  ;;  %5067 = vmatpush2.bf16.msra.mxu1 %v10373_v35  ;;  %v4496_v62 = vrot.slane %v4443_v22, %v12044_v4 }
 0xa56   :  { %5016 = vmatmul.mubr.bf16.vlgmr.msra.gmra.mxu0 %v12322_v45 }
 0xa57   :  { %5090 = vmatpush1.bf16.msra.mxu0 %v10374_v31  ;;  %5025 = vmatprep.mubr.bf16.mxu0 %v12328_v29  ;;  %v4500_v29 = vrot.slane %v4443_v22, %v12047_v9 }
 0xa58   :  { %5069 = vmatmul.mubr.bf16.vlgmr.msra.gmra.mxu1 %v4455_v63  ;;  %5091 = vmatprep.subr.bf16.mxu0 %v10379_v36 }
 0xa59   :  { %5078 = vmatprep.mubr.bf16.mxu1 %v4473_v27 }
 0xa5b   :  { %5092 = vmatpush1.bf16.msra.mxu0 %v10377_v33 }
 0xa5c   :  { %5093 = vmatprep.subr.bf16.mxu0 %v10382_v34 }
 0xa5e   :  { %5026 = vmatmul.mubr.bf16.gmra.mxu0 %v12326_v8 }
 0xa5f   :  { %5094 = vmatpush1.bf16.msra.mxu0 %v10380_v56  ;;  %5121 = vmatprep.mubr.bf16.mxu0 %v4487_v50 }
 0xa60   :  { %5095 = vmatprep.subr.bf16.mxu0 %v10385_v37  ;;  %5079 = vmatmul.mubr.bf16.gmra.mxu1 %v4470_v40 }
 0xa61   :  { %5314 = vmatprep.mubr.f32.mxu1 %v11455_v0 }
 0xa63   :  { %5096 = vmatpush1.bf16.msra.mxu0 %v10383_v21 }
 0xa64   :  { %5097 = vmatprep.subr.bf16.mxu0 %v10388_v3 }
 0xa67   :  { %5098 = vmatpush1.bf16.msra.mxu0 %v10386_v30 }
 0xa68   :  { %5099 = vmatprep.subr.bf16.mxu0 %v10391_v46 }
 0xa6b   :  { %5100 = vmatpush1.bf16.msra.mxu0 %v10389_v32 }
 0xa6c   :  { %5101 = vmatprep.subr.bf16.mxu0 %v10394_v26 }
 0xa6f   :  { %5102 = vmatpush1.bf16.msra.mxu0 %v10392_v12 }
 0xa70   :  { %5103 = vmatprep.subr.bf16.mxu0 %v10397_v57 }
 0xa73   :  { %5104 = vmatpush1.bf16.msra.mxu0 %v10395_v14 }
 0xa74   :  { %5105 = vmatprep.subr.bf16.mxu0 %v10400_v39 }
 0xa77   :  { %5106 = vmatpush2.bf16.msra.mxu0 %v10398_v43 }
 0xa78   :  { %5107 = vmatprep.subr.bf16.mxu0 %v10403_v44 }
 0xa7b   :  { %5108 = vmatpush2.bf16.msra.mxu0 %v10401_v28 }
 0xa7c   :  { %5109 = vmatprep.subr.bf16.mxu0 %v10406_v20 }
 0xa7f   :  { %5110 = vmatpush2.bf16.msra.mxu0 %v10404_v47 }
 0xa80   :  { %5111 = vmatprep.subr.bf16.mxu0 %v10409_v48 }
 0xa83   :  { %5112 = vmatpush2.bf16.msra.mxu0 %v10407_v16 }
 0xa84   :  { %5113 = vmatprep.subr.bf16.mxu0 %v10412_v10 }
 0xa87   :  { %5114 = vmatpush2.bf16.msra.mxu0 %v10410_v41 }
 0xa88   :  { %5115 = vmatprep.subr.bf16.mxu0 %v10415_v23 }
 0xa8b   :  { %5116 = vmatpush2.bf16.msra.mxu0 %v10413_v55 }
 0xa8c   :  { %5117 = vmatprep.subr.bf16.mxu0 %v10418_v38 }
 0xa8f   :  { %5118 = vmatpush2.bf16.msra.mxu0 %v10416_v24 }
 0xa90   :  { %5119 = vmatprep.subr.bf16.mxu0 %v10421_v60 }
 0xa93   :  { %5120 = vmatpush2.bf16.msra.mxu0 %v10419_v58 }
 0xa96   :  { %5122 = vmatmul.mubr.bf16.vlgmr.msra.gmra.mxu0 %v4484_v61 }
 0xa97   :  { %5131 = vmatprep.mubr.bf16.mxu0 %v4486_v2 }
 0xa9e   :  { %5132 = vmatmul.mubr.bf16.gmra.mxu0 %v4483_v52 }
 0xb16   :  { %v5017_v6 = vpop.f32.mrf.mxu0 }
 0xb17   :  { %v5018_v34 = vadd.f32 %v5017_v6, %v4496_v62 }
 0xb18   :  { %v5019_v1 = vpop.f32.mrf.mxu0  ;;  %v5070_v17 = vpop.f32.mrf.mxu1 }
 0xb19   :  { %v5020_v15 = vadd.f32 %v5019_v1, %v4500_v29  ;;  %v5071_v30 = vadd.f32 %v5070_v17, %v5018_v34 }
 0xb1a   :  { %v5021_v49 = vpop.f32.mrf.mxu0  ;;  %v5072_v19 = vpop.f32.mrf.mxu1 }
 0xb1b   :  { %v5022_v27 = vadd.f32 %v5021_v49, %v4496_v62  ;;  %v5073_v46 = vadd.f32 %v5072_v19, %v5020_v15 }
 0xb1c   :  { %v5023_v11 = vpop.f32.mrf.mxu0  ;;  %v5074_v45 = vpop.f32.mrf.mxu1 }
 0xb1d   :  { %v5024_v63 = vadd.f32 %v5023_v11, %v4500_v29  ;;  %v5075_v50 = vadd.f32 %v5074_v45, %v5022_v27 }
 0xb1e   :  { %v5027_v53 = vpop.f32.mrf.mxu0  ;;  %v5076_v8 = vpop.f32.mrf.mxu1 }
 0xb1f   :  { %v5028_v36 = vadd.f32 %v5027_v53, %v4496_v62  ;;  %v5077_v21 = vadd.f32 %v5076_v8, %v5024_v63 }
 0xb20   :  { %v5029_v13 = vpop.f32.mrf.mxu0  ;;  %v5080_v7 = vpop.f32.mrf.mxu1 }
 0xb21   :  { %v5030_v25 = vadd.f32 %v5029_v13, %v4500_v29  ;;  %v5081_v37 = vadd.f32 %v5080_v7, %v5028_v36 }
 0xb22   :  { %v5031_v51 = vpop.f32.mrf.mxu0  ;;  %v5082_v18 = vpop.f32.mrf.mxu1 }
 0xb23   :  { %v5032_v40 = vadd.f32 %v5031_v51, %v4496_v62  ;;  %v5083_v12 = vadd.f32 %v5082_v18, %v5030_v25 }
 0xb24   :  { %v5033_v35 = vpop.f32.mrf.mxu0  ;;  %v5084_v2 = vpop.f32.mrf.mxu1 }
 0xb25   :  { %v5034_v32 = vadd.f32 %v5033_v35, %v4500_v29  ;;  %v5085_v44 = vadd.f32 %v5084_v2, %v5032_v40 }
 0xb26   :  { %v5086_v57 = vpop.f32.mrf.mxu1 }
 0xb27   :  { %v5087_v10 = vadd.f32 %v5086_v57, %v5034_v32 }
 0xb56   :  { %v5123_v5 = vpop.f32.mrf.mxu0 }
 0xb57   :  { %v5124_v28 = vadd.f32 %v5123_v5, %v5071_v30 }
 0xb58   :  { %v5125_v31 = vpop.f32.mrf.mxu0 }
 0xb59   :  { %v5126_v20 = vadd.f32 %v5125_v31, %v5073_v46  ;;  %v5142_v60 = vmax.f32 %v5124_v28, 0.0 }
 0xb5a   :  { %v5127_v33 = vpop.f32.mrf.mxu0 }
 0xb5b   :  { %v5128_v14 = vadd.f32 %v5127_v33, %v5075_v50  ;;  %v5143_v58 = vmax.f32 %v5126_v20, 0.0  ;;  %v5164_v53 = vrot.slane %v5142_v60, 1  ;;  %v5150_v20 = vld [vmem:[#allocation29] sm:$0xff] }
 0xb5c   :  { %v5129_v56 = vpop.f32.mrf.mxu0 }
 0xb5d   :  { %v5130_v39 = vadd.f32 %v5129_v56, %v5077_v21  ;;  %v5144_v23 = vmax.f32 %v5128_v14, 0.0  ;;  %v5167_v19 = vrot.slane %v5143_v58, 1 }
 0xb5e   :  { %v5133_v3 = vpop.f32.mrf.mxu0 }
 0xb5f   :  { %v5134_v26 = vadd.f32 %v5133_v3, %v5081_v37  ;;  %v5145_v55 = vmax.f32 %v5130_v39, 0.0  ;;  %v5165_v17 = vrot.slane %v5144_v23, 1  ;;  %v5195_v40 = vrot.slane %v5144_v23, 2 }
 0xb60   :  { %v5135_v43 = vpop.f32.mrf.mxu0  ;;  %v5197_v3 = vrot.slane %v5143_v58, 2 }
 0xb61   :  { %v5146_v47 = vmax.f32 %v5134_v26, 0.0  ;;  %v5136_v48 = vadd.f32 %v5135_v43, %v5083_v12  ;;  %v5168_v11 = vrot.slane %v5145_v55, 1  ;;  %v5166_v18 = vsel %vm422_vm2, %v5164_v53, %v5165_v17 }
 0xb62   :  { %v5137_v16 = vpop.f32.mrf.mxu0  ;;  %v5198_v25 = vrot.slane %v5145_v55, 2  ;;  %v5186_v30 = vmax.f32 %v5142_v60, %v5166_v18  ;;  %v5194_v26 = vrot.slane %v5142_v60, 2 }
 0xb63   :  { %v5138_v41 = vadd.f32 %v5137_v16, %v5085_v44  ;;  %v5147_v38 = vmax.f32 %v5136_v48, 0.0  ;;  %v5170_v61 = vrot.slane %v5146_v47, 1  ;;  %v5169_v27 = vsel %vm422_vm2, %v5167_v19, %v5168_v11  ;;  %v5152_v48 = vld [vmem:[#allocation29 + $0x10] sm:$0xff]  ;;  %v5153_v16 = vld [vmem:[#allocation29 + $0x18] sm:$0xff] }
 0xb64   :  { %v5139_v24 = vpop.f32.mrf.mxu0  ;;  %v5200_v63 = vrot.slane %v5146_v47, 2  ;;  %v5187_v21 = vmax.f32 %v5143_v58, %v5169_v27  ;;  %v5199_v39 = vsel %vm702_vm7, %v5197_v3, %v5198_v25  ;;  %v5196_v43 = vsel %vm702_vm7, %v5194_v26, %v5195_v40 }
 0xb65   :  { %v5148_v54 = vmax.f32 %v5138_v41, 0.0  ;;  %v5140_v52 = vadd.f32 %v5139_v24, %v5087_v10  ;;  %v5172_v6 = vrot.slane %v5147_v38, 1  ;;  %v5171_v51 = vsel %vm422_vm2, %v5165_v17, %v5170_v61  ;;  %v5154_v10 = vld [vmem:[#allocation29 + $0x20] sm:$0xff]  ;;  %v5155_v41 = vld [vmem:[#allocation29 + $0x28] sm:$0xff] }
 0xb66   :  { %v5202_v35 = vrot.slane %v5147_v38, 2  ;;  %v5188_v2 = vmax.f32 %v5144_v23, %v5171_v51  ;;  %v5201_v12 = vsel %vm702_vm7, %v5195_v40, %v5200_v63  ;;  %v5217_v44 = vmax.f32 %v5187_v21, %v5199_v39 }
 0xb67   :  { %v5174_v1 = vrot.slane %v5148_v54, 1  ;;  %v5149_v49 = vmax.f32 %v5140_v52, 0.0  ;;  %v5173_v7 = vsel %vm422_vm2, %v5168_v11, %v5172_v6  ;;  %v5204_v5 = vrot.slane %v5148_v54, 2 }
 0xb68   :  { %v5189_v15 = vmax.f32 %v5145_v55, %v5173_v7  ;;  %v5203_v32 = vsel %vm702_vm7, %v5198_v25, %v5202_v35  ;;  %v5218_v14 = vmax.f32 %v5188_v2, %v5201_v12  ;;  %v5216_v28 = vmax.f32 %v5186_v30, %v5196_v43 }
 0xb69   :  { %v5175_v13 = vsel %vm422_vm2, %v5170_v61, %v5174_v1  ;;  %v5176_v45 = vrot.slane %v5149_v49, 1  ;;  %v5192_v8 = vmax.f32 %v5148_v54, %v5174_v1  ;;  %v5206_v22 = vrot.slane %v5149_v49, 2 }
 0xb6a   :  { %v5190_v31 = vmax.f32 %v5146_v47, %v5175_v13  ;;  %v5205_v50 = vsel %vm702_vm7, %v5200_v63, %v5204_v5  ;;  %v5219_v57 = vmax.f32 %v5189_v15, %v5203_v32  ;;  %v5151_v47 = vld [vmem:[#allocation29 + $0x8] sm:$0xff] }
 0xb6b   :  { %v5193_v62 = vmax.f32 %v5149_v49, %v5176_v45  ;;  %v5177_v29 = vsel %vm422_vm2, %v5172_v6, %v5176_v45  ;;  %v5207_v34 = vsel %vm702_vm7, %v5202_v35, %v5206_v22  ;;  %v5222_v56 = vmax.f32 %v5192_v8, %v5204_v5 }
 0xb6c   :  { %v5191_v36 = vmax.f32 %v5147_v38, %v5177_v29  ;;  %v5220_v46 = vmax.f32 %v5190_v31, %v5205_v50 }
 0xb6d   :  { %v5223_v33 = vmax.f32 %v5193_v62, %v5206_v22 }
 0xb6e   :  { %v5221_v37 = vmax.f32 %v5191_v36, %v5207_v34 }
 0xb6f   :  { %9121 = vmatprep.subr.msk.mxu1 %vm5243_vm13, %v5223_v33 }
 0xb70   :  { %9122 = vmatpush1.msk.msra.mxu1 %vm5243_vm13, %v5222_v56 }
 0xb71   :  { %5276 = vmatprep.subr.mxu1 %v5221_v37 }
 0xb72   :  { %5277 = vmatpush1.msra.mxu1 %v5220_v46 }
 0xb73   :  { %5278 = vmatprep.subr.mxu1 %v5219_v57 }
 0xb74   :  { %5279 = vmatpush1.msra.mxu1 %v5218_v14 }
 0xb75   :  { %5280 = vmatprep.subr.mxu1 %v5217_v44 }
 0xb76   :  { %5281 = vmatpush1.msra.mxu1 %v5216_v28 }
 0xb77   :  { %9123 = vmatmul.mubr.msk.f32.vlgmr.msra.gmra.mxu1 %vm5224_vm14, %v5150_v20 }
 0xb78   :  { %5320 = vmatprep.mubr.f32.mxu1 %v11455_v0 }
 0xb7b   :  { %9124 = vmatmul.mubr.msk.f32.gmra.mxu1 %vm5224_vm14, %v5151_v47 }
 0xb7c   :  { %5326 = vmatprep.mubr.f32.mxu1 %v11455_v0 }
 0xb7f   :  { %9125 = vmatmul.mubr.msk.f32.gmra.mxu1 %vm5224_vm14, %v5152_v48 }
 0xb80   :  { %5332 = vmatprep.mubr.f32.mxu1 %v11455_v0 }
 0xb83   :  { %9126 = vmatmul.mubr.msk.f32.gmra.mxu1 %vm5224_vm14, %v5153_v16 }
 0xb84   :  { %5338 = vmatprep.mubr.f32.mxu1 %v11455_v0 }
 0xb87   :  { %9127 = vmatmul.mubr.msk.f32.gmra.mxu1 %vm5224_vm14, %v5154_v10 }
 0xb88   :  { %5344 = vmatprep.mubr.f32.mxu1 %v11455_v0 }
 0xb8b   :  { %9128 = vmatmul.mubr.msk.f32.gmra.mxu1 %vm5224_vm14, %v5155_v41 }
 0xc37   :  { %v5316_v23 = vpop.f32.mrf.mxu1 }
 0xc38   :  { %v12386_v55 = vpack.c.bf16 %v5316_v23, %v5316_v23 }
 0xc39   :  { %v5318_v38 = vpop.f32.mrf.mxu1 }
 0xc3a   :  { %v12388_v24 = vpack.c.bf16 %v5318_v38, %v5318_v38 }
 0xc3b   :  { %v5322_v60 = vpop.f32.mrf.mxu1 }
 0xc3c   :  { %v12390_v58 = vpack.c.bf16 %v5322_v60, %v5322_v60 }
 0xc3d   :  { %v5324_v54 = vpop.f32.mrf.mxu1 }
 0xc3e   :  { %v12392_v52 = vpack.c.bf16 %v5324_v54, %v5324_v54 }
 0xc3f   :  { %v5328_v61 = vpop.f32.mrf.mxu1 }
 0xc40   :  { %v12394_v6 = vpack.c.bf16 %v5328_v61, %v5328_v61 }
 0xc41   :  { %v5330_v1 = vpop.f32.mrf.mxu1 }
 0xc42   :  { %v12396_v49 = vpack.c.bf16 %v5330_v1, %v5330_v1 }
 0xc43   :  { %v5334_v17 = vpop.f32.mrf.mxu1 }
 0xc44   :  { %v12398_v11 = vpack.c.bf16 %v5334_v17, %v5334_v17 }
 0xc45   :  { %v5336_v53 = vpop.f32.mrf.mxu1 }
 0xc46   :  { %v12400_v19 = vpack.c.bf16 %v5336_v53, %v5336_v53 }
 0xc47   :  { %v5340_v13 = vpop.f32.mrf.mxu1 }
 0xc48   :  { %v12402_v45 = vpack.c.bf16 %v5340_v13, %v5340_v13 }
 0xc49   :  { %v5342_v51 = vpop.f32.mrf.mxu1 }
 0xc4a   :  { %v12404_v8 = vpack.c.bf16 %v5342_v51, %v5342_v51 }
 0xc4b   :  { %v5346_v22 = vpop.f32.mrf.mxu1 }
 0xc4c   :  { %v12406_v7 = vpack.c.bf16 %v5346_v22, %v5346_v22 }
 0xc4d   :  { %v5348_v35 = vpop.f32.mrf.mxu1 }
 0xc4e   :  { %v12408_v5 = vpack.c.bf16 %v5348_v35, %v5348_v35 }
 0xc4f   :  { %11430 = dma.done.wait [#allocation5 + $0x2], 49152 }
 0xc50   :  { %11431 = vsyncadd [#allocation5 + $0x2], 4294918144  ;;  %7725 = vmatprep.mubr.bf16.mxu1 %v12388_v24  ;;  %7766 = vmatprep.mubr.bf16.mxu0 %v12392_v52  ;;  %v10422_v62 = vld [vmem:[#allocation4 + $0xe4] ss:$16 sps:$4 sm:$0xff]   ;;  %v10426_v18 = vld [vmem:[#allocation4 + $0xe0] ss:$16 sps:$4 sm:$0xff]  }
 0xc51   :  { %v10424_v29 = vld [vmem:[#allocation4 + $0x2e4] ss:$16 sps:$4 sm:$0xff]   ;;  %7693 = vmatprep.subr.bf16.mxu1 %v10422_v62  ;;  %v10427_v31 = vld [vmem:[#allocation4 + $0x2e0] ss:$16 sps:$4 sm:$0xff]   ;;  %vm8555_vm15 = vcmask 293888   ;;  %s11463_s15 = smov [#allocation30]  }
 0xc52   :  { %7734 = vmatprep.subr.bf16.mxu0 %v10424_v29  ;;  %v10428_v36 = vld [vmem:[#allocation4 + $0xc4] ss:$16 sps:$4 sm:$0xff]   ;;  %7694 = vmatpush1.bf16.msra.mxu1 %v10426_v18  ;;  %v10432_v63 = vld [vmem:[#allocation4 + $0xc0] ss:$16 sps:$4 sm:$0xff]   ;;  %s8640_s7 = sshll.u32 %s11463_s15, 4  ;;  %vm8632_vm0 = vcmask 17408   ;;  %s8641_s7 = int_to_ptr.vmem [resolvable:$true] %s8640_s7 }
 0xc53   :  { %7735 = vmatpush1.bf16.msra.mxu0 %v10427_v31  ;;  %v10430_v27 = vld [vmem:[#allocation4 + $0x2c4] ss:$16 sps:$4 sm:$0xff]   ;;  %7695 = vmatprep.subr.bf16.mxu1 %v10428_v36  ;;  %v10433_v33 = vld [vmem:[#allocation4 + $0x2c0] ss:$16 sps:$4 sm:$0xff]   ;;  %p11395_p7 = scmp.lt.s32.totalorder %s8641_s7, %s8641_s7 }
 0xc54   :  { %7736 = vmatprep.subr.bf16.mxu0 %v10430_v27  ;;  %v10434_v34 = vld [vmem:[#allocation4 + $0xa4] ss:$16 sps:$4 sm:$0xff]   ;;  %v10438_v25 = vld [vmem:[#allocation4 + $0xa0] ss:$16 sps:$4 sm:$0xff]  }
 0xc55   :  { %v10436_v15 = vld [vmem:[#allocation4 + $0x2a4] ss:$16 sps:$4 sm:$0xff]   ;;  %v10439_v2 = vld [vmem:[#allocation4 + $0x2a0] ss:$16 sps:$4 sm:$0xff]  }
 0xc56   :  { %7696 = vmatpush1.bf16.msra.mxu1 %v10432_v63  ;;  %v10440_v56 = vld [vmem:[#allocation4 + $0x84] ss:$16 sps:$4 sm:$0xff]   ;;  %v10444_v40 = vld [vmem:[#allocation4 + $0x80] ss:$16 sps:$4 sm:$0xff]  }
 0xc57   :  { %7737 = vmatpush1.bf16.msra.mxu0 %v10433_v33  ;;  %7697 = vmatprep.subr.bf16.mxu1 %v10434_v34  ;;  %v10442_v37 = vld [vmem:[#allocation4 + $0x284] ss:$16 sps:$4 sm:$0xff]   ;;  %v10445_v50 = vld [vmem:[#allocation4 + $0x280] ss:$16 sps:$4 sm:$0xff]  }
 0xc58   :  { %7738 = vmatprep.subr.bf16.mxu0 %v10436_v15  ;;  %v10446_v21 = vld [vmem:[#allocation4 + $0x64] ss:$16 sps:$4 sm:$0xff]   ;;  %v10450_v30 = vld [vmem:[#allocation4 + $0x60] ss:$16 sps:$4 sm:$0xff]  }
 0xc59   :  { %v10448_v3 = vld [vmem:[#allocation4 + $0x264] ss:$16 sps:$4 sm:$0xff]   ;;  %v10451_v46 = vld [vmem:[#allocation4 + $0x260] ss:$16 sps:$4 sm:$0xff]  }
 0xc5a   :  { %7698 = vmatpush1.bf16.msra.mxu1 %v10438_v25  ;;  %v10452_v32 = vld [vmem:[#allocation4 + $0x44] ss:$16 sps:$4 sm:$0xff]   ;;  %v10456_v12 = vld [vmem:[#allocation4 + $0x40] ss:$16 sps:$4 sm:$0xff]  }
 0xc5b   :  { %7739 = vmatpush1.bf16.msra.mxu0 %v10439_v2  ;;  %7699 = vmatprep.subr.bf16.mxu1 %v10440_v56  ;;  %v10454_v26 = vld [vmem:[#allocation4 + $0x244] ss:$16 sps:$4 sm:$0xff]   ;;  %v10457_v57 = vld [vmem:[#allocation4 + $0x240] ss:$16 sps:$4 sm:$0xff]  }
 0xc5c   :  { %7740 = vmatprep.subr.bf16.mxu0 %v10442_v37  ;;  %v10458_v14 = vld [vmem:[#allocation4 + $0x24] ss:$16 sps:$4 sm:$0xff]   ;;  %v10462_v43 = vld [vmem:[#allocation4 + $0x20] ss:$16 sps:$4 sm:$0xff]  }
 0xc5d   :  { %v10460_v39 = vld [vmem:[#allocation4 + $0x224] ss:$16 sps:$4 sm:$0xff]   ;;  %v10463_v44 = vld [vmem:[#allocation4 + $0x220] ss:$16 sps:$4 sm:$0xff]  }
 0xc5e   :  { %7700 = vmatpush1.bf16.msra.mxu1 %v10444_v40  ;;  %v10464_v28 = vld [vmem:[#allocation4 + $0x4] ss:$16 sps:$4 sm:$0xff]   ;;  %v10468_v47 = vld [vmem:[#allocation4] ss:$16 sps:$4 sm:$0xff]  }
 0xc5f   :  { %7741 = vmatpush1.bf16.msra.mxu0 %v10445_v50  ;;  %7701 = vmatprep.subr.bf16.mxu1 %v10446_v21  ;;  %v10466_v20 = vld [vmem:[#allocation4 + $0x204] ss:$16 sps:$4 sm:$0xff]   ;;  %v10469_v48 = vld [vmem:[#allocation4 + $0x200] ss:$16 sps:$4 sm:$0xff]  }
 0xc60   :  { %7742 = vmatprep.subr.bf16.mxu0 %v10448_v3  ;;  %v10470_v16 = vld [vmem:[#allocation4 + $0x1e4] ss:$16 sps:$4 sm:$0xff]   ;;  %v10474_v41 = vld [vmem:[#allocation4 + $0x1e0] ss:$16 sps:$4 sm:$0xff]  }
 0xc61   :  { %v10472_v10 = vld [vmem:[#allocation4 + $0x3e4] ss:$16 sps:$4 sm:$0xff]   ;;  %v10475_v23 = vld [vmem:[#allocation4 + $0x3e0] ss:$16 sps:$4 sm:$0xff]  }
 0xc62   :  { %7702 = vmatpush1.bf16.msra.mxu1 %v10450_v30  ;;  %v10476_v38 = vld [vmem:[#allocation4 + $0x1c4] ss:$16 sps:$4 sm:$0xff]   ;;  %v10480_v54 = vld [vmem:[#allocation4 + $0x1c0] ss:$16 sps:$4 sm:$0xff]  }
 0xc63   :  { %7743 = vmatpush1.bf16.msra.mxu0 %v10451_v46  ;;  %7703 = vmatprep.subr.bf16.mxu1 %v10452_v32  ;;  %v10478_v60 = vld [vmem:[#allocation4 + $0x3c4] ss:$16 sps:$4 sm:$0xff]   ;;  %v10481_v61 = vld [vmem:[#allocation4 + $0x3c0] ss:$16 sps:$4 sm:$0xff]  }
 0xc64   :  { %7744 = vmatprep.subr.bf16.mxu0 %v10454_v26  ;;  %v10482_v1 = vld [vmem:[#allocation4 + $0x1a4] ss:$16 sps:$4 sm:$0xff]   ;;  %v10486_v53 = vld [vmem:[#allocation4 + $0x1a0] ss:$16 sps:$4 sm:$0xff]  }
 0xc65   :  { %v10484_v17 = vld [vmem:[#allocation4 + $0x3a4] ss:$16 sps:$4 sm:$0xff]   ;;  %v10487_v13 = vld [vmem:[#allocation4 + $0x3a0] ss:$16 sps:$4 sm:$0xff]  }
 0xc66   :  { %7704 = vmatpush1.bf16.msra.mxu1 %v10456_v12  ;;  %v10488_v51 = vld [vmem:[#allocation4 + $0x184] ss:$16 sps:$4 sm:$0xff]   ;;  %v10492_v35 = vld [vmem:[#allocation4 + $0x180] ss:$16 sps:$4 sm:$0xff]  }
 0xc67   :  { %7745 = vmatpush1.bf16.msra.mxu0 %v10457_v57  ;;  %7705 = vmatprep.subr.bf16.mxu1 %v10458_v14  ;;  %v10490_v22 = vld [vmem:[#allocation4 + $0x384] ss:$16 sps:$4 sm:$0xff]   ;;  %v10493_v62 = vld [vmem:[#allocation4 + $0x380] ss:$16 sps:$4 sm:$0xff]  }
 0xc68   :  { %7746 = vmatprep.subr.bf16.mxu0 %v10460_v39  ;;  %v10494_v29 = vld [vmem:[#allocation4 + $0x164] ss:$16 sps:$4 sm:$0xff]   ;;  %v10498_v31 = vld [vmem:[#allocation4 + $0x160] ss:$16 sps:$4 sm:$0xff]  }
 0xc69   :  { %v10496_v18 = vld [vmem:[#allocation4 + $0x364] ss:$16 sps:$4 sm:$0xff]   ;;  %v10499_v36 = vld [vmem:[#allocation4 + $0x360] ss:$16 sps:$4 sm:$0xff]  }
 0xc6a   :  { %7706 = vmatpush1.bf16.msra.mxu1 %v10462_v43  ;;  %v10500_v27 = vld [vmem:[#allocation4 + $0x144] ss:$16 sps:$4 sm:$0xff]   ;;  %v10504_v33 = vld [vmem:[#allocation4 + $0x140] ss:$16 sps:$4 sm:$0xff]  }
 0xc6b   :  { %7747 = vmatpush1.bf16.msra.mxu0 %v10463_v44  ;;  %7707 = vmatprep.subr.bf16.mxu1 %v10464_v28  ;;  %v10502_v63 = vld [vmem:[#allocation4 + $0x344] ss:$16 sps:$4 sm:$0xff]   ;;  %v10505_v34 = vld [vmem:[#allocation4 + $0x340] ss:$16 sps:$4 sm:$0xff]  }
 0xc6c   :  { %7748 = vmatprep.subr.bf16.mxu0 %v10466_v20  ;;  %v10506_v15 = vld [vmem:[#allocation4 + $0x124] ss:$16 sps:$4 sm:$0xff]   ;;  %v10510_v2 = vld [vmem:[#allocation4 + $0x120] ss:$16 sps:$4 sm:$0xff]  }
 0xc6d   :  { %v10508_v25 = vld [vmem:[#allocation4 + $0x324] ss:$16 sps:$4 sm:$0xff]   ;;  %v10511_v56 = vld [vmem:[#allocation4 + $0x320] ss:$16 sps:$4 sm:$0xff]  }
 0xc6e   :  { %7708 = vmatpush1.bf16.msra.mxu1 %v10468_v47  ;;  %v10512_v37 = vld [vmem:[#allocation4 + $0x104] ss:$16 sps:$4 sm:$0xff]   ;;  %v10516_v50 = vld [vmem:[#allocation4 + $0x100] ss:$16 sps:$4 sm:$0xff]  }
 0xc6f   :  { %7749 = vmatpush1.bf16.msra.mxu0 %v10469_v48  ;;  %7709 = vmatprep.subr.bf16.mxu1 %v10470_v16  ;;  %v10514_v40 = vld [vmem:[#allocation4 + $0x304] ss:$16 sps:$4 sm:$0xff]   ;;  %v10517_v21 = vld [vmem:[#allocation4 + $0x300] ss:$16 sps:$4 sm:$0xff]  }
 0xc70   :  { %7750 = vmatprep.subr.bf16.mxu0 %v10472_v10  ;;  %v10520_v3 = vld [vmem:[#allocation4 + $0x4e4] ss:$16 sps:$4 sm:$0xff]   ;;  %v10518_v46 = vld [vmem:[#allocation4 + $0x4e0] ss:$16 sps:$4 sm:$0xff]  }
 0xc71   :  { %v10523_v30 = vld [vmem:[#allocation4 + $0x6e4] ss:$16 sps:$4 sm:$0xff]   ;;  %v10521_v32 = vld [vmem:[#allocation4 + $0x6e0] ss:$16 sps:$4 sm:$0xff]  }
 0xc72   :  { %7710 = vmatpush2.bf16.msra.mxu1 %v10474_v41  ;;  %v10526_v26 = vld [vmem:[#allocation4 + $0x4c4] ss:$16 sps:$4 sm:$0xff]   ;;  %v10524_v57 = vld [vmem:[#allocation4 + $0x4c0] ss:$16 sps:$4 sm:$0xff]  }
 0xc73   :  { %7751 = vmatpush2.bf16.msra.mxu0 %v10475_v23  ;;  %7711 = vmatprep.subr.bf16.mxu1 %v10476_v38  ;;  %v10529_v12 = vld [vmem:[#allocation4 + $0x6c4] ss:$16 sps:$4 sm:$0xff]   ;;  %v10527_v14 = vld [vmem:[#allocation4 + $0x6c0] ss:$16 sps:$4 sm:$0xff]  }
 0xc74   :  { %7752 = vmatprep.subr.bf16.mxu0 %v10478_v60  ;;  %v10532_v39 = vld [vmem:[#allocation4 + $0x4a4] ss:$16 sps:$4 sm:$0xff]   ;;  %v10530_v44 = vld [vmem:[#allocation4 + $0x4a0] ss:$16 sps:$4 sm:$0xff]  }
 0xc75   :  { %v10535_v43 = vld [vmem:[#allocation4 + $0x6a4] ss:$16 sps:$4 sm:$0xff]   ;;  %v10533_v28 = vld [vmem:[#allocation4 + $0x6a0] ss:$16 sps:$4 sm:$0xff]  }
 0xc76   :  { %7712 = vmatpush2.bf16.msra.mxu1 %v10480_v54  ;;  %v10538_v20 = vld [vmem:[#allocation4 + $0x484] ss:$16 sps:$4 sm:$0xff]   ;;  %v10536_v48 = vld [vmem:[#allocation4 + $0x480] ss:$16 sps:$4 sm:$0xff]  }
 0xc77   :  { %7753 = vmatpush2.bf16.msra.mxu0 %v10481_v61  ;;  %7713 = vmatprep.subr.bf16.mxu1 %v10482_v1  ;;  %v10541_v47 = vld [vmem:[#allocation4 + $0x684] ss:$16 sps:$4 sm:$0xff]   ;;  %v10539_v16 = vld [vmem:[#allocation4 + $0x680] ss:$16 sps:$4 sm:$0xff]  }
 0xc78   :  { %7754 = vmatprep.subr.bf16.mxu0 %v10484_v17  ;;  %v10544_v10 = vld [vmem:[#allocation4 + $0x464] ss:$16 sps:$4 sm:$0xff]   ;;  %v10542_v23 = vld [vmem:[#allocation4 + $0x460] ss:$16 sps:$4 sm:$0xff]  }
 0xc79   :  { %v10547_v41 = vld [vmem:[#allocation4 + $0x664] ss:$16 sps:$4 sm:$0xff]   ;;  %v10545_v38 = vld [vmem:[#allocation4 + $0x660] ss:$16 sps:$4 sm:$0xff]  }
 0xc7a   :  { %7714 = vmatpush2.bf16.msra.mxu1 %v10486_v53  ;;  %v10550_v60 = vld [vmem:[#allocation4 + $0x444] ss:$16 sps:$4 sm:$0xff]   ;;  %v10548_v61 = vld [vmem:[#allocation4 + $0x440] ss:$16 sps:$4 sm:$0xff]  }
 0xc7b   :  { %7755 = vmatpush2.bf16.msra.mxu0 %v10487_v13  ;;  %7715 = vmatprep.subr.bf16.mxu1 %v10488_v51  ;;  %v10553_v54 = vld [vmem:[#allocation4 + $0x644] ss:$16 sps:$4 sm:$0xff]   ;;  %v10551_v1 = vld [vmem:[#allocation4 + $0x640] ss:$16 sps:$4 sm:$0xff]  }
 0xc7c   :  { %7756 = vmatprep.subr.bf16.mxu0 %v10490_v22  ;;  %v10556_v17 = vld [vmem:[#allocation4 + $0x424] ss:$16 sps:$4 sm:$0xff]   ;;  %v10554_v13 = vld [vmem:[#allocation4 + $0x420] ss:$16 sps:$4 sm:$0xff]  }
 0xc7d   :  { %v10559_v53 = vld [vmem:[#allocation4 + $0x624] ss:$16 sps:$4 sm:$0xff]   ;;  %v10557_v51 = vld [vmem:[#allocation4 + $0x620] ss:$16 sps:$4 sm:$0xff]  }
 0xc7e   :  { %7716 = vmatpush2.bf16.msra.mxu1 %v10492_v35  ;;  %v10562_v22 = vld [vmem:[#allocation4 + $0x404] ss:$16 sps:$4 sm:$0xff]  }
 0xc7f   :  { %7757 = vmatpush2.bf16.msra.mxu0 %v10493_v62  ;;  %7717 = vmatprep.subr.bf16.mxu1 %v10494_v29  ;;  %v10565_v35 = vld [vmem:[#allocation4 + $0x604] ss:$16 sps:$4 sm:$0xff]   ;;  %v10560_v62 = vld [vmem:[#allocation4 + $0x400] ss:$16 sps:$4 sm:$0xff]  }
 0xc80   :  { %7758 = vmatprep.subr.bf16.mxu0 %v10496_v18  ;;  %v10563_v29 = vld [vmem:[#allocation4 + $0x600] ss:$16 sps:$4 sm:$0xff]   ;;  %v10568_v18 = vld [vmem:[#allocation4 + $0x5e4] ss:$16 sps:$4 sm:$0xff]  }
 0xc82   :  { %7718 = vmatpush2.bf16.msra.mxu1 %v10498_v31  ;;  %v10571_v31 = vld [vmem:[#allocation4 + $0x7e4] ss:$16 sps:$4 sm:$0xff]  }
 0xc83   :  { %7759 = vmatpush2.bf16.msra.mxu0 %v10499_v36  ;;  %7719 = vmatprep.subr.bf16.mxu1 %v10500_v27  ;;  %v10566_v36 = vld [vmem:[#allocation4 + $0x5e0] ss:$16 sps:$4 sm:$0xff]  }
 0xc84   :  { %7760 = vmatprep.subr.bf16.mxu0 %v10502_v63  ;;  %v10569_v27 = vld [vmem:[#allocation4 + $0x7e0] ss:$16 sps:$4 sm:$0xff]   ;;  %v10574_v63 = vld [vmem:[#allocation4 + $0x5c4] ss:$16 sps:$4 sm:$0xff]  }
 0xc86   :  { %7720 = vmatpush2.bf16.msra.mxu1 %v10504_v33  ;;  %v10577_v33 = vld [vmem:[#allocation4 + $0x7c4] ss:$16 sps:$4 sm:$0xff]  }
 0xc87   :  { %7761 = vmatpush2.bf16.msra.mxu0 %v10505_v34  ;;  %7721 = vmatprep.subr.bf16.mxu1 %v10506_v15  ;;  %v10572_v34 = vld [vmem:[#allocation4 + $0x5c0] ss:$16 sps:$4 sm:$0xff]  }
 0xc88   :  { %7762 = vmatprep.subr.bf16.mxu0 %v10508_v25  ;;  %v10575_v15 = vld [vmem:[#allocation4 + $0x7c0] ss:$16 sps:$4 sm:$0xff]   ;;  %v10580_v25 = vld [vmem:[#allocation4 + $0x5a4] ss:$16 sps:$4 sm:$0xff]  }
 0xc8a   :  { %7722 = vmatpush2.bf16.msra.mxu1 %v10510_v2  ;;  %v10583_v2 = vld [vmem:[#allocation4 + $0x7a4] ss:$16 sps:$4 sm:$0xff]  }
 0xc8b   :  { %7763 = vmatpush2.bf16.msra.mxu0 %v10511_v56  ;;  %7723 = vmatprep.subr.bf16.mxu1 %v10512_v37  ;;  %v10578_v56 = vld [vmem:[#allocation4 + $0x5a0] ss:$16 sps:$4 sm:$0xff]  }
 0xc8c   :  { %7764 = vmatprep.subr.bf16.mxu0 %v10514_v40  ;;  %v10581_v37 = vld [vmem:[#allocation4 + $0x7a0] ss:$16 sps:$4 sm:$0xff]   ;;  %v10586_v40 = vld [vmem:[#allocation4 + $0x584] ss:$16 sps:$4 sm:$0xff]  }
 0xc8e   :  { %7724 = vmatpush2.bf16.msra.mxu1 %v10516_v50  ;;  %v10589_v50 = vld [vmem:[#allocation4 + $0x784] ss:$16 sps:$4 sm:$0xff]  }
 0xc8f   :  { %7765 = vmatpush2.bf16.msra.mxu0 %v10517_v21  ;;  %7775 = vmatprep.subr.bf16.mxu1 %v10520_v3  ;;  %v10584_v21 = vld [vmem:[#allocation4 + $0x580] ss:$16 sps:$4 sm:$0xff]  }
 0xc90   :  { %7816 = vmatprep.subr.bf16.mxu0 %v10523_v30  ;;  %v10587_v3 = vld [vmem:[#allocation4 + $0x780] ss:$16 sps:$4 sm:$0xff]   ;;  %v10592_v30 = vld [vmem:[#allocation4 + $0x564] ss:$16 sps:$4 sm:$0xff]  }
 0xc91   :  { %7726 = vmatmul.mubr.bf16.vlgmr.msra.gmra.mxu1 %v12386_v55 }
 0xc92   :  { %7767 = vmatmul.mubr.bf16.vlgmr.msra.gmra.mxu0 %v12390_v58  ;;  %7776 = vmatpush1.bf16.msra.mxu1 %v10518_v46  ;;  %v10595_v46 = vld [vmem:[#allocation4 + $0x764] ss:$16 sps:$4 sm:$0xff]  }
 0xc93   :  { %7817 = vmatpush1.bf16.msra.mxu0 %v10521_v32  ;;  %7777 = vmatprep.subr.bf16.mxu1 %v10526_v26  ;;  %v10590_v32 = vld [vmem:[#allocation4 + $0x560] ss:$16 sps:$4 sm:$0xff]  }
 0xc94   :  { %7818 = vmatprep.subr.bf16.mxu0 %v10529_v12  ;;  %7807 = vmatprep.mubr.bf16.mxu1 %v12396_v49  ;;  %v10593_v26 = vld [vmem:[#allocation4 + $0x760] ss:$16 sps:$4 sm:$0xff]   ;;  %v10598_v12 = vld [vmem:[#allocation4 + $0x544] ss:$16 sps:$4 sm:$0xff]  }
 0xc95   :  { %7848 = vmatprep.mubr.bf16.mxu0 %v12400_v19 }
 0xc96   :  { %7778 = vmatpush1.bf16.msra.mxu1 %v10524_v57  ;;  %v10601_v57 = vld [vmem:[#allocation4 + $0x744] ss:$16 sps:$4 sm:$0xff]  }
 0xc97   :  { %7819 = vmatpush1.bf16.msra.mxu0 %v10527_v14  ;;  %7779 = vmatprep.subr.bf16.mxu1 %v10532_v39  ;;  %v10596_v14 = vld [vmem:[#allocation4 + $0x540] ss:$16 sps:$4 sm:$0xff]  }
 0xc98   :  { %7820 = vmatprep.subr.bf16.mxu0 %v10535_v43  ;;  %v10599_v39 = vld [vmem:[#allocation4 + $0x740] ss:$16 sps:$4 sm:$0xff]   ;;  %v10604_v43 = vld [vmem:[#allocation4 + $0x524] ss:$16 sps:$4 sm:$0xff]  }
 0xc9a   :  { %7780 = vmatpush1.bf16.msra.mxu1 %v10530_v44  ;;  %v10607_v44 = vld [vmem:[#allocation4 + $0x724] ss:$16 sps:$4 sm:$0xff]  }
 0xc9b   :  { %7821 = vmatpush1.bf16.msra.mxu0 %v10533_v28  ;;  %7781 = vmatprep.subr.bf16.mxu1 %v10538_v20  ;;  %v10602_v28 = vld [vmem:[#allocation4 + $0x520] ss:$16 sps:$4 sm:$0xff]  }
 0xc9c   :  { %7822 = vmatprep.subr.bf16.mxu0 %v10541_v47  ;;  %v10605_v20 = vld [vmem:[#allocation4 + $0x720] ss:$16 sps:$4 sm:$0xff]   ;;  %v10610_v47 = vld [vmem:[#allocation4 + $0x504] ss:$16 sps:$4 sm:$0xff]  }
 0xc9e   :  { %7782 = vmatpush1.bf16.msra.mxu1 %v10536_v48  ;;  %v10613_v48 = vld [vmem:[#allocation4 + $0x704] ss:$16 sps:$4 sm:$0xff]  }
 0xc9f   :  { %7823 = vmatpush1.bf16.msra.mxu0 %v10539_v16  ;;  %7783 = vmatprep.subr.bf16.mxu1 %v10544_v10  ;;  %v10608_v16 = vld [vmem:[#allocation4 + $0x500] ss:$16 sps:$4 sm:$0xff]  }
 0xca0   :  { %7824 = vmatprep.subr.bf16.mxu0 %v10547_v41  ;;  %v10611_v10 = vld [vmem:[#allocation4 + $0x700] ss:$16 sps:$4 sm:$0xff]   ;;  %v10616_v41 = vld [vmem:[#allocation4 + $0x8e4] ss:$16 sps:$4 sm:$0xff]  }
 0xca2   :  { %7784 = vmatpush1.bf16.msra.mxu1 %v10542_v23  ;;  %v10619_v23 = vld [vmem:[#allocation4 + $0xae4] ss:$16 sps:$4 sm:$0xff]  }
 0xca3   :  { %7825 = vmatpush1.bf16.msra.mxu0 %v10545_v38  ;;  %7785 = vmatprep.subr.bf16.mxu1 %v10550_v60  ;;  %v10614_v38 = vld [vmem:[#allocation4 + $0x8e0] ss:$16 sps:$4 sm:$0xff]  }
 0xca4   :  { %7826 = vmatprep.subr.bf16.mxu0 %v10553_v54  ;;  %v10617_v60 = vld [vmem:[#allocation4 + $0xae0] ss:$16 sps:$4 sm:$0xff]   ;;  %v10622_v54 = vld [vmem:[#allocation4 + $0x8c4] ss:$16 sps:$4 sm:$0xff]  }
 0xca6   :  { %7786 = vmatpush1.bf16.msra.mxu1 %v10548_v61  ;;  %v10625_v61 = vld [vmem:[#allocation4 + $0xac4] ss:$16 sps:$4 sm:$0xff]  }
 0xca7   :  { %7827 = vmatpush1.bf16.msra.mxu0 %v10551_v1  ;;  %7787 = vmatprep.subr.bf16.mxu1 %v10556_v17  ;;  %v10620_v1 = vld [vmem:[#allocation4 + $0x8c0] ss:$16 sps:$4 sm:$0xff]  }
 0xca8   :  { %7828 = vmatprep.subr.bf16.mxu0 %v10559_v53  ;;  %v10623_v17 = vld [vmem:[#allocation4 + $0xac0] ss:$16 sps:$4 sm:$0xff]   ;;  %v10628_v53 = vld [vmem:[#allocation4 + $0x8a4] ss:$16 sps:$4 sm:$0xff]  }
 0xcaa   :  { %7788 = vmatpush1.bf16.msra.mxu1 %v10554_v13  ;;  %v10631_v13 = vld [vmem:[#allocation4 + $0xaa4] ss:$16 sps:$4 sm:$0xff]  }
 0xcab   :  { %7829 = vmatpush1.bf16.msra.mxu0 %v10557_v51  ;;  %7789 = vmatprep.subr.bf16.mxu1 %v10562_v22  ;;  %v10626_v51 = vld [vmem:[#allocation4 + $0x8a0] ss:$16 sps:$4 sm:$0xff]  }
 0xcac   :  { %7830 = vmatprep.subr.bf16.mxu0 %v10565_v35  ;;  %v10629_v22 = vld [vmem:[#allocation4 + $0xaa0] ss:$16 sps:$4 sm:$0xff]   ;;  %v10634_v35 = vld [vmem:[#allocation4 + $0x884] ss:$16 sps:$4 sm:$0xff]  }
 0xcae   :  { %7790 = vmatpush1.bf16.msra.mxu1 %v10560_v62  ;;  %v10637_v62 = vld [vmem:[#allocation4 + $0xa84] ss:$16 sps:$4 sm:$0xff]  }
 0xcaf   :  { %7831 = vmatpush1.bf16.msra.mxu0 %v10563_v29  ;;  %7791 = vmatprep.subr.bf16.mxu1 %v10568_v18  ;;  %v10632_v29 = vld [vmem:[#allocation4 + $0x880] ss:$16 sps:$4 sm:$0xff]  }
 0xcb0   :  { %7832 = vmatprep.subr.bf16.mxu0 %v10571_v31  ;;  %v10635_v18 = vld [vmem:[#allocation4 + $0xa80] ss:$16 sps:$4 sm:$0xff]   ;;  %v10640_v31 = vld [vmem:[#allocation4 + $0x864] ss:$16 sps:$4 sm:$0xff]  }
 0xcb2   :  { %7792 = vmatpush2.bf16.msra.mxu1 %v10566_v36  ;;  %v10643_v36 = vld [vmem:[#allocation4 + $0xa64] ss:$16 sps:$4 sm:$0xff]  }
 0xcb3   :  { %7833 = vmatpush2.bf16.msra.mxu0 %v10569_v27  ;;  %7793 = vmatprep.subr.bf16.mxu1 %v10574_v63  ;;  %v10638_v27 = vld [vmem:[#allocation4 + $0x860] ss:$16 sps:$4 sm:$0xff]  }
 0xcb4   :  { %7834 = vmatprep.subr.bf16.mxu0 %v10577_v33  ;;  %v10641_v63 = vld [vmem:[#allocation4 + $0xa60] ss:$16 sps:$4 sm:$0xff]   ;;  %v10646_v33 = vld [vmem:[#allocation4 + $0x844] ss:$16 sps:$4 sm:$0xff]  }
 0xcb6   :  { %7794 = vmatpush2.bf16.msra.mxu1 %v10572_v34  ;;  %v10649_v34 = vld [vmem:[#allocation4 + $0xa44] ss:$16 sps:$4 sm:$0xff]  }
 0xcb7   :  { %7835 = vmatpush2.bf16.msra.mxu0 %v10575_v15  ;;  %7795 = vmatprep.subr.bf16.mxu1 %v10580_v25  ;;  %v10644_v15 = vld [vmem:[#allocation4 + $0x840] ss:$16 sps:$4 sm:$0xff]  }
 0xcb8   :  { %7836 = vmatprep.subr.bf16.mxu0 %v10583_v2  ;;  %v10647_v25 = vld [vmem:[#allocation4 + $0xa40] ss:$16 sps:$4 sm:$0xff]   ;;  %v10652_v2 = vld [vmem:[#allocation4 + $0x824] ss:$16 sps:$4 sm:$0xff]  }
 0xcba   :  { %7796 = vmatpush2.bf16.msra.mxu1 %v10578_v56  ;;  %v10655_v56 = vld [vmem:[#allocation4 + $0xa24] ss:$16 sps:$4 sm:$0xff]  }
 0xcbb   :  { %7837 = vmatpush2.bf16.msra.mxu0 %v10581_v37  ;;  %7797 = vmatprep.subr.bf16.mxu1 %v10586_v40  ;;  %v10650_v37 = vld [vmem:[#allocation4 + $0x820] ss:$16 sps:$4 sm:$0xff]  }
 0xcbc   :  { %7838 = vmatprep.subr.bf16.mxu0 %v10589_v50  ;;  %v10653_v40 = vld [vmem:[#allocation4 + $0xa20] ss:$16 sps:$4 sm:$0xff]   ;;  %v10658_v50 = vld [vmem:[#allocation4 + $0x804] ss:$16 sps:$4 sm:$0xff]  }
 0xcbe   :  { %7798 = vmatpush2.bf16.msra.mxu1 %v10584_v21  ;;  %v10661_v21 = vld [vmem:[#allocation4 + $0xa04] ss:$16 sps:$4 sm:$0xff]  }
 0xcbf   :  { %7839 = vmatpush2.bf16.msra.mxu0 %v10587_v3  ;;  %7799 = vmatprep.subr.bf16.mxu1 %v10592_v30  ;;  %v10656_v3 = vld [vmem:[#allocation4 + $0x800] ss:$16 sps:$4 sm:$0xff]  }
 0xcc0   :  { %7840 = vmatprep.subr.bf16.mxu0 %v10595_v46  ;;  %v10659_v30 = vld [vmem:[#allocation4 + $0xa00] ss:$16 sps:$4 sm:$0xff]   ;;  %v10664_v46 = vld [vmem:[#allocation4 + $0x9e4] ss:$16 sps:$4 sm:$0xff]  }
 0xcc2   :  { %7800 = vmatpush2.bf16.msra.mxu1 %v10590_v32  ;;  %v10667_v32 = vld [vmem:[#allocation4 + $0xbe4] ss:$16 sps:$4 sm:$0xff]  }
 0xcc3   :  { %7841 = vmatpush2.bf16.msra.mxu0 %v10593_v26  ;;  %7801 = vmatprep.subr.bf16.mxu1 %v10598_v12  ;;  %v10662_v26 = vld [vmem:[#allocation4 + $0x9e0] ss:$16 sps:$4 sm:$0xff]  }
 0xcc4   :  { %7842 = vmatprep.subr.bf16.mxu0 %v10601_v57  ;;  %v10665_v12 = vld [vmem:[#allocation4 + $0xbe0] ss:$16 sps:$4 sm:$0xff]   ;;  %v10670_v57 = vld [vmem:[#allocation4 + $0x9c4] ss:$16 sps:$4 sm:$0xff]  }
 0xcc6   :  { %7802 = vmatpush2.bf16.msra.mxu1 %v10596_v14  ;;  %v10673_v14 = vld [vmem:[#allocation4 + $0xbc4] ss:$16 sps:$4 sm:$0xff]  }
 0xcc7   :  { %7843 = vmatpush2.bf16.msra.mxu0 %v10599_v39  ;;  %7803 = vmatprep.subr.bf16.mxu1 %v10604_v43  ;;  %v10668_v39 = vld [vmem:[#allocation4 + $0x9c0] ss:$16 sps:$4 sm:$0xff]  }
 0xcc8   :  { %7844 = vmatprep.subr.bf16.mxu0 %v10607_v44  ;;  %v10671_v43 = vld [vmem:[#allocation4 + $0xbc0] ss:$16 sps:$4 sm:$0xff]   ;;  %v10676_v44 = vld [vmem:[#allocation4 + $0x9a4] ss:$16 sps:$4 sm:$0xff]  }
 0xcca   :  { %7804 = vmatpush2.bf16.msra.mxu1 %v10602_v28  ;;  %v10679_v28 = vld [vmem:[#allocation4 + $0xba4] ss:$16 sps:$4 sm:$0xff]  }
 0xccb   :  { %7845 = vmatpush2.bf16.msra.mxu0 %v10605_v20  ;;  %7805 = vmatprep.subr.bf16.mxu1 %v10610_v47  ;;  %v10674_v20 = vld [vmem:[#allocation4 + $0x9a0] ss:$16 sps:$4 sm:$0xff]  }
 0xccc   :  { %7846 = vmatprep.subr.bf16.mxu0 %v10613_v48  ;;  %v10677_v47 = vld [vmem:[#allocation4 + $0xba0] ss:$16 sps:$4 sm:$0xff]   ;;  %v10682_v48 = vld [vmem:[#allocation4 + $0x984] ss:$16 sps:$4 sm:$0xff]  }
 0xcce   :  { %7806 = vmatpush2.bf16.msra.mxu1 %v10608_v16  ;;  %v10685_v16 = vld [vmem:[#allocation4 + $0xb84] ss:$16 sps:$4 sm:$0xff]  }
 0xccf   :  { %7847 = vmatpush2.bf16.msra.mxu0 %v10611_v10  ;;  %7857 = vmatprep.subr.bf16.mxu1 %v10616_v41  ;;  %v10680_v10 = vld [vmem:[#allocation4 + $0x980] ss:$16 sps:$4 sm:$0xff]  }
 0xcd0   :  { %7898 = vmatprep.subr.bf16.mxu0 %v10619_v23  ;;  %v10683_v41 = vld [vmem:[#allocation4 + $0xb80] ss:$16 sps:$4 sm:$0xff]   ;;  %v10688_v23 = vld [vmem:[#allocation4 + $0x964] ss:$16 sps:$4 sm:$0xff]  }
 0xcd1   :  { %7808 = vmatmul.mubr.bf16.vlgmr.msra.gmra.mxu1 %v12394_v6 }
 0xcd2   :  { %7849 = vmatmul.mubr.bf16.vlgmr.msra.gmra.mxu0 %v12398_v11  ;;  %7858 = vmatpush1.bf16.msra.mxu1 %v10614_v38  ;;  %v10691_v38 = vld [vmem:[#allocation4 + $0xb64] ss:$16 sps:$4 sm:$0xff]  }
 0xcd3   :  { %7899 = vmatpush1.bf16.msra.mxu0 %v10617_v60  ;;  %7859 = vmatprep.subr.bf16.mxu1 %v10622_v54  ;;  %v10686_v60 = vld [vmem:[#allocation4 + $0x960] ss:$16 sps:$4 sm:$0xff]  }
 0xcd4   :  { %7900 = vmatprep.subr.bf16.mxu0 %v10625_v61  ;;  %7889 = vmatprep.mubr.bf16.mxu1 %v12404_v8  ;;  %v10689_v54 = vld [vmem:[#allocation4 + $0xb60] ss:$16 sps:$4 sm:$0xff]   ;;  %v10694_v61 = vld [vmem:[#allocation4 + $0x944] ss:$16 sps:$4 sm:$0xff]  }
 0xcd5   :  { %7930 = vmatprep.mubr.bf16.mxu0 %v12408_v5 }
 0xcd6   :  { %7860 = vmatpush1.bf16.msra.mxu1 %v10620_v1  ;;  %v10697_v1 = vld [vmem:[#allocation4 + $0xb44] ss:$16 sps:$4 sm:$0xff]  }
 0xcd7   :  { %7901 = vmatpush1.bf16.msra.mxu0 %v10623_v17  ;;  %7861 = vmatprep.subr.bf16.mxu1 %v10628_v53  ;;  %v10692_v17 = vld [vmem:[#allocation4 + $0x940] ss:$16 sps:$4 sm:$0xff]  }
 0xcd8   :  { %7902 = vmatprep.subr.bf16.mxu0 %v10631_v13  ;;  %v10695_v53 = vld [vmem:[#allocation4 + $0xb40] ss:$16 sps:$4 sm:$0xff]   ;;  %v10700_v13 = vld [vmem:[#allocation4 + $0x924] ss:$16 sps:$4 sm:$0xff]  }
 0xcda   :  { %7862 = vmatpush1.bf16.msra.mxu1 %v10626_v51  ;;  %v10703_v51 = vld [vmem:[#allocation4 + $0xb24] ss:$16 sps:$4 sm:$0xff]  }
 0xcdb   :  { %7903 = vmatpush1.bf16.msra.mxu0 %v10629_v22  ;;  %7863 = vmatprep.subr.bf16.mxu1 %v10634_v35  ;;  %v10698_v22 = vld [vmem:[#allocation4 + $0x920] ss:$16 sps:$4 sm:$0xff]  }
 0xcdc   :  { %7904 = vmatprep.subr.bf16.mxu0 %v10637_v62  ;;  %v10701_v35 = vld [vmem:[#allocation4 + $0xb20] ss:$16 sps:$4 sm:$0xff]   ;;  %v10706_v62 = vld [vmem:[#allocation4 + $0x904] ss:$16 sps:$4 sm:$0xff]  }
 0xcde   :  { %7864 = vmatpush1.bf16.msra.mxu1 %v10632_v29  ;;  %v10709_v29 = vld [vmem:[#allocation4 + $0xb04] ss:$16 sps:$4 sm:$0xff]  }
 0xcdf   :  { %7905 = vmatpush1.bf16.msra.mxu0 %v10635_v18  ;;  %7865 = vmatprep.subr.bf16.mxu1 %v10640_v31  ;;  %v10704_v18 = vld [vmem:[#allocation4 + $0x900] ss:$16 sps:$4 sm:$0xff]  }
 0xce0   :  { %7906 = vmatprep.subr.bf16.mxu0 %v10643_v36  ;;  %v10707_v31 = vld [vmem:[#allocation4 + $0xb00] ss:$16 sps:$4 sm:$0xff]   ;;  %v10712_v36 = vld [vmem:[#allocation4 + $0xec] ss:$16 sps:$4 sm:$0xff]  }
 0xce2   :  { %7866 = vmatpush1.bf16.msra.mxu1 %v10638_v27  ;;  %v10715_v27 = vld [vmem:[#allocation4 + $0x2ec] ss:$16 sps:$4 sm:$0xff]  }
 0xce3   :  { %7907 = vmatpush1.bf16.msra.mxu0 %v10641_v63  ;;  %7867 = vmatprep.subr.bf16.mxu1 %v10646_v33  ;;  %v10710_v63 = vld [vmem:[#allocation4 + $0xe8] ss:$16 sps:$4 sm:$0xff]  }
 0xce4   :  { %7908 = vmatprep.subr.bf16.mxu0 %v10649_v34  ;;  %v10713_v33 = vld [vmem:[#allocation4 + $0x2e8] ss:$16 sps:$4 sm:$0xff]   ;;  %v10718_v34 = vld [vmem:[#allocation4 + $0xcc] ss:$16 sps:$4 sm:$0xff]  }
 0xce6   :  { %7868 = vmatpush1.bf16.msra.mxu1 %v10644_v15  ;;  %v10721_v15 = vld [vmem:[#allocation4 + $0x2cc] ss:$16 sps:$4 sm:$0xff]  }
 0xce7   :  { %7909 = vmatpush1.bf16.msra.mxu0 %v10647_v25  ;;  %7869 = vmatprep.subr.bf16.mxu1 %v10652_v2  ;;  %v10716_v25 = vld [vmem:[#allocation4 + $0xc8] ss:$16 sps:$4 sm:$0xff]  }
 0xce8   :  { %7910 = vmatprep.subr.bf16.mxu0 %v10655_v56  ;;  %v10719_v2 = vld [vmem:[#allocation4 + $0x2c8] ss:$16 sps:$4 sm:$0xff]   ;;  %v10724_v56 = vld [vmem:[#allocation4 + $0xac] ss:$16 sps:$4 sm:$0xff]  }
 0xcea   :  { %7870 = vmatpush1.bf16.msra.mxu1 %v10650_v37  ;;  %v10727_v37 = vld [vmem:[#allocation4 + $0x2ac] ss:$16 sps:$4 sm:$0xff]  }
 0xceb   :  { %7911 = vmatpush1.bf16.msra.mxu0 %v10653_v40  ;;  %7871 = vmatprep.subr.bf16.mxu1 %v10658_v50  ;;  %v10722_v40 = vld [vmem:[#allocation4 + $0xa8] ss:$16 sps:$4 sm:$0xff]  }
 0xcec   :  { %7912 = vmatprep.subr.bf16.mxu0 %v10661_v21  ;;  %v10725_v50 = vld [vmem:[#allocation4 + $0x2a8] ss:$16 sps:$4 sm:$0xff]   ;;  %v10730_v21 = vld [vmem:[#allocation4 + $0x8c] ss:$16 sps:$4 sm:$0xff]  }
 0xcee   :  { %7872 = vmatpush1.bf16.msra.mxu1 %v10656_v3  ;;  %v10733_v3 = vld [vmem:[#allocation4 + $0x28c] ss:$16 sps:$4 sm:$0xff]  }
 0xcef   :  { %7913 = vmatpush1.bf16.msra.mxu0 %v10659_v30  ;;  %7873 = vmatprep.subr.bf16.mxu1 %v10664_v46  ;;  %v10728_v30 = vld [vmem:[#allocation4 + $0x88] ss:$16 sps:$4 sm:$0xff]  }
 0xcf0   :  { %7914 = vmatprep.subr.bf16.mxu0 %v10667_v32  ;;  %v10731_v46 = vld [vmem:[#allocation4 + $0x288] ss:$16 sps:$4 sm:$0xff]   ;;  %v10736_v32 = vld [vmem:[#allocation4 + $0x6c] ss:$16 sps:$4 sm:$0xff]  }
 0xcf2   :  { %7874 = vmatpush2.bf16.msra.mxu1 %v10662_v26  ;;  %v10739_v26 = vld [vmem:[#allocation4 + $0x26c] ss:$16 sps:$4 sm:$0xff]  }
 0xcf3   :  { %7915 = vmatpush2.bf16.msra.mxu0 %v10665_v12  ;;  %7875 = vmatprep.subr.bf16.mxu1 %v10670_v57  ;;  %v10734_v12 = vld [vmem:[#allocation4 + $0x68] ss:$16 sps:$4 sm:$0xff]   ;;  %v10745_v57 = vld [vmem:[#allocation4 + $0x24c] ss:$16 sps:$4 sm:$0xff]  }
 0xcf4   :  { %7916 = vmatprep.subr.bf16.mxu0 %v10673_v14  ;;  %v10740_v14 = vld [vmem:[#allocation4 + $0x48] ss:$16 sps:$4 sm:$0xff]  }
 0xcf6   :  { %7876 = vmatpush2.bf16.msra.mxu1 %v10668_v39  ;;  %v10743_v39 = vld [vmem:[#allocation4 + $0x248] ss:$16 sps:$4 sm:$0xff]  }
 0xcf7   :  { %7917 = vmatpush2.bf16.msra.mxu0 %v10671_v43  ;;  %7877 = vmatprep.subr.bf16.mxu1 %v10676_v44  ;;  %v10748_v43 = vld [vmem:[#allocation4 + $0x2c] ss:$16 sps:$4 sm:$0xff]  }
 0xcf8   :  { %7918 = vmatprep.subr.bf16.mxu0 %v10679_v28  ;;  %v10751_v44 = vld [vmem:[#allocation4 + $0x22c] ss:$16 sps:$4 sm:$0xff]   ;;  %v10746_v28 = vld [vmem:[#allocation4 + $0x28] ss:$16 sps:$4 sm:$0xff]  }
 0xcfa   :  { %7878 = vmatpush2.bf16.msra.mxu1 %v10674_v20  ;;  %v10749_v20 = vld [vmem:[#allocation4 + $0x228] ss:$16 sps:$4 sm:$0xff]  }
 0xcfb   :  { %7919 = vmatpush2.bf16.msra.mxu0 %v10677_v47  ;;  %7879 = vmatprep.subr.bf16.mxu1 %v10682_v48  ;;  %v10754_v47 = vld [vmem:[#allocation4 + $0xc] ss:$16 sps:$4 sm:$0xff]  }
 0xcfc   :  { %7920 = vmatprep.subr.bf16.mxu0 %v10685_v16  ;;  %v10757_v48 = vld [vmem:[#allocation4 + $0x20c] ss:$16 sps:$4 sm:$0xff]   ;;  %v10752_v16 = vld [vmem:[#allocation4 + $0x8] ss:$16 sps:$4 sm:$0xff]  }
 0xcfe   :  { %7880 = vmatpush2.bf16.msra.mxu1 %v10680_v10  ;;  %v10755_v10 = vld [vmem:[#allocation4 + $0x208] ss:$16 sps:$4 sm:$0xff]  }
 0xcff   :  { %7921 = vmatpush2.bf16.msra.mxu0 %v10683_v41  ;;  %7881 = vmatprep.subr.bf16.mxu1 %v10688_v23  ;;  %v10760_v41 = vld [vmem:[#allocation4 + $0x1ec] ss:$16 sps:$4 sm:$0xff]  }
 0xd00   :  { %7922 = vmatprep.subr.bf16.mxu0 %v10691_v38  ;;  %v10763_v23 = vld [vmem:[#allocation4 + $0x3ec] ss:$16 sps:$4 sm:$0xff]   ;;  %v10758_v38 = vld [vmem:[#allocation4 + $0x1e8] ss:$16 sps:$4 sm:$0xff]  }
 0xd02   :  { %7882 = vmatpush2.bf16.msra.mxu1 %v10686_v60  ;;  %v10761_v60 = vld [vmem:[#allocation4 + $0x3e8] ss:$16 sps:$4 sm:$0xff]  }
 0xd03   :  { %7923 = vmatpush2.bf16.msra.mxu0 %v10689_v54  ;;  %7883 = vmatprep.subr.bf16.mxu1 %v10694_v61  ;;  %v10766_v54 = vld [vmem:[#allocation4 + $0x1cc] ss:$16 sps:$4 sm:$0xff]  }
 0xd04   :  { %7924 = vmatprep.subr.bf16.mxu0 %v10697_v1  ;;  %v10769_v61 = vld [vmem:[#allocation4 + $0x3cc] ss:$16 sps:$4 sm:$0xff]   ;;  %v10764_v1 = vld [vmem:[#allocation4 + $0x1c8] ss:$16 sps:$4 sm:$0xff]  }
 0xd06   :  { %7884 = vmatpush2.bf16.msra.mxu1 %v10692_v17  ;;  %v10767_v17 = vld [vmem:[#allocation4 + $0x3c8] ss:$16 sps:$4 sm:$0xff]  }
 0xd07   :  { %7925 = vmatpush2.bf16.msra.mxu0 %v10695_v53  ;;  %7885 = vmatprep.subr.bf16.mxu1 %v10700_v13  ;;  %v10772_v53 = vld [vmem:[#allocation4 + $0x1ac] ss:$16 sps:$4 sm:$0xff]  }
 0xd08   :  { %7926 = vmatprep.subr.bf16.mxu0 %v10703_v51  ;;  %v10775_v13 = vld [vmem:[#allocation4 + $0x3ac] ss:$16 sps:$4 sm:$0xff]   ;;  %v10770_v51 = vld [vmem:[#allocation4 + $0x1a8] ss:$16 sps:$4 sm:$0xff]  }
 0xd0a   :  { %7886 = vmatpush2.bf16.msra.mxu1 %v10698_v22  ;;  %v10773_v22 = vld [vmem:[#allocation4 + $0x3a8] ss:$16 sps:$4 sm:$0xff]  }
 0xd0b   :  { %7927 = vmatpush2.bf16.msra.mxu0 %v10701_v35  ;;  %7887 = vmatprep.subr.bf16.mxu1 %v10706_v62  ;;  %v10778_v35 = vld [vmem:[#allocation4 + $0x18c] ss:$16 sps:$4 sm:$0xff]  }
 0xd0c   :  { %7928 = vmatprep.subr.bf16.mxu0 %v10709_v29  ;;  %v10781_v62 = vld [vmem:[#allocation4 + $0x38c] ss:$16 sps:$4 sm:$0xff]   ;;  %v10776_v29 = vld [vmem:[#allocation4 + $0x188] ss:$16 sps:$4 sm:$0xff]  }
 0xd0e   :  { %7888 = vmatpush2.bf16.msra.mxu1 %v10704_v18  ;;  %v10779_v18 = vld [vmem:[#allocation4 + $0x388] ss:$16 sps:$4 sm:$0xff]  }
 0xd0f   :  { %7929 = vmatpush2.bf16.msra.mxu0 %v10707_v31  ;;  %7939 = vmatprep.subr.bf16.mxu1 %v10712_v36  ;;  %v10784_v31 = vld [vmem:[#allocation4 + $0x16c] ss:$16 sps:$4 sm:$0xff]  }
 0xd10   :  { %7980 = vmatprep.subr.bf16.mxu0 %v10715_v27  ;;  %v10787_v36 = vld [vmem:[#allocation4 + $0x36c] ss:$16 sps:$4 sm:$0xff]   ;;  %v10782_v27 = vld [vmem:[#allocation4 + $0x168] ss:$16 sps:$4 sm:$0xff]  }
 0xd11   :  { %7890 = vmatmul.mubr.bf16.vlgmr.msra.gmra.mxu1 %v12402_v45 }
 0xd12   :  { %7931 = vmatmul.mubr.bf16.vlgmr.msra.gmra.mxu0 %v12406_v7  ;;  %7940 = vmatpush1.bf16.msra.mxu1 %v10710_v63  ;;  %v10785_v63 = vld [vmem:[#allocation4 + $0x368] ss:$16 sps:$4 sm:$0xff]  }
 0xd13   :  { %7981 = vmatpush1.bf16.msra.mxu0 %v10713_v33  ;;  %7941 = vmatprep.subr.bf16.mxu1 %v10718_v34  ;;  %v10790_v33 = vld [vmem:[#allocation4 + $0x14c] ss:$16 sps:$4 sm:$0xff]  }
 0xd14   :  { %7982 = vmatprep.subr.bf16.mxu0 %v10721_v15  ;;  %7971 = vmatprep.mubr.bf16.mxu1 %v12388_v24  ;;  %v10737_v24 = vld [vmem:[#allocation4 + $0x268] ss:$16 sps:$4 sm:$0xff]   ;;  %v10793_v34 = vld [vmem:[#allocation4 + $0x34c] ss:$16 sps:$4 sm:$0xff]  }
 0xd15   :  { %8012 = vmatprep.mubr.bf16.mxu0 %v12392_v52  ;;  %v10742_v52 = vld [vmem:[#allocation4 + $0x4c] ss:$16 sps:$4 sm:$0xff]   ;;  %v10788_v15 = vld [vmem:[#allocation4 + $0x148] ss:$16 sps:$4 sm:$0xff]  }
 0xd16   :  { %7942 = vmatpush1.bf16.msra.mxu1 %v10716_v25  ;;  %v10791_v25 = vld [vmem:[#allocation4 + $0x348] ss:$16 sps:$4 sm:$0xff]  }
 0xd17   :  { %7983 = vmatpush1.bf16.msra.mxu0 %v10719_v2  ;;  %7943 = vmatprep.subr.bf16.mxu1 %v10724_v56  ;;  %v10796_v2 = vld [vmem:[#allocation4 + $0x12c] ss:$16 sps:$4 sm:$0xff]  }
 0xd18   :  { %7984 = vmatprep.subr.bf16.mxu0 %v10727_v37  ;;  %v10799_v56 = vld [vmem:[#allocation4 + $0x32c] ss:$16 sps:$4 sm:$0xff]   ;;  %v10794_v37 = vld [vmem:[#allocation4 + $0x128] ss:$16 sps:$4 sm:$0xff]  }
 0xd1a   :  { %7944 = vmatpush1.bf16.msra.mxu1 %v10722_v40  ;;  %v10797_v40 = vld [vmem:[#allocation4 + $0x328] ss:$16 sps:$4 sm:$0xff]  }
 0xd1b   :  { %7985 = vmatpush1.bf16.msra.mxu0 %v10725_v50  ;;  %7945 = vmatprep.subr.bf16.mxu1 %v10730_v21  ;;  %v10802_v50 = vld [vmem:[#allocation4 + $0x10c] ss:$16 sps:$4 sm:$0xff]  }
 0xd1c   :  { %7986 = vmatprep.subr.bf16.mxu0 %v10733_v3  ;;  %v10805_v21 = vld [vmem:[#allocation4 + $0x30c] ss:$16 sps:$4 sm:$0xff]   ;;  %v10800_v3 = vld [vmem:[#allocation4 + $0x108] ss:$16 sps:$4 sm:$0xff]  }
 0xd1e   :  { %7946 = vmatpush1.bf16.msra.mxu1 %v10728_v30  ;;  %v10803_v30 = vld [vmem:[#allocation4 + $0x308] ss:$16 sps:$4 sm:$0xff]  }
 0xd1f   :  { %7987 = vmatpush1.bf16.msra.mxu0 %v10731_v46  ;;  %7947 = vmatprep.subr.bf16.mxu1 %v10736_v32  ;;  %v12424_v46 = vld [vmem:[#allocation20] sm:$0xf]  ;;  %v10808_v32 = vld [vmem:[#allocation4 + $0x4ec] ss:$16 sps:$4 sm:$0xff]  }
 0xd20   :  { %7988 = vmatprep.subr.bf16.mxu0 %v10739_v26  ;;  %v10811_v26 = vld [vmem:[#allocation4 + $0x6ec] ss:$16 sps:$4 sm:$0xff]  }
 0xd22   :  { %7948 = vmatpush1.bf16.msra.mxu1 %v10734_v12  ;;  %v10806_v12 = vld [vmem:[#allocation4 + $0x4e8] ss:$16 sps:$4 sm:$0xff]  }
 0xd23   :  { %7989 = vmatpush1.bf16.msra.mxu0 %v10737_v24  ;;  %7949 = vmatprep.subr.bf16.mxu1 %v10742_v52  ;;  %v10809_v24 = vld [vmem:[#allocation4 + $0x6e8] ss:$16 sps:$4 sm:$0xff]   ;;  %v5756_v52 = vrot.slane %v12424_v46, %v12044_v4 }
 0xd24   :  { %7990 = vmatprep.subr.bf16.mxu0 %v10745_v57  ;;  %v10814_v57 = vld [vmem:[#allocation4 + $0x4cc] ss:$16 sps:$4 sm:$0xff]  }
 0xd26   :  { %7950 = vmatpush1.bf16.msra.mxu1 %v10740_v14  ;;  %v10817_v14 = vld [vmem:[#allocation4 + $0x6cc] ss:$16 sps:$4 sm:$0xff]  }
 0xd27   :  { %7991 = vmatpush1.bf16.msra.mxu0 %v10743_v39  ;;  %7951 = vmatprep.subr.bf16.mxu1 %v10748_v43  ;;  %v5760_v39 = vrot.slane %v12424_v46, %v12047_v9  ;;  %v10812_v43 = vld [vmem:[#allocation4 + $0x4c8] ss:$16 sps:$4 sm:$0xff]  }
 0xd28   :  { %7992 = vmatprep.subr.bf16.mxu0 %v10751_v44  ;;  %v10815_v44 = vld [vmem:[#allocation4 + $0x6c8] ss:$16 sps:$4 sm:$0xff]  }
 0xd2a   :  { %7952 = vmatpush1.bf16.msra.mxu1 %v10746_v28 }
 0xd2b   :  { %7993 = vmatpush1.bf16.msra.mxu0 %v10749_v20  ;;  %7953 = vmatprep.subr.bf16.mxu1 %v10754_v47  ;;  %v10820_v47 = vld [vmem:[#allocation4 + $0x4ac] ss:$16 sps:$4 sm:$0xff]  }
 0xd2c   :  { %7994 = vmatprep.subr.bf16.mxu0 %v10757_v48 }
 0xd2e   :  { %7954 = vmatpush1.bf16.msra.mxu1 %v10752_v16 }
 0xd2f   :  { %7995 = vmatpush1.bf16.msra.mxu0 %v10755_v10  ;;  %7955 = vmatprep.subr.bf16.mxu1 %v10760_v41  ;;  %v10823_v10 = vld [vmem:[#allocation4 + $0x6ac] ss:$16 sps:$4 sm:$0xff]  }
 0xd30   :  { %7996 = vmatprep.subr.bf16.mxu0 %v10763_v23  ;;  %v10818_v23 = vld [vmem:[#allocation4 + $0x4a8] ss:$16 sps:$4 sm:$0xff]  }
 0xd32   :  { %7956 = vmatpush2.bf16.msra.mxu1 %v10758_v38  ;;  %v10821_v38 = vld [vmem:[#allocation4 + $0x6a8] ss:$16 sps:$4 sm:$0xff]  }
 0xd33   :  { %7997 = vmatpush2.bf16.msra.mxu0 %v10761_v60  ;;  %7957 = vmatprep.subr.bf16.mxu1 %v10766_v54  ;;  %v10826_v60 = vld [vmem:[#allocation4 + $0x48c] ss:$16 sps:$4 sm:$0xff]  }
 0xd34   :  { %7998 = vmatprep.subr.bf16.mxu0 %v10769_v61 }
 0xd36   :  { %7958 = vmatpush2.bf16.msra.mxu1 %v10764_v1 }
 0xd37   :  { %7999 = vmatpush2.bf16.msra.mxu0 %v10767_v17  ;;  %7959 = vmatprep.subr.bf16.mxu1 %v10772_v53  ;;  %v10829_v17 = vld [vmem:[#allocation4 + $0x68c] ss:$16 sps:$4 sm:$0xff]   ;;  %v10824_v53 = vld [vmem:[#allocation4 + $0x488] ss:$16 sps:$4 sm:$0xff]  }
 0xd38   :  { %8000 = vmatprep.subr.bf16.mxu0 %v10775_v13  ;;  %v10827_v13 = vld [vmem:[#allocation4 + $0x688] ss:$16 sps:$4 sm:$0xff]  }
 0xd3a   :  { %7960 = vmatpush2.bf16.msra.mxu1 %v10770_v51  ;;  %v10832_v51 = vld [vmem:[#allocation4 + $0x46c] ss:$16 sps:$4 sm:$0xff]  }
 0xd3b   :  { %8001 = vmatpush2.bf16.msra.mxu0 %v10773_v22  ;;  %7961 = vmatprep.subr.bf16.mxu1 %v10778_v35  ;;  %v10833_v22 = vld [vmem:[#allocation4 + $0x668] ss:$16 sps:$4 sm:$0xff]   ;;  %v10838_v35 = vld [vmem:[#allocation4 + $0x44c] ss:$16 sps:$4 sm:$0xff]  }
 0xd3c   :  { %8002 = vmatprep.subr.bf16.mxu0 %v10781_v62  ;;  %v10841_v62 = vld [vmem:[#allocation4 + $0x64c] ss:$16 sps:$4 sm:$0xff]  }
 0xd3e   :  { %7962 = vmatpush2.bf16.msra.mxu1 %v10776_v29  ;;  %v10836_v29 = vld [vmem:[#allocation4 + $0x448] ss:$16 sps:$4 sm:$0xff]  }
 0xd3f   :  { %8003 = vmatpush2.bf16.msra.mxu0 %v10779_v18  ;;  %7963 = vmatprep.subr.bf16.mxu1 %v10784_v31  ;;  %v10839_v18 = vld [vmem:[#allocation4 + $0x648] ss:$16 sps:$4 sm:$0xff]   ;;  %v10844_v31 = vld [vmem:[#allocation4 + $0x42c] ss:$16 sps:$4 sm:$0xff]  }
 0xd40   :  { %8004 = vmatprep.subr.bf16.mxu0 %v10787_v36  ;;  %v10847_v36 = vld [vmem:[#allocation4 + $0x62c] ss:$16 sps:$4 sm:$0xff]  }
 0xd42   :  { %7964 = vmatpush2.bf16.msra.mxu1 %v10782_v27  ;;  %v10842_v27 = vld [vmem:[#allocation4 + $0x428] ss:$16 sps:$4 sm:$0xff]  }
 0xd43   :  { %8005 = vmatpush2.bf16.msra.mxu0 %v10785_v63  ;;  %7965 = vmatprep.subr.bf16.mxu1 %v10790_v33  ;;  %v10845_v63 = vld [vmem:[#allocation4 + $0x628] ss:$16 sps:$4 sm:$0xff]   ;;  %v10850_v33 = vld [vmem:[#allocation4 + $0x40c] ss:$16 sps:$4 sm:$0xff]  }
 0xd44   :  { %8006 = vmatprep.subr.bf16.mxu0 %v10793_v34  ;;  %v10853_v34 = vld [vmem:[#allocation4 + $0x60c] ss:$16 sps:$4 sm:$0xff]  }
 0xd46   :  { %7966 = vmatpush2.bf16.msra.mxu1 %v10788_v15  ;;  %v10848_v15 = vld [vmem:[#allocation4 + $0x408] ss:$16 sps:$4 sm:$0xff]  }
 0xd47   :  { %8007 = vmatpush2.bf16.msra.mxu0 %v10791_v25  ;;  %7967 = vmatprep.subr.bf16.mxu1 %v10796_v2  ;;  %v10851_v25 = vld [vmem:[#allocation4 + $0x608] ss:$16 sps:$4 sm:$0xff]   ;;  %v10856_v2 = vld [vmem:[#allocation4 + $0x5ec] ss:$16 sps:$4 sm:$0xff]  }
 0xd48   :  { %8008 = vmatprep.subr.bf16.mxu0 %v10799_v56  ;;  %v10859_v56 = vld [vmem:[#allocation4 + $0x7ec] ss:$16 sps:$4 sm:$0xff]  }
 0xd4a   :  { %7968 = vmatpush2.bf16.msra.mxu1 %v10794_v37  ;;  %v10854_v37 = vld [vmem:[#allocation4 + $0x5e8] ss:$16 sps:$4 sm:$0xff]  }
 0xd4b   :  { %8009 = vmatpush2.bf16.msra.mxu0 %v10797_v40  ;;  %7969 = vmatprep.subr.bf16.mxu1 %v10802_v50  ;;  %v10857_v40 = vld [vmem:[#allocation4 + $0x7e8] ss:$16 sps:$4 sm:$0xff]   ;;  %v10862_v50 = vld [vmem:[#allocation4 + $0x5cc] ss:$16 sps:$4 sm:$0xff]  }
 0xd4c   :  { %8010 = vmatprep.subr.bf16.mxu0 %v10805_v21  ;;  %v10865_v21 = vld [vmem:[#allocation4 + $0x7cc] ss:$16 sps:$4 sm:$0xff]  }
 0xd4e   :  { %7970 = vmatpush2.bf16.msra.mxu1 %v10800_v3  ;;  %v10860_v3 = vld [vmem:[#allocation4 + $0x5c8] ss:$16 sps:$4 sm:$0xff]  }
 0xd4f   :  { %8011 = vmatpush2.bf16.msra.mxu0 %v10803_v30  ;;  %8021 = vmatprep.subr.bf16.mxu1 %v10808_v32  ;;  %v10863_v30 = vld [vmem:[#allocation4 + $0x7c8] ss:$16 sps:$4 sm:$0xff]   ;;  %v10868_v32 = vld [vmem:[#allocation4 + $0x5ac] ss:$16 sps:$4 sm:$0xff]  }
 0xd50   :  { %8062 = vmatprep.subr.bf16.mxu0 %v10811_v26  ;;  %v10871_v26 = vld [vmem:[#allocation4 + $0x7ac] ss:$16 sps:$4 sm:$0xff]  }
 0xd51   :  { %v7727_v28 = vpop.f32.mrf.mxu1  ;;  %7972 = vmatmul.mubr.bf16.vlgmr.msra.gmra.mxu1 %v12386_v55 }
 0xd52   :  { %v7768_v20 = vpop.f32.mrf.mxu0  ;;  %8013 = vmatmul.mubr.bf16.vlgmr.msra.gmra.mxu0 %v12390_v58  ;;  %v7728_v48 = vadd.f32 %v7727_v28, %v5756_v52  ;;  %8022 = vmatpush1.bf16.msra.mxu1 %v10806_v12  ;;  %v10866_v12 = vld [vmem:[#allocation4 + $0x5a8] ss:$16 sps:$4 sm:$0xff]   ;;  %v10874_v52 = vld [vmem:[#allocation4 + $0x58c] ss:$16 sps:$4 sm:$0xff]  }
 0xd53   :  { %8063 = vmatpush1.bf16.msra.mxu0 %v10809_v24  ;;  %v7729_v4 = vpop.f32.mrf.mxu1  ;;  %8023 = vmatprep.subr.bf16.mxu1 %v10814_v57  ;;  %v10869_v24 = vld [vmem:[#allocation4 + $0x7a8] ss:$16 sps:$4 sm:$0xff]   ;;  %v10877_v57 = vld [vmem:[#allocation4 + $0x78c] ss:$16 sps:$4 sm:$0xff]  }
 0xd54   :  { %v7770_v16 = vpop.f32.mrf.mxu0  ;;  %8064 = vmatprep.subr.bf16.mxu0 %v10817_v14  ;;  %v12432_v41 = vadd.f32 %v7768_v20, %v7728_v48  ;;  %v7730_v9 = vadd.f32 %v7729_v4, %v5760_v39  ;;  %8053 = vmatprep.mubr.bf16.mxu1 %v12396_v49  ;;  %v10835_v49 = vld [vmem:[#allocation4 + $0x66c] ss:$16 sps:$4 sm:$0xff]   ;;  %v10872_v14 = vld [vmem:[#allocation4 + $0x588] ss:$16 sps:$4 sm:$0xff]  }
 0xd55   :  { %8094 = vmatprep.mubr.bf16.mxu0 %v12400_v19  ;;  %v7731_v55 = vpop.f32.mrf.mxu1  ;;  %v10830_v19 = vld [vmem:[#allocation4 + $0x468] ss:$16 sps:$4 sm:$0xff]   ;;  %v10889_v48 = vld [vmem:[#allocation4 + $0x74c] ss:$16 sps:$4 sm:$0xff]  }
 0xd56   :  { %v7772_v58 = vpop.f32.mrf.mxu0  ;;  %v12436_v54 = vadd.f32 %v7770_v16, %v7730_v9  ;;  %8024 = vmatpush1.bf16.msra.mxu1 %v10812_v43  ;;  %v10875_v39 = vld [vmem:[#allocation4 + $0x788] ss:$16 sps:$4 sm:$0xff]   ;;  %v10880_v43 = vld [vmem:[#allocation4 + $0x56c] ss:$16 sps:$4 sm:$0xff]  }
 0xd57   :  { %8065 = vmatpush1.bf16.msra.mxu0 %v10815_v44  ;;  %v7732_v61 = vpop.f32.mrf.mxu1  ;;  %8025 = vmatprep.subr.bf16.mxu1 %v10820_v47  ;;  %v10883_v44 = vld [vmem:[#allocation4 + $0x76c] ss:$16 sps:$4 sm:$0xff]   ;;  %v10878_v28 = vld [vmem:[#allocation4 + $0x568] ss:$16 sps:$4 sm:$0xff]  }
 0xd58   :  { %v7773_v1 = vpop.f32.mrf.mxu0  ;;  %8066 = vmatprep.subr.bf16.mxu0 %v10823_v10  ;;  %v10881_v20 = vld [vmem:[#allocation4 + $0x768] ss:$16 sps:$4 sm:$0xff]   ;;  %v10886_v47 = vld [vmem:[#allocation4 + $0x54c] ss:$16 sps:$4 sm:$0xff]  }
 0xd59   :  { %v10884_v4 = vld [vmem:[#allocation4 + $0x548] ss:$16 sps:$4 sm:$0xff]   ;;  %v10892_v10 = vld [vmem:[#allocation4 + $0x52c] ss:$16 sps:$4 sm:$0xff]  }
 0xd5a   :  { %8026 = vmatpush1.bf16.msra.mxu1 %v10818_v23  ;;  %v10887_v16 = vld [vmem:[#allocation4 + $0x748] ss:$16 sps:$4 sm:$0xff]   ;;  %v10895_v9 = vld [vmem:[#allocation4 + $0x72c] ss:$16 sps:$4 sm:$0xff]  }
 0xd5b   :  { %8067 = vmatpush1.bf16.msra.mxu0 %v10821_v38  ;;  %8027 = vmatprep.subr.bf16.mxu1 %v10826_v60  ;;  %v10890_v23 = vld [vmem:[#allocation4 + $0x528] ss:$16 sps:$4 sm:$0xff]   ;;  %v10898_v55 = vld [vmem:[#allocation4 + $0x50c] ss:$16 sps:$4 sm:$0xff]  }
 0xd5c   :  { %8068 = vmatprep.subr.bf16.mxu0 %v10829_v17  ;;  %v10893_v38 = vld [vmem:[#allocation4 + $0x728] ss:$16 sps:$4 sm:$0xff]   ;;  %v10901_v58 = vld [vmem:[#allocation4 + $0x70c] ss:$16 sps:$4 sm:$0xff]  }
 0xd5d   :  { %v10896_v60 = vld [vmem:[#allocation4 + $0x508] ss:$16 sps:$4 sm:$0xff]   ;;  %v10904_v1 = vld [vmem:[#allocation4 + $0x8ec] ss:$16 sps:$4 sm:$0xff]  }
 0xd5e   :  { %8028 = vmatpush1.bf16.msra.mxu1 %v10824_v53  ;;  %v10899_v61 = vld [vmem:[#allocation4 + $0x708] ss:$16 sps:$4 sm:$0xff]   ;;  %v10907_v17 = vld [vmem:[#allocation4 + $0xaec] ss:$16 sps:$4 sm:$0xff]  }
 0xd5f   :  { %8069 = vmatpush1.bf16.msra.mxu0 %v10827_v13  ;;  %8029 = vmatprep.subr.bf16.mxu1 %v10832_v51  ;;  %v10902_v53 = vld [vmem:[#allocation4 + $0x8e8] ss:$16 sps:$4 sm:$0xff]   ;;  %v10910_v51 = vld [vmem:[#allocation4 + $0x8cc] ss:$16 sps:$4 sm:$0xff]  }
 0xd60   :  { %8070 = vmatprep.subr.bf16.mxu0 %v10835_v49  ;;  %v10905_v13 = vld [vmem:[#allocation4 + $0xae8] ss:$16 sps:$4 sm:$0xff]   ;;  %v10913_v49 = vld [vmem:[#allocation4 + $0xacc] ss:$16 sps:$4 sm:$0xff]  }
 0xd62   :  { %8030 = vmatpush1.bf16.msra.mxu1 %v10830_v19 }
 0xd63   :  { %8071 = vmatpush1.bf16.msra.mxu0 %v10833_v22  ;;  %8031 = vmatprep.subr.bf16.mxu1 %v10838_v35 }
 0xd64   :  { %8072 = vmatprep.subr.bf16.mxu0 %v10841_v62  ;;  %v10908_v62 = vld [vmem:[#allocation4 + $0x8c8] ss:$16 sps:$4 sm:$0xff]  }
 0xd66   :  { %8032 = vmatpush1.bf16.msra.mxu1 %v10836_v29  ;;  %v10911_v29 = vld [vmem:[#allocation4 + $0xac8] ss:$16 sps:$4 sm:$0xff]  }
 0xd67   :  { %8073 = vmatpush1.bf16.msra.mxu0 %v10839_v18  ;;  %8033 = vmatprep.subr.bf16.mxu1 %v10844_v31 }
 0xd68   :  { %8074 = vmatprep.subr.bf16.mxu0 %v10847_v36  ;;  %v10916_v36 = vld [vmem:[#allocation4 + $0x8ac] ss:$16 sps:$4 sm:$0xff]  }
 0xd6a   :  { %8034 = vmatpush1.bf16.msra.mxu1 %v10842_v27  ;;  %v10919_v27 = vld [vmem:[#allocation4 + $0xaac] ss:$16 sps:$4 sm:$0xff]  }
 0xd6b   :  { %8075 = vmatpush1.bf16.msra.mxu0 %v10845_v63  ;;  %8035 = vmatprep.subr.bf16.mxu1 %v10850_v33  ;;  %v10917_v33 = vld [vmem:[#allocation4 + $0xaa8] ss:$16 sps:$4 sm:$0xff]  }
 0xd6c   :  { %8076 = vmatprep.subr.bf16.mxu0 %v10853_v34 }
 0xd6e   :  { %8036 = vmatpush1.bf16.msra.mxu1 %v10848_v15 }
 0xd6f   :  { %8077 = vmatpush1.bf16.msra.mxu0 %v10851_v25  ;;  %8037 = vmatprep.subr.bf16.mxu1 %v10856_v2  ;;  %v10922_v25 = vld [vmem:[#allocation4 + $0x88c] ss:$16 sps:$4 sm:$0xff]  }
 0xd70   :  { %8078 = vmatprep.subr.bf16.mxu0 %v10859_v56  ;;  %v10925_v2 = vld [vmem:[#allocation4 + $0xa8c] ss:$16 sps:$4 sm:$0xff]   ;;  %v10920_v56 = vld [vmem:[#allocation4 + $0x888] ss:$16 sps:$4 sm:$0xff]  }
 0xd72   :  { %8038 = vmatpush2.bf16.msra.mxu1 %v10854_v37  ;;  %v10923_v37 = vld [vmem:[#allocation4 + $0xa88] ss:$16 sps:$4 sm:$0xff]  }
 0xd73   :  { %8079 = vmatpush2.bf16.msra.mxu0 %v10857_v40  ;;  %8039 = vmatprep.subr.bf16.mxu1 %v10862_v50  ;;  %v10926_v40 = vld [vmem:[#allocation4 + $0x868] ss:$16 sps:$4 sm:$0xff]  }
 0xd74   :  { %8080 = vmatprep.subr.bf16.mxu0 %v10865_v21  ;;  %v10929_v50 = vld [vmem:[#allocation4 + $0xa68] ss:$16 sps:$4 sm:$0xff]   ;;  %v10934_v21 = vld [vmem:[#allocation4 + $0x84c] ss:$16 sps:$4 sm:$0xff]  }
 0xd76   :  { %8040 = vmatpush2.bf16.msra.mxu1 %v10860_v3  ;;  %v10937_v3 = vld [vmem:[#allocation4 + $0xa4c] ss:$16 sps:$4 sm:$0xff]  }
 0xd77   :  { %8081 = vmatpush2.bf16.msra.mxu0 %v10863_v30  ;;  %8041 = vmatprep.subr.bf16.mxu1 %v10868_v32  ;;  %v10932_v30 = vld [vmem:[#allocation4 + $0x848] ss:$16 sps:$4 sm:$0xff]  }
 0xd78   :  { %8082 = vmatprep.subr.bf16.mxu0 %v10871_v26  ;;  %v10935_v32 = vld [vmem:[#allocation4 + $0xa48] ss:$16 sps:$4 sm:$0xff]   ;;  %v10940_v26 = vld [vmem:[#allocation4 + $0x82c] ss:$16 sps:$4 sm:$0xff]  }
 0xd7a   :  { %8042 = vmatpush2.bf16.msra.mxu1 %v10866_v12  ;;  %v10943_v12 = vld [vmem:[#allocation4 + $0xa2c] ss:$16 sps:$4 sm:$0xff]  }
 0xd7b   :  { %8083 = vmatpush2.bf16.msra.mxu0 %v10869_v24  ;;  %8043 = vmatprep.subr.bf16.mxu1 %v10874_v52  ;;  %v10938_v24 = vld [vmem:[#allocation4 + $0x828] ss:$16 sps:$4 sm:$0xff]  }
 0xd7c   :  { %8084 = vmatprep.subr.bf16.mxu0 %v10877_v57  ;;  %v10941_v52 = vld [vmem:[#allocation4 + $0xa28] ss:$16 sps:$4 sm:$0xff]   ;;  %v10946_v57 = vld [vmem:[#allocation4 + $0x80c] ss:$16 sps:$4 sm:$0xff]  }
 0xd7e   :  { %8044 = vmatpush2.bf16.msra.mxu1 %v10872_v14  ;;  %v10949_v14 = vld [vmem:[#allocation4 + $0xa0c] ss:$16 sps:$4 sm:$0xff]  }
 0xd7f   :  { %8085 = vmatpush2.bf16.msra.mxu0 %v10875_v39  ;;  %8045 = vmatprep.subr.bf16.mxu1 %v10880_v43  ;;  %v10944_v39 = vld [vmem:[#allocation4 + $0x808] ss:$16 sps:$4 sm:$0xff]  }
 0xd80   :  { %8086 = vmatprep.subr.bf16.mxu0 %v10883_v44  ;;  %v10947_v43 = vld [vmem:[#allocation4 + $0xa08] ss:$16 sps:$4 sm:$0xff]   ;;  %v10952_v44 = vld [vmem:[#allocation4 + $0x9ec] ss:$16 sps:$4 sm:$0xff]  }
 0xd82   :  { %8046 = vmatpush2.bf16.msra.mxu1 %v10878_v28  ;;  %v10955_v28 = vld [vmem:[#allocation4 + $0xbec] ss:$16 sps:$4 sm:$0xff]  }
 0xd83   :  { %8087 = vmatpush2.bf16.msra.mxu0 %v10881_v20  ;;  %8047 = vmatprep.subr.bf16.mxu1 %v10886_v47  ;;  %v10950_v20 = vld [vmem:[#allocation4 + $0x9e8] ss:$16 sps:$4 sm:$0xff]  }
 0xd84   :  { %8088 = vmatprep.subr.bf16.mxu0 %v10889_v48  ;;  %v10953_v47 = vld [vmem:[#allocation4 + $0xbe8] ss:$16 sps:$4 sm:$0xff]   ;;  %v10958_v48 = vld [vmem:[#allocation4 + $0x9cc] ss:$16 sps:$4 sm:$0xff]  }
 0xd86   :  { %8048 = vmatpush2.bf16.msra.mxu1 %v10884_v4  ;;  %v10961_v4 = vld [vmem:[#allocation4 + $0xbcc] ss:$16 sps:$4 sm:$0xff]  }
 0xd87   :  { %8089 = vmatpush2.bf16.msra.mxu0 %v10887_v16  ;;  %8049 = vmatprep.subr.bf16.mxu1 %v10892_v10  ;;  %v10956_v16 = vld [vmem:[#allocation4 + $0x9c8] ss:$16 sps:$4 sm:$0xff]  }
 0xd88   :  { %8090 = vmatprep.subr.bf16.mxu0 %v10895_v9  ;;  %v10959_v10 = vld [vmem:[#allocation4 + $0xbc8] ss:$16 sps:$4 sm:$0xff]   ;;  %v10964_v9 = vld [vmem:[#allocation4 + $0x9ac] ss:$16 sps:$4 sm:$0xff]  }
 0xd8a   :  { %8050 = vmatpush2.bf16.msra.mxu1 %v10890_v23  ;;  %v10967_v23 = vld [vmem:[#allocation4 + $0xbac] ss:$16 sps:$4 sm:$0xff]  }
 0xd8b   :  { %8091 = vmatpush2.bf16.msra.mxu0 %v10893_v38  ;;  %8051 = vmatprep.subr.bf16.mxu1 %v10898_v55  ;;  %v10962_v38 = vld [vmem:[#allocation4 + $0x9a8] ss:$16 sps:$4 sm:$0xff]  }
 0xd8c   :  { %8092 = vmatprep.subr.bf16.mxu0 %v10901_v58  ;;  %v10965_v55 = vld [vmem:[#allocation4 + $0xba8] ss:$16 sps:$4 sm:$0xff]   ;;  %v10970_v58 = vld [vmem:[#allocation4 + $0x98c] ss:$16 sps:$4 sm:$0xff]  }
 0xd8e   :  { %8052 = vmatpush2.bf16.msra.mxu1 %v10896_v60  ;;  %v10973_v60 = vld [vmem:[#allocation4 + $0xb8c] ss:$16 sps:$4 sm:$0xff]  }
 0xd8f   :  { %8093 = vmatpush2.bf16.msra.mxu0 %v10899_v61  ;;  %8103 = vmatprep.subr.bf16.mxu1 %v10904_v1  ;;  %v10968_v61 = vld [vmem:[#allocation4 + $0x988] ss:$16 sps:$4 sm:$0xff]  }
 0xd90   :  { %8144 = vmatprep.subr.bf16.mxu0 %v10907_v17  ;;  %v10971_v1 = vld [vmem:[#allocation4 + $0xb88] ss:$16 sps:$4 sm:$0xff]   ;;  %v10976_v17 = vld [vmem:[#allocation4 + $0x96c] ss:$16 sps:$4 sm:$0xff]  }
 0xd91   :  { %v7809_v19 = vpop.f32.mrf.mxu1  ;;  %8054 = vmatmul.mubr.bf16.vlgmr.msra.gmra.mxu1 %v12394_v6 }
 0xd92   :  { %v7850_v22 = vpop.f32.mrf.mxu0  ;;  %8095 = vmatmul.mubr.bf16.vlgmr.msra.gmra.mxu0 %v12398_v11  ;;  %v7810_v35 = vadd.f32 %v7809_v19, %v12432_v41  ;;  %8104 = vmatpush1.bf16.msra.mxu1 %v10902_v53  ;;  %v10914_v41 = vld [vmem:[#allocation4 + $0x8a8] ss:$16 sps:$4 sm:$0xff]   ;;  %v10979_v53 = vld [vmem:[#allocation4 + $0xb6c] ss:$16 sps:$4 sm:$0xff]  }
 0xd93   :  { %8145 = vmatpush1.bf16.msra.mxu0 %v10905_v13  ;;  %v12441_v18 = vpop.f32.mrf.mxu1  ;;  %8105 = vmatprep.subr.bf16.mxu1 %v10910_v51  ;;  %v10974_v13 = vld [vmem:[#allocation4 + $0x968] ss:$16 sps:$4 sm:$0xff]   ;;  %v10985_v19 = vld [vmem:[#allocation4 + $0xb4c] ss:$16 sps:$4 sm:$0xff]  }
 0xd94   :  { %v12443_v31 = vpop.f32.mrf.mxu0  ;;  %8146 = vmatprep.subr.bf16.mxu0 %v10913_v49  ;;  %v12445_v63 = vadd.f32 %v7850_v22, %v7810_v35  ;;  %8135 = vmatprep.mubr.bf16.mxu1 %v12404_v8  ;;  %v10928_v8 = vld [vmem:[#allocation4 + $0x86c] ss:$16 sps:$4 sm:$0xff]   ;;  %v10977_v51 = vld [vmem:[#allocation4 + $0xb68] ss:$16 sps:$4 sm:$0xff]  }
 0xd95   :  { %8176 = vmatprep.mubr.bf16.mxu0 %v12408_v5  ;;  %v7813_v6 = vpop.f32.mrf.mxu1  ;;  %v10931_v5 = vld [vmem:[#allocation4 + $0xa6c] ss:$16 sps:$4 sm:$0xff]   ;;  %v10980_v22 = vld [vmem:[#allocation4 + $0x948] ss:$16 sps:$4 sm:$0xff]  }
 0xd96   :  { %v7854_v11 = vpop.f32.mrf.mxu0  ;;  %8106 = vmatpush1.bf16.msra.mxu1 %v10908_v62  ;;  %v10982_v49 = vld [vmem:[#allocation4 + $0x94c] ss:$16 sps:$4 sm:$0xff]   ;;  %v10983_v35 = vld [vmem:[#allocation4 + $0xb48] ss:$16 sps:$4 sm:$0xff]  }
 0xd97   :  { %8147 = vmatpush1.bf16.msra.mxu0 %v10911_v29  ;;  %v7814_v34 = vpop.f32.mrf.mxu1  ;;  %8107 = vmatprep.subr.bf16.mxu1 %v10916_v36  ;;  %v10988_v62 = vld [vmem:[#allocation4 + $0x92c] ss:$16 sps:$4 sm:$0xff]   ;;  %v10986_v36 = vld [vmem:[#allocation4 + $0x928] ss:$16 sps:$4 sm:$0xff]  }
 0xd98   :  { %v7855_v15 = vpop.f32.mrf.mxu0  ;;  %8148 = vmatprep.subr.bf16.mxu0 %v10919_v27  ;;  %v10991_v29 = vld [vmem:[#allocation4 + $0xb2c] ss:$16 sps:$4 sm:$0xff]   ;;  %v10989_v27 = vld [vmem:[#allocation4 + $0xb28] ss:$16 sps:$4 sm:$0xff]  }
 0xd99   :  { %v10994_v6 = vld [vmem:[#allocation4 + $0x90c] ss:$16 sps:$4 sm:$0xff]   ;;  %v7812_v15 = vadd.f32 %v12441_v18, %v12436_v54  ;;  %v11001_v18 = vld [vmem:[%s12595_s11 + $0x30] sm:$0xff]  }
 0xd9a   :  { %8108 = vmatpush1.bf16.msra.mxu1 %v10914_v41  ;;  %v10997_v11 = vld [vmem:[#allocation4 + $0xb0c] ss:$16 sps:$4 sm:$0xff]   ;;  %v10992_v41 = vld [vmem:[#allocation4 + $0x908] ss:$16 sps:$4 sm:$0xff]  }
 0xd9b   :  { %8149 = vmatpush1.bf16.msra.mxu0 %v10917_v33  ;;  %8109 = vmatprep.subr.bf16.mxu1 %v10922_v25  ;;  %v10995_v33 = vld [vmem:[#allocation4 + $0xb08] ss:$16 sps:$4 sm:$0xff]   ;;  %v7853_v54 = vadd.f32 %v12443_v31, %v7812_v15  ;;  %v11029_v15 = vld [vmem:[%s12595_s11 + $0x80] sm:$0xff]  }
 0xd9c   :  { %8150 = vmatprep.subr.bf16.mxu0 %v10925_v2  ;;  %v10998_v34 = vld [vmem:[%s12595_s11 + $0x78] sm:$0xff]   ;;  %v11000_v2 = vld [vmem:[%s12595_s11 + $0x70] sm:$0xff]   ;;  %v11003_v31 = vld [vmem:[%s12595_s11 + $0x28] sm:$0xff]  }
 0xd9d   :  { %v10999_v25 = vld [vmem:[%s12595_s11 + $0x38] sm:$0xff]  }
 0xd9e   :  { %8110 = vmatpush1.bf16.msra.mxu1 %v10920_v56 }
 0xd9f   :  { %8151 = vmatpush1.bf16.msra.mxu0 %v10923_v37  ;;  %8111 = vmatprep.subr.bf16.mxu1 %v10928_v8 }
 0xda0   :  { %8152 = vmatprep.subr.bf16.mxu0 %v10931_v5 }
 0xda2   :  { %8112 = vmatpush1.bf16.msra.mxu1 %v10926_v40  ;;  %v11002_v40 = vld [vmem:[%s12595_s11 + $0x68] sm:$0xff]  }
 0xda3   :  { %8153 = vmatpush1.bf16.msra.mxu0 %v10929_v50  ;;  %8113 = vmatprep.subr.bf16.mxu1 %v10934_v21 }
 0xda4   :  { %8154 = vmatprep.subr.bf16.mxu0 %v10937_v3 }
 0xda6   :  { %8114 = vmatpush1.bf16.msra.mxu1 %v10932_v30 }
 0xda7   :  { %8155 = vmatpush1.bf16.msra.mxu0 %v10935_v32  ;;  %8115 = vmatprep.subr.bf16.mxu1 %v10940_v26  ;;  %v11004_v32 = vld [vmem:[%s12595_s11 + $0x60] sm:$0xff]  }
 0xda8   :  { %8156 = vmatprep.subr.bf16.mxu0 %v10943_v12 }
 0xdaa   :  { %8116 = vmatpush1.bf16.msra.mxu1 %v10938_v24  ;;  %v11005_v24 = vld [vmem:[%s12595_s11 + $0x20] sm:$0xff]  }
 0xdab   :  { %8157 = vmatpush1.bf16.msra.mxu0 %v10941_v52  ;;  %8117 = vmatprep.subr.bf16.mxu1 %v10946_v57  ;;  %v11006_v52 = vld [vmem:[%s12595_s11 + $0x58] sm:$0xff]  }
 0xdac   :  { %8158 = vmatprep.subr.bf16.mxu0 %v10949_v14  ;;  %v11007_v57 = vld [vmem:[%s12595_s11 + $0x18] sm:$0xff]   ;;  %v11008_v14 = vld [vmem:[%s12595_s11 + $0x50] sm:$0xff]  }
 0xdae   :  { %8118 = vmatpush1.bf16.msra.mxu1 %v10944_v39  ;;  %v11009_v39 = vld [vmem:[%s12595_s11 + $0x10] sm:$0xff]  }
 0xdaf   :  { %8159 = vmatpush1.bf16.msra.mxu0 %v10947_v43  ;;  %8119 = vmatprep.subr.bf16.mxu1 %v10952_v44  ;;  %v11010_v44 = vld [vmem:[%s12595_s11 + $0x48] sm:$0xff]  }
 0xdb0   :  { %8160 = vmatprep.subr.bf16.mxu0 %v10955_v28  ;;  %v11011_v28 = vld [vmem:[%s12595_s11 + $0x8] sm:$0xff]  }
 0xdb2   :  { %8120 = vmatpush2.bf16.msra.mxu1 %v10950_v20 }
 0xdb3   :  { %8161 = vmatpush2.bf16.msra.mxu0 %v10953_v47  ;;  %8121 = vmatprep.subr.bf16.mxu1 %v10958_v48  ;;  %v11012_v47 = vld [vmem:[%s12595_s11 + $0x40] sm:$0xff]  }
 0xdb4   :  { %8162 = vmatprep.subr.bf16.mxu0 %v10961_v4  ;;  %v11014_v4 = vld [vmem:[%s12595_s11 + $0xf8] sm:$0xff]  }
 0xdb6   :  { %8122 = vmatpush2.bf16.msra.mxu1 %v10956_v16  ;;  %v11015_v16 = vld [vmem:[%s12595_s11 + $0xb8] sm:$0xff]  }
 0xdb7   :  { %8163 = vmatpush2.bf16.msra.mxu0 %v10959_v10  ;;  %8123 = vmatprep.subr.bf16.mxu1 %v10964_v9  ;;  %v11016_v9 = vld [vmem:[%s12595_s11 + $0xf0] sm:$0xff]  }
 0xdb8   :  { %8164 = vmatprep.subr.bf16.mxu0 %v10967_v23  ;;  %v11017_v23 = vld [vmem:[%s12595_s11 + $0xb0] sm:$0xff]  }
 0xdba   :  { %8124 = vmatpush2.bf16.msra.mxu1 %v10962_v38  ;;  %v11018_v38 = vld [vmem:[%s12595_s11 + $0xe8] sm:$0xff]  }
 0xdbb   :  { %8165 = vmatpush2.bf16.msra.mxu0 %v10965_v55  ;;  %8125 = vmatprep.subr.bf16.mxu1 %v10970_v58  ;;  %v11019_v55 = vld [vmem:[%s12595_s11 + $0xa8] sm:$0xff]   ;;  %v11020_v58 = vld [vmem:[%s12595_s11 + $0xe0] sm:$0xff]  }
 0xdbc   :  { %8166 = vmatprep.subr.bf16.mxu0 %v10973_v60  ;;  %v11021_v60 = vld [vmem:[%s12595_s11 + $0xa0] sm:$0xff]  }
 0xdbe   :  { %8126 = vmatpush2.bf16.msra.mxu1 %v10968_v61  ;;  %v11022_v61 = vld [vmem:[%s12595_s11 + $0xd8] sm:$0xff]  }
 0xdbf   :  { %8167 = vmatpush2.bf16.msra.mxu0 %v10971_v1  ;;  %8127 = vmatprep.subr.bf16.mxu1 %v10976_v17  ;;  %v11023_v1 = vld [vmem:[%s12595_s11 + $0x98] sm:$0xff]   ;;  %v5767_v17 = vsub.s32 3, %v12041_v59  ;;  %v11026_v59 = vld [vmem:[%s12595_s11 + $0xc8] sm:$0xff]  }
 0xdc0   :  { %8168 = vmatprep.subr.bf16.mxu0 %v10979_v53  ;;  %v5764_v53 = vrot.slane %v12424_v46, %v1891_v42 }
 0xdc2   :  { %8128 = vmatpush2.bf16.msra.mxu1 %v10974_v13  ;;  %v11024_v13 = vld [vmem:[%s12595_s11 + $0xd0] sm:$0xff]  }
 0xdc3   :  { %8169 = vmatpush2.bf16.msra.mxu0 %v10977_v51  ;;  %8129 = vmatprep.subr.bf16.mxu1 %v10982_v49  ;;  %v5768_v51 = vrot.slane %v12424_v46, %v5767_v17  ;;  %v11025_v49 = vld [vmem:[%s12595_s11 + $0x90] sm:$0xff]   ;;  %v11027_v46 = vld [vmem:[%s12595_s11 + $0x88] sm:$0xff]  }
 0xdc4   :  { %8170 = vmatprep.subr.bf16.mxu0 %v10985_v19 }
 0xdc6   :  { %8130 = vmatpush2.bf16.msra.mxu1 %v10980_v22 }
 0xdc7   :  { %8171 = vmatpush2.bf16.msra.mxu0 %v10983_v35  ;;  %8131 = vmatprep.subr.bf16.mxu1 %v10988_v62 }
 0xdc8   :  { %8172 = vmatprep.subr.bf16.mxu0 %v10991_v29 }
 0xdca   :  { %8132 = vmatpush2.bf16.msra.mxu1 %v10986_v36 }
 0xdcb   :  { %8173 = vmatpush2.bf16.msra.mxu0 %v10989_v27  ;;  %8133 = vmatprep.subr.bf16.mxu1 %v10994_v6 }
 0xdcc   :  { %8174 = vmatprep.subr.bf16.mxu0 %v10997_v11 }
 0xdce   :  { %8134 = vmatpush2.bf16.msra.mxu1 %v10992_v41 }
 0xdcf   :  { %8175 = vmatpush2.bf16.msra.mxu0 %v10995_v33  ;;  %9654 = vmatprep.subr.bf16.mxu1 %v10998_v34  ;;  %v11028_v34 = vld [vmem:[%s12595_s11 + $0xc0] sm:$0xff]  }
 0xdd0   :  { %9804 = vmatprep.subr.mxu0 %v11455_v0 }
 0xdd1   :  { %v7891_v56 = vpop.f32.mrf.mxu1  ;;  %8136 = vmatmul.mubr.bf16.vlgmr.msra.gmra.mxu1 %v12402_v45 }
 0xdd2   :  { %v7932_v37 = vpop.f32.mrf.mxu0  ;;  %8177 = vmatmul.mubr.bf16.vlgmr.msra.gmra.mxu0 %v12406_v7  ;;  %9655 = vmatpush3.bf16.msra.mxu1 %v10999_v25  ;;  %v7892_v43 = vadd.f32 %v7891_v56, %v12445_v63  ;;  %v11013_v63 = vld [vmem:[%s12595_s11] sm:$0xff]  }
 0xdd3   :  { %9814 = vmatprep.mubr.msk.f32.mxu0 %vm11456_vm1, %v11455_v0  ;;  %v7893_v8 = vpop.f32.mrf.mxu1  ;;  %9656 = vmatprep.subr.bf16.mxu1 %v11000_v2  ;;  %v8537_v25 = vld [vmem:[#allocation6] sm:$0x3] }
 0xdd4   :  { %v7934_v5 = vpop.f32.mrf.mxu0  ;;  %v7894_v45 = vadd.f32 %v7893_v8, %v7853_v54  ;;  %v7933_v20 = vadd.f32 %v7932_v37, %v7892_v43  ;;  %8539 = vrot.lane.b32.xlu0 %v8537_v25, %s11458_s25 }
 0xdd5   :  { %v7895_v50 = vpop.f32.mrf.mxu1 }
 0xdd6   :  { %v7936_v7 = vpop.f32.mrf.mxu0  ;;  %v7935_v21 = vadd.f32 %v7934_v5, %v7894_v45  ;;  %9657 = vmatpush3.bf16.msra.mxu1 %v11001_v18  ;;  %v8185_v48 = vmax.f32 %v7933_v20, 0.0 }
 0xdd7   :  { %v7896_v3 = vpop.f32.mrf.mxu1  ;;  %9658 = vmatprep.subr.bf16.mxu1 %v11002_v40 }
 0xdd8   :  { %v7937_v30 = vpop.f32.mrf.mxu0  ;;  %v8186_v26 = vmax.f32 %v7935_v21, 0.0  ;;  %v8189_v10 = vpack.c.bf16 %v8185_v48, %v8185_v48 }
 0xdda   :  { %v8190_v12 = vpack.c.bf16 %v8186_v26, %v8186_v26  ;;  %9659 = vmatpush3.bf16.msra.mxu1 %v11003_v31 }
 0xddb   :  { %9660 = vmatprep.subr.bf16.mxu1 %v11004_v32 }
 0xddc   :  { %8488 = vmatprep.mubr.bf16.mxu1 %v8190_v12 }
 0xdde   :  { %9661 = vmatpush3.bf16.msra.mxu1 %v11005_v24 }
 0xddf   :  { %9662 = vmatprep.subr.bf16.mxu1 %v11006_v52 }
 0xde2   :  { %9663 = vmatpush3.bf16.msra.mxu1 %v11007_v57 }
 0xde3   :  { %9664 = vmatprep.subr.bf16.mxu1 %v11008_v14 }
 0xde6   :  { %9665 = vmatpush3.bf16.msra.mxu1 %v11009_v39 }
 0xde7   :  { %9666 = vmatprep.subr.bf16.mxu1 %v11010_v44 }
 0xdea   :  { %9667 = vmatpush3.bf16.msra.mxu1 %v11011_v28 }
 0xdeb   :  { %9668 = vmatprep.subr.bf16.mxu1 %v11012_v47 }
 0xdee   :  { %9669 = vmatpush3.bf16.msra.mxu1 %v11013_v63 }
 0xdef   :  { %9676 = vmatprep.subr.bf16.mxu1 %v11014_v4 }
 0xdf1   :  { %8489 = vmatmul.mubr.bf16.vlgmr.msra.gmra.mxu1 %v8189_v10 }
 0xdf2   :  { %9677 = vmatpush3.bf16.msra.mxu1 %v11015_v16 }
 0xdf3   :  { %9678 = vmatprep.subr.bf16.mxu1 %v11016_v9  ;;  %v8547_v9 = vld [vmem:[%s12597_s13 + $0x20] sm:$0xf] }
 0xdf4   :  { %9805 = vmatpush3.msk.msra.mxu0 %vm2813_vm12, %v8547_v9 }
 0xdf5   :  { %9806 = vmatprep.subr.mxu0 %v11455_v0 }
 0xdf6   :  { %9679 = vmatpush3.bf16.msra.mxu1 %v11017_v23  ;;  %v8546_v23 = vld [vmem:[%s12597_s13 + $0x18] sm:$0xff] }
 0xdf7   :  { %9680 = vmatprep.subr.bf16.mxu1 %v11018_v38  ;;  %9807 = vmatpush3.msra.mxu0 %v8546_v23  ;;  %v8545_v38 = vld [vmem:[%s12597_s13 + $0x10] sm:$0xff] }
 0xdf8   :  { %9808 = vmatprep.subr.mxu0 %v11455_v0 }
 0xdf9   :  { %9809 = vmatpush3.msra.mxu0 %v8545_v38 }
 0xdfa   :  { %9681 = vmatpush3.bf16.msra.mxu1 %v11019_v55  ;;  %9810 = vmatprep.subr.mxu0 %v11455_v0  ;;  %v8544_v55 = vld [vmem:[%s12597_s13 + $0x8] sm:$0xff] }
 0xdfb   :  { %9682 = vmatprep.subr.bf16.mxu1 %v11020_v58  ;;  %9811 = vmatpush3.msra.mxu0 %v8544_v55  ;;  %v8543_v58 = vld [vmem:[%s12597_s13] sm:$0xff]  ;;  %s11390_s13 = scalar_lea.vmem %s8641_s7, 32 }
 0xdfc   :  { %9812 = vmatprep.subr.mxu0 %v11455_v0  ;;  %v9546_v0 = vld [vmem:[#allocation23] ss:$0 sm:$0xff]  ;;  %p11391_p6 = scmp.ne.s32.totalorder %s8641_s7, %s11390_s13  ;;  %p11396_p8 = scmp.lt.s32.totalorder %s11390_s13, %s11390_s13 }
 0xdfd   :  { %9813 = vmatpush3.msra.mxu0 %v8543_v58 }
 0xdfe   :  { %9683 = vmatpush3.bf16.msra.mxu1 %v11021_v60  ;;  %v9513_v60 = vld [vmem:[#allocation21] ss:$0 sm:$0xff]  ;;  %p11397_p9 = por %p11396_p8, %p11395_p7 }
 0xdff   :  { %9684 = vmatprep.subr.bf16.mxu1 %v11022_v61 }
 0xe00   :  { %p11398_p10 = pnand %p11397_p9, %p11391_p6 }
 0xe02   :  { %9685 = vmatpush3.bf16.msra.mxu1 %v11023_v1 }
 0xe03   :  { %9686 = vmatprep.subr.bf16.mxu1 %v11024_v13 }
 0xe06   :  { %9687 = vmatpush3.bf16.msra.mxu1 %v11025_v49 }
 0xe07   :  { %9688 = vmatprep.subr.bf16.mxu1 %v11026_v59 }
 0xe0a   :  { %9689 = vmatpush3.bf16.msra.mxu1 %v11027_v46 }
 0xe0b   :  { %9690 = vmatprep.subr.bf16.mxu1 %v11028_v34 }
 0xe0e   :  { %9691 = vmatpush3.bf16.msra.mxu1 %v11029_v15 }
 0xe11   :  { %v7973_v19 = vpop.f32.mrf.mxu1 }
 0xe12   :  { %v8014_v22 = vpop.f32.mrf.mxu0  ;;  %v7974_v35 = vadd.f32 %v7973_v19, %v5764_v53 }
 0xe13   :  { %v7975_v62 = vpop.f32.mrf.mxu1 }
 0xe14   :  { %v8016_v29 = vpop.f32.mrf.mxu0  ;;  %v8015_v42 = vadd.f32 %v8014_v22, %v7974_v35  ;;  %v7976_v36 = vadd.f32 %v7975_v62, %v5768_v51 }
 0xe15   :  { %v7977_v27 = vpop.f32.mrf.mxu1 }
 0xe16   :  { %v8018_v6 = vpop.f32.mrf.mxu0  ;;  %v8017_v11 = vadd.f32 %v8016_v29, %v7976_v36 }
 0xe17   :  { %v7978_v41 = vpop.f32.mrf.mxu1 }
 0xe18   :  { %v8019_v33 = vpop.f32.mrf.mxu0 }
 0xe46   :  { %v8540_v19 = vpop.permute.xlu0 %8539 }
 0xe51   :  { %v8055_v2 = vpop.f32.mrf.mxu1 }
 0xe52   :  { %v8096_v56 = vpop.f32.mrf.mxu0  ;;  %v8056_v37 = vadd.f32 %v8055_v2, %v8015_v42 }
 0xe53   :  { %v8057_v54 = vpop.f32.mrf.mxu1 }
 0xe54   :  { %v8098_v18 = vpop.f32.mrf.mxu0  ;;  %v8097_v8 = vadd.f32 %v8096_v56, %v8056_v37  ;;  %v8058_v7 = vadd.f32 %v8057_v54, %v8017_v11 }
 0xe55   :  { %v8059_v5 = vpop.f32.mrf.mxu1 }
 0xe56   :  { %v8100_v40 = vpop.f32.mrf.mxu0  ;;  %v8099_v3 = vadd.f32 %v8098_v18, %v8058_v7 }
 0xe57   :  { %v8060_v45 = vpop.f32.mrf.mxu1 }
 0xe58   :  { %v8101_v50 = vpop.f32.mrf.mxu0 }
 0xe91   :  { %v8137_v21 = vpop.f32.mrf.mxu1 }
 0xe92   :  { %v8178_v31 = vpop.f32.mrf.mxu0  ;;  %v8138_v30 = vadd.f32 %v8137_v21, %v8097_v8 }
 0xe93   :  { %v8139_v32 = vpop.f32.mrf.mxu1 }
 0xe94   :  { %v8180_v26 = vpop.f32.mrf.mxu0  ;;  %v8179_v12 = vadd.f32 %v8178_v31, %v8138_v30  ;;  %v8140_v24 = vadd.f32 %v8139_v32, %v8099_v3 }
 0xe95   :  { %v8141_v52 = vpop.f32.mrf.mxu1 }
 0xe96   :  { %v8182_v57 = vpop.f32.mrf.mxu0  ;;  %v8181_v14 = vadd.f32 %v8180_v26, %v8140_v24  ;;  %v8187_v39 = vmax.f32 %v8179_v12, 0.0 }
 0xe97   :  { %v8142_v43 = vpop.f32.mrf.mxu1 }
 0xe98   :  { %v8183_v44 = vpop.f32.mrf.mxu0  ;;  %v8188_v28 = vmax.f32 %v8181_v14, 0.0  ;;  %v8191_v47 = vpack.c.bf16 %v8187_v39, %v8187_v39 }
 0xe9a   :  { %v8192_v20 = vpack.c.bf16 %v8188_v28, %v8188_v28 }
 0xe9c   :  { %8528 = vmatprep.mubr.bf16.mxu1 %v8192_v20 }
 0xe9d   :  { %8529 = vmatmul.mubr.bf16.vlgmr.msra.gmra.mxu1 %v8191_v47 }
 0xeb1   :  { %v9670_v63 = vpop.f32.mrf.mxu1 }
 0xeb3   :  { %v9671_v48 = vpop.f32.mrf.mxu1 }
 0xeb4   :  { %v9672_v4 = vadd.f32 %v9671_v48, %v9670_v63 }
 0xeb5   :  { %v9673_v16 = vpop.f32.mrf.mxu1 }
 0xeb6   :  { %v8491_v17 = vadd.f32 %v9672_v4, %v9513_v60 }
 0xeb7   :  { %v9674_v10 = vpop.f32.mrf.mxu1 }
 0xf5d   :  { %v9692_v61 = vpop.f32.mrf.mxu1 }
 0xf5f   :  { %v9693_v1 = vpop.f32.mrf.mxu1 }
 0xf60   :  { %v9694_v53 = vadd.f32 %v9693_v1, %v9692_v61 }
 0xf61   :  { %v9695_v13 = vpop.f32.mrf.mxu1 }
 0xf62   :  { %v8531_v51 = vadd.f32 %v9694_v53, %v8491_v17 }
 0xf63   :  { %v9696_v49 = vpop.f32.mrf.mxu1 }
 0xf64   :  { %v8536_v22 = vmax.f32 %v8531_v51, 0.0 }
 0xf66   :  { %v8542_v35 = vsel %vm467_vm4, %v8536_v22, %v8540_v19 }
 0xf67   :  { %9815 = vmatmul.mubr.msk.f32.vlgmr.msra.gmra.mxu0 %vm8555_vm15, %v8542_v35 }
0x1027   :  { %v8628_v62 = vpop.f32.mrf.mxu0 }
0x1028   :  { %v8629_v29 = vadd.f32 %v9546_v0, %v8628_v62 }
0x1029   :  { %v9816_v59 = vpop.f32.mrf.mxu0 }
0x102a   :  { %8633 = vst.msk [vmem:[#allocation30] sm:$0x3] %vm8632_vm0, %v8629_v29 }
0x102b   :  { %11401 = shalt.err (!%p11398_p10)
}
0x102c   :  { %8643 = dma.vmem_to_hbm [thread:$0]  %s8641_s7, 32, %s12606_s22, [#allocation8]  }
0x102d   :  { %11432 = dma.done.wait [#allocation8], 32  }
0x102e   :  { %11433 = vsyncadd [#allocation8], 4294967264 }
0x102f   :  { %8647 = vsyncpa [#allocation7], 1 }
0x1030   :  { %8648 = vsyncpa [#allocation10], 1 }
0x1031   :  { %8649 = vsyncpa [#allocation13], 1 }
0x1032   :  { %8650 = vsyncpa [#allocation16], 1 }
0x1033   :  { %8651 = vsyncpa [#allocation19], 1 }
0x1034   :  { %8652 = vsyncpa [#allocation22], 1 }
0x1035   :  { %8653 = vsyncpa [#allocation25], 1 }
0x1036   :  { %8654 = vsyncpa [#allocation28], 1 }
0x1037   :  { %8655 = vsyncpa [#allocation8], 1 }
0x1038   :  { %8656 = vsyncmov [#allocation5] }
0x103b   :  { %s8657_s29 = vpop.sfrf %8656 }
0x103c   :  { %p9549_p11 = scmp.ne.s32.totalorder %s8657_s29, 0 }
0x103e   :  { %8661 = shalt.err (%p9549_p11)  }
0x103f   :  { %8663 = vsyncmov [#allocation5 + $0x1] }
0x1042   :  { %s8664_s4 = vpop.sfrf %8663 }
0x1043   :  { %p9550_p12 = scmp.ne.s32.totalorder %s8664_s4, 0 }
0x1045   :  { %8668 = shalt.err (%p9550_p12)  }
0x1046   :  { %8670 = vsyncmov [#allocation5 + $0x2] }
0x1049   :  { %s8671_s22 = vpop.sfrf %8670 }
0x104a   :  { %p9551_p13 = scmp.ne.s32.totalorder %s8671_s22, 0 }
0x104c   :  { %8675 = shalt.err (%p9551_p13)  }

</bundles_post_ra>
